<compile_context>
chip_gen: v7x
topology: tpu7x:2x2x1
jax: 0.10.0
libtpu: 0.0.40
codegen_flags: <defaults>
</compile_context>

<pallas_src>
import numpy as np
import jax
import jax.numpy as jnp
from jax.experimental import pallas as pl
from jax.experimental.pallas import tpu as pltpu

EPS = 1e-5


def _round_up(x, m):
    return ((x + m - 1) // m) * m


def _default_tiles():
    """(tm, tn) per chip generation: v5e keeps tn=128 (128-wide MXU), bigger tm;
    v6e / v7x use tn=256 (256-wide MXU)."""
    try:
        kind = jax.devices()[0].device_kind.lower()
    except Exception:
        kind = ""
    if "v5" in kind:
        return 512, 128
    return 256, 256


# ----------------------------------------------------------------------------
# Kernel 1a: single-K-step fused  patches @ W  ->  +bias  ->  LeakyReLU(0.2)
#            (no accumulator scratch, no init/finalize branches)
# ----------------------------------------------------------------------------
def _mm_bias_lrelu_single_kernel(p_ref, w_ref, b_ref, o_ref):
    y = jnp.dot(p_ref[...], w_ref[...], preferred_element_type=jnp.float32)
    y = y + b_ref[...]
    o_ref[...] = jnp.maximum(y, 0.2 * y).astype(o_ref.dtype)   # LeakyReLU(0.2)


# ----------------------------------------------------------------------------
# Kernel 1b: multi-K fallback with f32 VMEM accumulator (K > tk_max only)
# ----------------------------------------------------------------------------
def _mm_bias_lrelu_multi_kernel(p_ref, w_ref, b_ref, o_ref, acc_ref):
    @pl.when(pl.program_id(2) == 0)
    def _():
        acc_ref[...] = jnp.zeros_like(acc_ref)

    acc_ref[...] += jnp.dot(p_ref[...], w_ref[...],
                            preferred_element_type=jnp.float32)

    @pl.when(pl.program_id(2) == pl.num_programs(2) - 1)
    def _():
        y = acc_ref[...] + b_ref[...]
        o_ref[...] = jnp.maximum(y, 0.2 * y).astype(o_ref.dtype)


def conv_bn_lrelu(patches, w_mat, bias, *, tm=None, tn=None, tk_max=4608,
                  out_dtype=jnp.bfloat16):
    """patches: (M, K) bf16, w_mat: (K, N) bf16 (BN scale folded in), bias: (N,) f32.

    Returns (M, Np) with Np = round_up(N, tn); padded columns are exact zeros
    (zero weight columns + zero bias -> LeakyReLU(0) == 0), so they can be
    carried into the next layer's im2col with zero weight rows.
    """
    M, K = patches.shape
    _, N = w_mat.shape

    tm_d, tn_d = _default_tiles()
    tm = min(tm if tm is not None else tm_d, _round_up(M, 16))   # bf16 sublanes
    tn = min(tn if tn is not None else tn_d, _round_up(N, 128))  # lane-dense out

    single_k = _round_up(K, 16) <= tk_max
    tk = _round_up(K, 16) if single_k else tk_max                # tk_max % 128 == 0

    Mp = _round_up(M, tm)
    Np = _round_up(N, tn)
    Kp = _round_up(K, tk)

    if (Mp, Kp) != (M, K):
        patches = jnp.pad(patches, ((0, Mp - M), (0, Kp - K)))
    if (Kp, Np) != (K, N):
        w_mat = jnp.pad(w_mat, ((0, Kp - K), (0, Np - N)))
    if Np != N:
        bias = jnp.pad(bias, ((0, Np - N),))
    bias2d = bias.reshape(1, Np).astype(jnp.float32)

    if single_k:
        grid = (Mp // tm, Np // tn)
        out = pl.pallas_call(
            _mm_bias_lrelu_single_kernel,
            out_shape=jax.ShapeDtypeStruct((Mp, Np), out_dtype),
            grid_spec=pltpu.PrefetchScalarGridSpec(
                num_scalar_prefetch=0,
                grid=grid,
                in_specs=[
                    pl.BlockSpec((tm, Kp), lambda i, j: (i, 0)),
                    pl.BlockSpec((Kp, tn), lambda i, j: (0, j)),
                    pl.BlockSpec((1, tn), lambda i, j: (0, j)),
                ],
                out_specs=pl.BlockSpec((tm, tn), lambda i, j: (i, j)),
            ),
            compiler_params=pltpu.CompilerParams(
                dimension_semantics=("parallel", "parallel"),
                vmem_limit_bytes=32 * 1024 * 1024,
            ),
        )(patches, w_mat, bias2d)
    else:
        grid = (Mp // tm, Np // tn, Kp // tk)
        out = pl.pallas_call(
            _mm_bias_lrelu_multi_kernel,
            out_shape=jax.ShapeDtypeStruct((Mp, Np), out_dtype),
            grid_spec=pltpu.PrefetchScalarGridSpec(
                num_scalar_prefetch=0,
                grid=grid,
                in_specs=[
                    pl.BlockSpec((tm, tk), lambda i, j, k: (i, k)),
                    pl.BlockSpec((tk, tn), lambda i, j, k: (k, j)),
                    pl.BlockSpec((1, tn), lambda i, j, k: (0, j)),
                ],
                out_specs=pl.BlockSpec((tm, tn), lambda i, j, k: (i, j)),
                scratch_shapes=[pltpu.VMEM((tm, tn), jnp.float32)],
            ),
            compiler_params=pltpu.CompilerParams(
                dimension_semantics=("parallel", "parallel", "arbitrary"),
                vmem_limit_bytes=32 * 1024 * 1024,
            ),
        )(patches, w_mat, bias2d)

    if Mp != M:
        out = out[:M]          # row padding only; channel padding is kept
    return out


# ----------------------------------------------------------------------------
# Kernel 2: classifier head  (avg-pool + 1x1 conv + LeakyReLU + 1x1 conv + sigmoid)
# ----------------------------------------------------------------------------
def _classifier_head_kernel(f_ref, w1_ref, b1_ref, w2_ref, b2_ref, o_ref):
    pooled = jnp.mean(f_ref[...].astype(jnp.float32), axis=1)        # (N, 512) f32
    h = jnp.dot(pooled.astype(jnp.bfloat16), w1_ref[...],
                preferred_element_type=jnp.float32) + b1_ref[...]
    h = jnp.maximum(h, 0.2 * h)                                       # LeakyReLU(0.2)
    # Final (1024 -> 1) projection as VPU multiply + lane reduce (avoids a
    # degenerate (1024,1) MXU matmul and its 1-lane masked layout).
    z = jnp.sum(h * w2_ref[...], axis=-1, keepdims=True) + b2_ref[...]
    e = jnp.exp(-jnp.abs(z))                                          # stable sigmoid
    o_ref[...] = jnp.where(z >= 0.0, 1.0 / (1.0 + e), e / (1.0 + e))


def classifier_head(feats, w1_bf16, b1, w2_row, b2):
    """feats: (N, HW, 512) bf16; w1_bf16: (512,1024) bf16; w2_row: (1,1024) f32."""
    N, HW, C = feats.shape
    C1 = w1_bf16.shape[1]
    return pl.pallas_call(
        _classifier_head_kernel,
        out_shape=jax.ShapeDtypeStruct((N, 1), jnp.float32),
        grid=(1,),
        in_specs=[
            pl.BlockSpec((N, HW, C), lambda i: (0, 0, 0)),
            pl.BlockSpec((C, C1), lambda i: (0, 0)),
            pl.BlockSpec((1, C1), lambda i: (0, 0)),
            pl.BlockSpec((1, C1), lambda i: (0, 0)),
            pl.BlockSpec((1, 1), lambda i: (0, 0)),
        ],
        out_specs=pl.BlockSpec((N, 1), lambda i: (0, 0)),
        compiler_params=pltpu.CompilerParams(
            dimension_semantics=("arbitrary",),
            vmem_limit_bytes=32 * 1024 * 1024,
        ),
    )(feats, w1_bf16, b1, w2_row, b2)


# ----------------------------------------------------------------------------
# Glue (im2col, parameter setup, forward)
# ----------------------------------------------------------------------------
def im2col(x, k=3, stride=2, pad=1):
    """x: (N, H, W, C) -> ((N*Ho*Wo, k*k*C), (N, Ho, Wo)). Keeps x's dtype."""
    N, H, W, C = x.shape
    xp = jnp.pad(x, ((0, 0), (pad, pad), (pad, pad), (0, 0)))
    Ho = (H + 2 * pad - k) // stride + 1
    Wo = (W + 2 * pad - k) // stride + 1
    taps = []
    for di in range(k):
        for dj in range(k):
            taps.append(xp[:, di:di + stride * Ho:stride, dj:dj + stride * Wo:stride, :])
    patches = jnp.stack(taps, axis=-2)                 # (N, Ho, Wo, k*k, C)
    return patches.reshape(N * Ho * Wo, k * k * C), (N, Ho, Wo)


def make_params(key):
    cfg = [(3, 64), (64, 128), (128, 256), (256, 512)]
    params = {"blocks": []}
    for cin, cout in cfg:
        key, k0, k1, k2, k3, k4, k5 = jax.random.split(key, 7)
        params["blocks"].append(dict(
            w=jax.random.normal(k0, (3, 3, cin, cout), jnp.float32) / np.sqrt(9.0 * cin),
            b=0.1 * jax.random.normal(k1, (cout,), jnp.float32),
            gamma=1.0 + 0.1 * jax.random.normal(k2, (cout,), jnp.float32),
            beta=0.1 * jax.random.normal(k3, (cout,), jnp.float32),
            mean=0.1 * jax.random.normal(k4, (cout,), jnp.float32),
            var=jax.random.uniform(k5, (cout,), jnp.float32, 0.5, 1.5),
        ))
    key, k1, k2, k3, k4 = jax.random.split(key, 5)
    params["w1"] = jax.random.normal(k1, (512, 1024), jnp.float32) / np.sqrt(512.0)
    params["b1"] = 0.1 * jax.random.normal(k2, (1024,), jnp.float32)
    params["w2"] = jax.random.normal(k3, (1024, 1), jnp.float32) / np.sqrt(1024.0)
    params["b2"] = 0.1 * jax.random.normal(k4, (1,), jnp.float32)
    return params


def discriminator_forward(x_nchw, params):
    x = jnp.transpose(x_nchw, (0, 2, 3, 1)).astype(jnp.bfloat16)   # NCHW -> NHWC (bf16)
    for p in params["blocks"]:
        cin, cout = p["w"].shape[2], p["w"].shape[3]
        c_carried = x.shape[-1]                 # may exceed cin (lane-padded zeros)
        patches, (n, ho, wo) = im2col(x)
        # Constant-fold eval-mode BN: scale into weight columns, shift into bias.
        scale = p["gamma"] / jnp.sqrt(p["var"] + EPS)
        w = p["w"]
        if c_carried > cin:                     # zero rows for ghost input channels
            w = jnp.pad(w, ((0, 0), (0, 0), (0, c_carried - cin), (0, 0)))
        w_folded = (w.reshape(9 * c_carried, cout) * scale[None, :]).astype(jnp.bfloat16)
        bias = p["beta"] + scale * (p["b"] - p["mean"])
        y = conv_bn_lrelu(patches, w_folded, bias)          # (M, Np), Np >= cout
        x = y.reshape(n, ho, wo, y.shape[-1])
    n, h, w_sp, _ = x.shape
    feats = x[..., :512].reshape(n, h * w_sp, 512)          # block-4 Cout unpadded
    return classifier_head(feats,
                           params["w1"].astype(jnp.bfloat16),
                           params["b1"][None, :],
                           params["w2"].T,                  # (1, 1024) row
                           params["b2"][None, :])           # (N, 1)


def reference_forward(x_nchw, params):
    """Pure-JAX f32 reference mirroring the PyTorch module (eval-mode BN)."""
    x = x_nchw
    for p in params["blocks"]:
        w = jnp.transpose(p["w"], (3, 2, 0, 1))        # HWIO -> OIHW
        y = jax.lax.conv_general_dilated(
            x, w, (2, 2), ((1, 1), (1, 1)),
            dimension_numbers=("NCHW", "OIHW", "NCHW"))
        y = y + p["b"][None, :, None, None]
        y = ((y - p["mean"][None, :, None, None])
             / jnp.sqrt(p["var"][None, :, None, None] + EPS)
             * p["gamma"][None, :, None, None] + p["beta"][None, :, None, None])
        x = jnp.where(y >= 0.0, y, 0.2 * y)
    pooled = jnp.mean(x, axis=(2, 3))
    h = pooled @ params["w1"] + params["b1"]
    h = jnp.where(h >= 0.0, h, 0.2 * h)
    z = h @ params["w2"] + params["b2"]
    return 1.0 / (1.0 + jnp.exp(-z))


if __name__ == "__main__":
    key = jax.random.PRNGKey(0)
    key, kx, kp = jax.random.split(key, 3)
    # PyTorch-style NCHW input: batch=2, channels=3, spatial=16
    x = jax.random.normal(kx, (2, 3, 16, 16), jnp.float32)
    params = make_params(kp)

    fwd = jax.jit(discriminator_forward)
    out = jax.block_until_ready(fwd(x, params))
    assert out.shape == (2, 1), out.shape

    ref = jax.block_until_ready(reference_forward(x, params))
    assert np.all(np.isfinite(np.asarray(out)))
    assert np.allclose(np.asarray(out), np.asarray(ref), atol=2e-2, rtol=2e-2), (out, ref)

    print("KERNEL_OK")
</pallas_src>

<mosaic_0001>
module attributes {stable_mosaic.version = 11 : i64} {
  func.func @_mm_bias_lrelu_single_kernel(%arg0: i32, %arg1: i32, %arg2: memref<128x32xbf16, #tpu.memory_space<vmem>>, %arg3: memref<32x128xbf16, #tpu.memory_space<vmem>>, %arg4: memref<1x128xf32, #tpu.memory_space<vmem>>, %arg5: memref<128x128xbf16, #tpu.memory_space<vmem>>) attributes {dimension_semantics = [#tpu.dimension_semantics<parallel>, #tpu.dimension_semantics<parallel>], iteration_bounds = array<i64: 1, 1>, scalar_prefetch = 0 : i64, scratch_operands = 0 : i64, tpu.core_type = #tpu.core_type<tc>, window_params = [{transform_indices = @transform_0, window_bounds = array<i64: 128, 32>}, {transform_indices = @transform_1, window_bounds = array<i64: 32, 128>}, {transform_indices = @transform_2, window_bounds = array<i64: 1, 128>}, {transform_indices = @transform_3, window_bounds = array<i64: 128, 128>}]} {
    %c0 = arith.constant 0 : index
    %c0_0 = arith.constant 0 : index
    %0 = vector.load %arg2[%c0, %c0_0] : memref<128x32xbf16, #tpu.memory_space<vmem>>, vector<128x32xbf16>
    %c0_1 = arith.constant 0 : index
    %c0_2 = arith.constant 0 : index
    %1 = vector.load %arg3[%c0_1, %c0_2] : memref<32x128xbf16, #tpu.memory_space<vmem>>, vector<32x128xbf16>
    %cst = arith.constant dense<0.000000e+00> : vector<128x128xf32>
    %2 = tpu.matmul %0, %1, %cst {dimension_numbers = #tpu.dot_dimension_numbers<[1], [0], [0], [1], [0, 0, 1, 1], [], []>} : vector<128x32xbf16>, vector<32x128xbf16>, vector<128x128xf32> -> vector<128x128xf32>
    %c0_3 = arith.constant 0 : index
    %c0_4 = arith.constant 0 : index
    %3 = vector.load %arg4[%c0_3, %c0_4] : memref<1x128xf32, #tpu.memory_space<vmem>>, vector<1x128xf32>
    %4 = vector.broadcast %3 : vector<1x128xf32> to vector<128x128xf32>
    %5 = arith.addf %2, %4 : vector<128x128xf32>
    %cst_5 = arith.constant 2.000000e-01 : f32
    %6 = vector.broadcast %cst_5 : f32 to vector<128x128xf32>
    %7 = arith.mulf %6, %5 : vector<128x128xf32>
    %8 = arith.maximumf %5, %7 : vector<128x128xf32>
    %9 = arith.truncf %8 : vector<128x128xf32> to vector<128x128xbf16>
    %c0_6 = arith.constant 0 : index
    %c0_7 = arith.constant 0 : index
    %10 = vector.load %arg5[%c0_6, %c0_7] : memref<128x128xbf16, #tpu.memory_space<vmem>>, vector<128x128xbf16>
    tpu.vector_store %arg5[%c0_6, %c0_7], %9 {strides = array<i32>} : memref<128x128xbf16, #tpu.memory_space<vmem>>, vector<128x128xbf16>,
    return
  }
  func.func @transform_0(%arg0: i32, %arg1: i32) -> (i32, i32) {
    %c0_i32 = arith.constant 0 : i32
    %c0_i32_0 = arith.constant 0 : i32
    return %arg0, %c0_i32 : i32, i32
  }
  func.func @transform_1(%arg0: i32, %arg1: i32) -> (i32, i32) {
    %c0_i32 = arith.constant 0 : i32
    %c0_i32_0 = arith.constant 0 : i32
    return %c0_i32, %arg1 : i32, i32
  }
  func.func @transform_2(%arg0: i32, %arg1: i32) -> (i32, i32) {
    %c0_i32 = arith.constant 0 : i32
    %c0_i32_0 = arith.constant 0 : i32
    return %c0_i32, %arg1 : i32, i32
  }
  func.func @transform_3(%arg0: i32, %arg1: i32) -> (i32, i32) {
    %c0_i32 = arith.constant 0 : i32
    return %arg0, %arg1 : i32, i32
  }
}

module attributes {stable_mosaic.version = 11 : i64} {
  func.func @_mm_bias_lrelu_single_kernel(%arg0: i32, %arg1: i32, %arg2: memref<32x1152xbf16, #tpu.memory_space<vmem>>, %arg3: memref<1152x128xbf16, #tpu.memory_space<vmem>>, %arg4: memref<1x128xf32, #tpu.memory_space<vmem>>, %arg5: memref<32x128xbf16, #tpu.memory_space<vmem>>) attributes {dimension_semantics = [#tpu.dimension_semantics<parallel>, #tpu.dimension_semantics<parallel>], iteration_bounds = array<i64: 1, 1>, scalar_prefetch = 0 : i64, scratch_operands = 0 : i64, tpu.core_type = #tpu.core_type<tc>, window_params = [{transform_indices = @transform_0, window_bounds = array<i64: 32, 1152>}, {transform_indices = @transform_1, window_bounds = array<i64: 1152, 128>}, {transform_indices = @transform_2, window_bounds = array<i64: 1, 128>}, {transform_indices = @transform_3, window_bounds = array<i64: 32, 128>}]} {
    %c0 = arith.constant 0 : index
    %c0_0 = arith.constant 0 : index
    %0 = vector.load %arg2[%c0, %c0_0] : memref<32x1152xbf16, #tpu.memory_space<vmem>>, vector<32x1152xbf16>
    %c0_1 = arith.constant 0 : index
    %c0_2 = arith.constant 0 : index
    %1 = vector.load %arg3[%c0_1, %c0_2] : memref<1152x128xbf16, #tpu.memory_space<vmem>>, vector<1152x128xbf16>
    %cst = arith.constant dense<0.000000e+00> : vector<32x128xf32>
    %2 = tpu.matmul %0, %1, %cst {dimension_numbers = #tpu.dot_dimension_numbers<[1], [0], [0], [1], [0, 0, 1, 1], [], []>} : vector<32x1152xbf16>, vector<1152x128xbf16>, vector<32x128xf32> -> vector<32x128xf32>
    %c0_3 = arith.constant 0 : index
    %c0_4 = arith.constant 0 : index
    %3 = vector.load %arg4[%c0_3, %c0_4] : memref<1x128xf32, #tpu.memory_space<vmem>>, vector<1x128xf32>
    %4 = vector.broadcast %3 : vector<1x128xf32> to vector<32x128xf32>
    %5 = arith.addf %2, %4 : vector<32x128xf32>
    %cst_5 = arith.constant 2.000000e-01 : f32
    %6 = vector.broadcast %cst_5 : f32 to vector<32x128xf32>
    %7 = arith.mulf %6, %5 : vector<32x128xf32>
    %8 = arith.maximumf %5, %7 : vector<32x128xf32>
    %9 = arith.truncf %8 : vector<32x128xf32> to vector<32x128xbf16>
    %c0_6 = arith.constant 0 : index
    %c0_7 = arith.constant 0 : index
    %10 = vector.load %arg5[%c0_6, %c0_7] : memref<32x128xbf16, #tpu.memory_space<vmem>>, vector<32x128xbf16>
    tpu.vector_store %arg5[%c0_6, %c0_7], %9 {strides = array<i32>} : memref<32x128xbf16, #tpu.memory_space<vmem>>, vector<32x128xbf16>,
    return
  }
  func.func @transform_0(%arg0: i32, %arg1: i32) -> (i32, i32) {
    %c0_i32 = arith.constant 0 : i32
    %c0_i32_0 = arith.constant 0 : i32
    return %arg0, %c0_i32 : i32, i32
  }
  func.func @transform_1(%arg0: i32, %arg1: i32) -> (i32, i32) {
    %c0_i32 = arith.constant 0 : i32
    %c0_i32_0 = arith.constant 0 : i32
    return %c0_i32, %arg1 : i32, i32
  }
  func.func @transform_2(%arg0: i32, %arg1: i32) -> (i32, i32) {
    %c0_i32 = arith.constant 0 : i32
    %c0_i32_0 = arith.constant 0 : i32
    return %c0_i32, %arg1 : i32, i32
  }
  func.func @transform_3(%arg0: i32, %arg1: i32) -> (i32, i32) {
    %c0_i32 = arith.constant 0 : i32
    return %arg0, %arg1 : i32, i32
  }
}

module attributes {stable_mosaic.version = 11 : i64} {
  func.func @_mm_bias_lrelu_single_kernel(%arg0: i32, %arg1: i32, %arg2: memref<16x1152xbf16, #tpu.memory_space<vmem>>, %arg3: memref<1152x256xbf16, #tpu.memory_space<vmem>>, %arg4: memref<1x256xf32, #tpu.memory_space<vmem>>, %arg5: memref<16x256xbf16, #tpu.memory_space<vmem>>) attributes {dimension_semantics = [#tpu.dimension_semantics<parallel>, #tpu.dimension_semantics<parallel>], iteration_bounds = array<i64: 1, 1>, scalar_prefetch = 0 : i64, scratch_operands = 0 : i64, tpu.core_type = #tpu.core_type<tc>, window_params = [{transform_indices = @transform_0, window_bounds = array<i64: 16, 1152>}, {transform_indices = @transform_1, window_bounds = array<i64: 1152, 256>}, {transform_indices = @transform_2, window_bounds = array<i64: 1, 256>}, {transform_indices = @transform_3, window_bounds = array<i64: 16, 256>}]} {
    %c0 = arith.constant 0 : index
    %c0_0 = arith.constant 0 : index
    %0 = vector.load %arg2[%c0, %c0_0] : memref<16x1152xbf16, #tpu.memory_space<vmem>>, vector<16x1152xbf16>
    %c0_1 = arith.constant 0 : index
    %c0_2 = arith.constant 0 : index
    %1 = vector.load %arg3[%c0_1, %c0_2] : memref<1152x256xbf16, #tpu.memory_space<vmem>>, vector<1152x256xbf16>
    %cst = arith.constant dense<0.000000e+00> : vector<16x256xf32>
    %2 = tpu.matmul %0, %1, %cst {dimension_numbers = #tpu.dot_dimension_numbers<[1], [0], [0], [1], [0, 0, 1, 1], [], []>} : vector<16x1152xbf16>, vector<1152x256xbf16>, vector<16x256xf32> -> vector<16x256xf32>
    %c0_3 = arith.constant 0 : index
    %c0_4 = arith.constant 0 : index
    %3 = vector.load %arg4[%c0_3, %c0_4] : memref<1x256xf32, #tpu.memory_space<vmem>>, vector<1x256xf32>
    %4 = vector.broadcast %3 : vector<1x256xf32> to vector<16x256xf32>
    %5 = arith.addf %2, %4 : vector<16x256xf32>
    %cst_5 = arith.constant 2.000000e-01 : f32
    %6 = vector.broadcast %cst_5 : f32 to vector<16x256xf32>
    %7 = arith.mulf %6, %5 : vector<16x256xf32>
    %8 = arith.maximumf %5, %7 : vector<16x256xf32>
    %9 = arith.truncf %8 : vector<16x256xf32> to vector<16x256xbf16>
    %c0_6 = arith.constant 0 : index
    %c0_7 = arith.constant 0 : index
    %10 = vector.load %arg5[%c0_6, %c0_7] : memref<16x256xbf16, #tpu.memory_space<vmem>>, vector<16x256xbf16>
    tpu.vector_store %arg5[%c0_6, %c0_7], %9 {strides = array<i32>} : memref<16x256xbf16, #tpu.memory_space<vmem>>, vector<16x256xbf16>,
    return
  }
  func.func @transform_0(%arg0: i32, %arg1: i32) -> (i32, i32) {
    %c0_i32 = arith.constant 0 : i32
    %c0_i32_0 = arith.constant 0 : i32
    return %arg0, %c0_i32 : i32, i32
  }
  func.func @transform_1(%arg0: i32, %arg1: i32) -> (i32, i32) {
    %c0_i32 = arith.constant 0 : i32
    %c0_i32_0 = arith.constant 0 : i32
    return %c0_i32, %arg1 : i32, i32
  }
  func.func @transform_2(%arg0: i32, %arg1: i32) -> (i32, i32) {
    %c0_i32 = arith.constant 0 : i32
    %c0_i32_0 = arith.constant 0 : i32
    return %c0_i32, %arg1 : i32, i32
  }
  func.func @transform_3(%arg0: i32, %arg1: i32) -> (i32, i32) {
    %c0_i32 = arith.constant 0 : i32
    return %arg0, %arg1 : i32, i32
  }
}

module attributes {stable_mosaic.version = 11 : i64} {
  func.func @_mm_bias_lrelu_single_kernel(%arg0: i32, %arg1: i32, %arg2: memref<16x2304xbf16, #tpu.memory_space<vmem>>, %arg3: memref<2304x256xbf16, #tpu.memory_space<vmem>>, %arg4: memref<1x256xf32, #tpu.memory_space<vmem>>, %arg5: memref<16x256xbf16, #tpu.memory_space<vmem>>) attributes {dimension_semantics = [#tpu.dimension_semantics<parallel>, #tpu.dimension_semantics<parallel>], iteration_bounds = array<i64: 1, 2>, scalar_prefetch = 0 : i64, scratch_operands = 0 : i64, tpu.core_type = #tpu.core_type<tc>, window_params = [{transform_indices = @transform_0, window_bounds = array<i64: 16, 2304>}, {transform_indices = @transform_1, window_bounds = array<i64: 2304, 256>}, {transform_indices = @transform_2, window_bounds = array<i64: 1, 256>}, {transform_indices = @transform_3, window_bounds = array<i64: 16, 256>}]} {
    %c0 = arith.constant 0 : index
    %c0_0 = arith.constant 0 : index
    %0 = vector.load %arg2[%c0, %c0_0] : memref<16x2304xbf16, #tpu.memory_space<vmem>>, vector<16x2304xbf16>
    %c0_1 = arith.constant 0 : index
    %c0_2 = arith.constant 0 : index
    %1 = vector.load %arg3[%c0_1, %c0_2] : memref<2304x256xbf16, #tpu.memory_space<vmem>>, vector<2304x256xbf16>
    %cst = arith.constant dense<0.000000e+00> : vector<16x256xf32>
    %2 = tpu.matmul %0, %1, %cst {dimension_numbers = #tpu.dot_dimension_numbers<[1], [0], [0], [1], [0, 0, 1, 1], [], []>} : vector<16x2304xbf16>, vector<2304x256xbf16>, vector<16x256xf32> -> vector<16x256xf32>
    %c0_3 = arith.constant 0 : index
    %c0_4 = arith.constant 0 : index
    %3 = vector.load %arg4[%c0_3, %c0_4] : memref<1x256xf32, #tpu.memory_space<vmem>>, vector<1x256xf32>
    %4 = vector.broadcast %3 : vector<1x256xf32> to vector<16x256xf32>
    %5 = arith.addf %2, %4 : vector<16x256xf32>
    %cst_5 = arith.constant 2.000000e-01 : f32
    %6 = vector.broadcast %cst_5 : f32 to vector<16x256xf32>
    %7 = arith.mulf %6, %5 : vector<16x256xf32>
    %8 = arith.maximumf %5, %7 : vector<16x256xf32>
    %9 = arith.truncf %8 : vector<16x256xf32> to vector<16x256xbf16>
    %c0_6 = arith.constant 0 : index
    %c0_7 = arith.constant 0 : index
    %10 = vector.load %arg5[%c0_6, %c0_7] : memref<16x256xbf16, #tpu.memory_space<vmem>>, vector<16x256xbf16>
    tpu.vector_store %arg5[%c0_6, %c0_7], %9 {strides = array<i32>} : memref<16x256xbf16, #tpu.memory_space<vmem>>, vector<16x256xbf16>,
    return
  }
  func.func @transform_0(%arg0: i32, %arg1: i32) -> (i32, i32) {
    %c0_i32 = arith.constant 0 : i32
    %c0_i32_0 = arith.constant 0 : i32
    return %arg0, %c0_i32 : i32, i32
  }
  func.func @transform_1(%arg0: i32, %arg1: i32) -> (i32, i32) {
    %c0_i32 = arith.constant 0 : i32
    %c0_i32_0 = arith.constant 0 : i32
    return %c0_i32, %arg1 : i32, i32
  }
  func.func @transform_2(%arg0: i32, %arg1: i32) -> (i32, i32) {
    %c0_i32 = arith.constant 0 : i32
    %c0_i32_0 = arith.constant 0 : i32
    return %c0_i32, %arg1 : i32, i32
  }
  func.func @transform_3(%arg0: i32, %arg1: i32) -> (i32, i32) {
    %c0_i32 = arith.constant 0 : i32
    return %arg0, %arg1 : i32, i32
  }
}

module attributes {stable_mosaic.version = 11 : i64} {
  func.func @_classifier_head_kernel(%arg0: i32, %arg1: memref<2x1x512xbf16, #tpu.memory_space<vmem>>, %arg2: memref<512x1024xbf16, #tpu.memory_space<vmem>>, %arg3: memref<1x1024xf32, #tpu.memory_space<vmem>>, %arg4: memref<1x1024xf32, #tpu.memory_space<vmem>>, %arg5: memref<1x1xf32, #tpu.memory_space<vmem>>, %arg6: memref<2x1xf32, #tpu.memory_space<vmem>>) attributes {dimension_semantics = [#tpu.dimension_semantics<arbitrary>], iteration_bounds = array<i64: 1>, scalar_prefetch = 0 : i64, scratch_operands = 0 : i64, tpu.core_type = #tpu.core_type<tc>, window_params = [{pipeline_mode = #tpu.pipeline_mode<synchronous>, transform_indices = @transform_0, window_bounds = array<i64: 2, 1, 512>}, {pipeline_mode = #tpu.pipeline_mode<synchronous>, transform_indices = @transform_1, window_bounds = array<i64: 512, 1024>}, {pipeline_mode = #tpu.pipeline_mode<synchronous>, transform_indices = @transform_2, window_bounds = array<i64: 1, 1024>}, {pipeline_mode = #tpu.pipeline_mode<synchronous>, transform_indices = @transform_3, window_bounds = array<i64: 1, 1024>}, {pipeline_mode = #tpu.pipeline_mode<synchronous>, transform_indices = @transform_4, window_bounds = array<i64: 1, 1>}, {pipeline_mode = #tpu.pipeline_mode<synchronous>, transform_indices = @transform_5, window_bounds = array<i64: 2, 1>}]} {
    %c0 = arith.constant 0 : index
    %c0_0 = arith.constant 0 : index
    %c0_1 = arith.constant 0 : index
    %0 = vector.load %arg1[%c0, %c0_0, %c0_1] : memref<2x1x512xbf16, #tpu.memory_space<vmem>>, vector<2x1x512xbf16>
    %1 = arith.extf %0 : vector<2x1x512xbf16> to vector<2x1x512xf32>
    %cst = arith.constant dense<0.000000e+00> : vector<2x512xf32>
    %2 = vector.multi_reduction <add>, %1, %cst [1] : vector<2x1x512xf32> to vector<2x512xf32>
    %cst_2 = arith.constant 1.000000e+00 : f32
    %3 = vector.broadcast %cst_2 : f32 to vector<2x512xf32>
    %4 = arith.divf %2, %3 : vector<2x512xf32>
    %5 = arith.truncf %4 : vector<2x512xf32> to vector<2x512xbf16>
    %c0_3 = arith.constant 0 : index
    %c0_4 = arith.constant 0 : index
    %6 = vector.load %arg2[%c0_3, %c0_4] : memref<512x1024xbf16, #tpu.memory_space<vmem>>, vector<512x1024xbf16>
    %cst_5 = arith.constant dense<0.000000e+00> : vector<2x1024xf32>
    %7 = tpu.matmul %5, %6, %cst_5 {dimension_numbers = #tpu.dot_dimension_numbers<[1], [0], [0], [1], [0, 0, 1, 1], [], []>} : vector<2x512xbf16>, vector<512x1024xbf16>, vector<2x1024xf32> -> vector<2x1024xf32>
    %c0_6 = arith.constant 0 : index
    %c0_7 = arith.constant 0 : index
    %8 = vector.load %arg3[%c0_6, %c0_7] : memref<1x1024xf32, #tpu.memory_space<vmem>>, vector<1x1024xf32>
    %9 = vector.broadcast %8 : vector<1x1024xf32> to vector<2x1024xf32>
    %10 = arith.addf %7, %9 : vector<2x1024xf32>
    %cst_8 = arith.constant 2.000000e-01 : f32
    %11 = vector.broadcast %cst_8 : f32 to vector<2x1024xf32>
    %12 = arith.mulf %11, %10 : vector<2x1024xf32>
    %13 = arith.maximumf %10, %12 : vector<2x1024xf32>
    %c0_9 = arith.constant 0 : index
    %c0_10 = arith.constant 0 : index
    %14 = vector.load %arg4[%c0_9, %c0_10] : memref<1x1024xf32, #tpu.memory_space<vmem>>, vector<1x1024xf32>
    %15 = vector.broadcast %14 : vector<1x1024xf32> to vector<2x1024xf32>
    %16 = arith.mulf %13, %15 : vector<2x1024xf32>
    %cst_11 = arith.constant dense<0.000000e+00> : vector<2xf32>
    %17 = vector.multi_reduction <add>, %16, %cst_11 [1] : vector<2x1024xf32> to vector<2xf32>
    %18 = vector.shape_cast %17 : vector<2xf32> to vector<2x1xf32>
    %c0_12 = arith.constant 0 : index
    %c0_13 = arith.constant 0 : index
    %19 = vector.load %arg5[%c0_12, %c0_13] : memref<1x1xf32, #tpu.memory_space<vmem>>, vector<1x1xf32>
    %20 = vector.broadcast %19 : vector<1x1xf32> to vector<2x1xf32>
    %21 = arith.addf %18, %20 : vector<2x1xf32>
    %22 = math.absf %21 : vector<2x1xf32>
    %cst_14 = arith.constant 0.000000e+00 : f32
    %23 = vector.broadcast %cst_14 : f32 to vector<2x1xf32>
    %24 = arith.subf %23, %22 : vector<2x1xf32>
    %25 = math.exp %24 : vector<2x1xf32>
    %cst_15 = arith.constant 0.000000e+00 : f32
    %26 = vector.broadcast %cst_15 : f32 to vector<2x1xf32>
    %27 = arith.cmpf oge, %21, %26 : vector<2x1xf32>
    %cst_16 = arith.constant 1.000000e+00 : f32
    %28 = vector.broadcast %cst_16 : f32 to vector<2x1xf32>
    %29 = arith.addf %28, %25 : vector<2x1xf32>
    %cst_17 = arith.constant 1.000000e+00 : f32
    %30 = vector.broadcast %cst_17 : f32 to vector<2x1xf32>
    %31 = arith.divf %30, %29 : vector<2x1xf32>
    %cst_18 = arith.constant 1.000000e+00 : f32
    %32 = vector.broadcast %cst_18 : f32 to vector<2x1xf32>
    %33 = arith.addf %32, %25 : vector<2x1xf32>
    %34 = arith.divf %25, %33 : vector<2x1xf32>
    %35 = arith.select %27, %31, %34 : vector<2x1xi1>, vector<2x1xf32>
    %c0_19 = arith.constant 0 : index
    %c0_20 = arith.constant 0 : index
    %36 = vector.load %arg6[%c0_19, %c0_20] : memref<2x1xf32, #tpu.memory_space<vmem>>, vector<2x1xf32>
    tpu.vector_store %arg6[%c0_19, %c0_20], %35 {strides = array<i32>} : memref<2x1xf32, #tpu.memory_space<vmem>>, vector<2x1xf32>,
    return
  }
  func.func @transform_0(%arg0: i32) -> (i32, i32, i32) {
    %c0_i32 = arith.constant 0 : i32
    %c0_i32_0 = arith.constant 0 : i32
    %c0_i32_1 = arith.constant 0 : i32
    %c0_i32_2 = arith.constant 0 : i32
    return %c0_i32, %c0_i32_0, %c0_i32_1 : i32, i32, i32
  }
  func.func @transform_1(%arg0: i32) -> (i32, i32) {
    %c0_i32 = arith.constant 0 : i32
    %c0_i32_0 = arith.constant 0 : i32
    %c0_i32_1 = arith.constant 0 : i32
    return %c0_i32, %c0_i32_0 : i32, i32
  }
  func.func @transform_2(%arg0: i32) -> (i32, i32) {
    %c0_i32 = arith.constant 0 : i32
    %c0_i32_0 = arith.constant 0 : i32
    %c0_i32_1 = arith.constant 0 : i32
    return %c0_i32, %c0_i32_0 : i32, i32
  }
  func.func @transform_3(%arg0: i32) -> (i32, i32) {
    %c0_i32 = arith.constant 0 : i32
    %c0_i32_0 = arith.constant 0 : i32
    %c0_i32_1 = arith.constant 0 : i32
    return %c0_i32, %c0_i32_0 : i32, i32
  }
  func.func @transform_4(%arg0: i32) -> (i32, i32) {
    %c0_i32 = arith.constant 0 : i32
    %c0_i32_0 = arith.constant 0 : i32
    %c0_i32_1 = arith.constant 0 : i32
    return %c0_i32, %c0_i32_0 : i32, i32
  }
  func.func @transform_5(%arg0: i32) -> (i32, i32) {
    %c0_i32 = arith.constant 0 : i32
    %c0_i32_0 = arith.constant 0 : i32
    %c0_i32_1 = arith.constant 0 : i32
    return %c0_i32, %c0_i32_0 : i32, i32
  }
}

</mosaic_0001>

<bundles_post_ra>
// kernel: discriminator_forward.5
= control target key start
LH: loop header
LB: loop body
LE: loop exit
PB: predicated region body
PF: predicated region fallthrough
CT: control target
= control target key end

     0   :  { %vm94_vm0 = vcmask 261120   ;;  %s559_s1 = inlined_call_operand.vmem [shape: bf16[32,128], index: 1, kind: input, shape index: {}]   ;;  %s560_s0 = inlined_call_operand.vmem [shape: bf16[128,32], index: 0, kind: input, shape index: {}]   ;;  %s561_s2 = inlined_call_operand.vmem [shape: f32[1,128], index: 2, kind: input, shape index: {}]   ;;  %s562_s3 = inlined_call_operand.vmem [shape: bf16[128,128], index: 3, kind: output, shape index: {}]  }
   0x1   :  { %v464_v0 = vld [vmem:[%s559_s1] sm:$0xff]   ;;  %v465_v1 = vld [vmem:[%s559_s1 + $0x8] sm:$0xff]   ;;  %v470_v6 = vld [vmem:[%s560_s0 + $0x10] sm:$0xff]  }
   0x2   :  { %440 = vmatprep.subr.bf16.mxu0 %v464_v0  ;;  %460 = vmatprep.subr.bf16.mxu1 %v464_v0  ;;  %v466_v2 = vld [vmem:[%s560_s0] sm:$0xff]   ;;  %v468_v4 = vld [vmem:[%s560_s0 + $0x8] sm:$0xff]   ;;  %v471_v7 = vld [vmem:[%s560_s0 + $0x30] sm:$0xff]  }
   0x3   :  { %441 = vmatpush3.bf16.msra.mxu0 %v464_v0  ;;  %462 = vmatpush3.bf16.msra.mxu1 %v464_v0  ;;  %v467_v3 = vld [vmem:[%s560_s0 + $0x20] sm:$0xff]   ;;  %v469_v5 = vld [vmem:[%s560_s0 + $0x28] sm:$0xff]   ;;  %v472_v8 = vld [vmem:[%s560_s0 + $0x18] sm:$0xff]  }
   0x4   :  { %442 = vmatprep.subr.bf16.mxu0 %v465_v1  ;;  %461 = vmatprep.subr.bf16.mxu1 %v465_v1  ;;  %v473_v9 = vld [vmem:[%s560_s0 + $0x38] sm:$0xff]   ;;  %v332_v10 = vld [vmem:[%s561_s2] ss:$0 sm:$0xff] }
   0x5   :  { %444 = vmatprep.mubr.msk.bf16.mxu0 %vm94_vm0, %v466_v2  ;;  %452 = vmatprep.mubr.msk.bf16.mxu1 %vm94_vm0, %v467_v3 }
   0x7   :  { %443 = vmatpush3.bf16.msra.mxu0 %v465_v1  ;;  %463 = vmatpush3.bf16.msra.mxu1 %v465_v1 }
   0xa   :  { %445 = vmatmul.mubr.msk.bf16.vlgmr.msra.gmra.mrb[0].mxu0 %vm94_vm0, %v468_v4  ;;  %453 = vmatmul.mubr.msk.bf16.vlgmr.msra.gmra.mrb[0].mxu1 %vm94_vm0, %v469_v5 }
   0xb   :  { %448 = vmatprep.mubr.msk.bf16.mxu0 %vm94_vm0, %v470_v6  ;;  %456 = vmatprep.mubr.msk.bf16.mxu1 %vm94_vm0, %v471_v7 }
  0x12   :  { %449 = vmatmul.mubr.msk.bf16.gmra.mrb[4].mxu0 %vm94_vm0, %v472_v8  ;;  %457 = vmatmul.mubr.msk.bf16.gmra.mrb[4].mxu1 %vm94_vm0, %v473_v9 }
  0xdd   :  { %v446_v11 = vpop.f32.mrb[0].mxu0  ;;  %v454_v12 = vpop.f32.mrb[0].mxu1 }
  0xde   :  { %v162_v13 = vadd.f32 %v446_v11, %v332_v10  ;;  %v194_v14 = vadd.f32 %v454_v12, %v332_v10  ;;  %v153_v15 = vpop.f32.mrb[1].mxu0  ;;  %v185_v16 = vpop.f32.mrb[1].mxu1 }
  0xdf   :  { %v154_v17 = vadd.f32 %v332_v10, %v153_v15  ;;  %v186_v18 = vadd.f32 %v332_v10, %v185_v16  ;;  %v447_v19 = vpop.f32.mrb[2].mxu0  ;;  %v455_v20 = vpop.f32.mrb[2].mxu1 }
  0xe0   :  { %v218_v21 = vmul.f32 0.2, %v162_v13  ;;  %v226_v22 = vmul.f32 0.2, %v194_v14  ;;  %v165_v23 = vadd.f32 %v447_v19, %v332_v10  ;;  %v197_v24 = vadd.f32 %v455_v20, %v332_v10  ;;  %v156_v25 = vpop.f32.mrb[3].mxu0  ;;  %v188_v26 = vpop.f32.mrb[3].mxu1 }
  0xe1   :  { %v216_v27 = vmul.f32 0.2, %v154_v17  ;;  %v224_v28 = vmul.f32 0.2, %v186_v18  ;;  %v157_v29 = vadd.f32 %v332_v10, %v156_v25  ;;  %v189_v30 = vadd.f32 %v332_v10, %v188_v26 }
  0xe2   :  { %v219_v31 = vmul.f32 0.2, %v165_v23  ;;  %v227_v32 = vmul.f32 0.2, %v197_v24  ;;  %v234_v35 = vmax.f32 %v162_v13, %v218_v21  ;;  %v242_v36 = vmax.f32 %v194_v14, %v226_v22 }
  0xe3   :  { %v217_v33 = vmul.f32 0.2, %v157_v29  ;;  %v225_v34 = vmul.f32 0.2, %v189_v30  ;;  %v232_v39 = vmax.f32 %v154_v17, %v216_v27  ;;  %v240_v40 = vmax.f32 %v186_v18, %v224_v28 }
  0xe4   :  { %v235_v37 = vmax.f32 %v165_v23, %v219_v31  ;;  %v243_v38 = vmax.f32 %v197_v24, %v227_v32 }
  0xe5   :  { %v233_v41 = vmax.f32 %v157_v29, %v217_v33  ;;  %v241_v42 = vmax.f32 %v189_v30, %v225_v34  ;;  %v450_v43 = vpop.f32.mrb[4].mxu0  ;;  %v458_v44 = vpop.f32.mrb[4].mxu1 }
  0xe6   :  { %v391_v45 = vpack.c.bf16 %v235_v37, %v234_v35  ;;  %v411_v46 = vpack.c.bf16 %v243_v38, %v242_v36  ;;  %v178_v47 = vadd.f32 %v450_v43, %v332_v10  ;;  %v210_v48 = vadd.f32 %v458_v44, %v332_v10  ;;  %v169_v49 = vpop.f32.mrb[5].mxu0  ;;  %v201_v50 = vpop.f32.mrb[5].mxu1 }
  0xe7   :  { %v386_v51 = vpack.c.bf16 %v233_v41, %v232_v39  ;;  %v406_v52 = vpack.c.bf16 %v241_v42, %v240_v40  ;;  %v170_v53 = vadd.f32 %v332_v10, %v169_v49  ;;  %v202_v54 = vadd.f32 %v332_v10, %v201_v50  ;;  %v451_v55 = vpop.f32.mrb[6].mxu0  ;;  %v459_v56 = vpop.f32.mrb[6].mxu1 }
  0xe8   :  { %423 = vst [vmem:[%s562_s3 + $0x8] sm:$0xff] %v391_v45   ;;  %427 = vst [vmem:[%s562_s3 + $0x28] sm:$0xff] %v411_v46   ;;  %v222_v57 = vmul.f32 0.2, %v178_v47  ;;  %v230_v58 = vmul.f32 0.2, %v210_v48  ;;  %v181_v59 = vadd.f32 %v451_v55, %v332_v10  ;;  %v213_v60 = vadd.f32 %v459_v56, %v332_v10 }
  0xe9   :  { %v172_v61 = vpop.f32.mrb[7].mxu0  ;;  %v204_v62 = vpop.f32.mrb[7].mxu1  ;;  %387 = vst [vmem:[%s562_s3] sm:$0xff] %v386_v51   ;;  %426 = vst [vmem:[%s562_s3 + $0x20] sm:$0xff] %v406_v52   ;;  %v220_v63 = vmul.f32 0.2, %v170_v53 }
  0xea   :  { %v228_v0 = vmul.f32 0.2, %v202_v54  ;;  %v173_v1 = vadd.f32 %v332_v10, %v172_v61  ;;  %v205_v2 = vadd.f32 %v332_v10, %v204_v62  ;;  %v223_v3 = vmul.f32 0.2, %v181_v59 }
  0xeb   :  { %v231_v4 = vmul.f32 0.2, %v213_v60  ;;  %v238_v7 = vmax.f32 %v178_v47, %v222_v57  ;;  %v246_v8 = vmax.f32 %v210_v48, %v230_v58  ;;  %v236_v12 = vmax.f32 %v170_v53, %v220_v63 }
  0xec   :  { %v221_v5 = vmul.f32 0.2, %v173_v1  ;;  %v229_v6 = vmul.f32 0.2, %v205_v2  ;;  %v239_v9 = vmax.f32 %v181_v59, %v223_v3  ;;  %v244_v13 = vmax.f32 %v202_v54, %v228_v0 }
  0xed   :  { %v247_v11 = vmax.f32 %v213_v60, %v231_v4 }
  0xee   :  { %v237_v14 = vmax.f32 %v173_v1, %v221_v5  ;;  %v245_v15 = vmax.f32 %v205_v2, %v229_v6  ;;  %v401_v16 = vpack.c.bf16 %v239_v9, %v238_v7 }
  0xef   :  { %v421_v17 = vpack.c.bf16 %v247_v11, %v246_v8 }
  0xf0   :  { %v396_v18 = vpack.c.bf16 %v237_v14, %v236_v12  ;;  %v416_v19 = vpack.c.bf16 %v245_v15, %v244_v13  ;;  %425 = vst [vmem:[%s562_s3 + $0x18] sm:$0xff] %v401_v16  }
  0xf1   :  { %429 = vst [vmem:[%s562_s3 + $0x38] sm:$0xff] %v421_v17  }
  0xf2   :  { %424 = vst [vmem:[%s562_s3 + $0x10] sm:$0xff] %v396_v18   ;;  %428 = vst [vmem:[%s562_s3 + $0x30] sm:$0xff] %v416_v19  }

// kernel: discriminator_forward.6
= control target key start
LH: loop header
LB: loop body
LE: loop exit
PB: predicated region body
PF: predicated region fallthrough
CT: control target
= control target key end

     0   :  { %s1636_s1 = inlined_call_operand.vmem [shape: bf16[1152,128], index: 1, kind: input, shape index: {}]   ;;  %s1637_s0 = inlined_call_operand.vmem [shape: bf16[32,1152], index: 0, kind: input, shape index: {}]   ;;  %s1638_s2 = inlined_call_operand.vmem [shape: f32[1,128], index: 2, kind: input, shape index: {}]   ;;  %s1639_s3 = inlined_call_operand.vmem [shape: bf16[32,128], index: 3, kind: output, shape index: {}]  }
   0x1   :  { %v1239_v0 = vld [vmem:[%s1636_s1 + $0x40] sm:$0xff]   ;;  %v1243_v4 = vld [vmem:[%s1636_s1 + $0x48] sm:$0xff]   ;;  %v1247_v8 = vld [vmem:[%s1636_s1 + $0x50] sm:$0xff]  }
   0x2   :  { %v1240_v1 = vld [vmem:[%s1636_s1] sm:$0xff]   ;;  %1097 = vmatprep.subr.bf16.mxu0 %v1239_v0  ;;  %v1244_v5 = vld [vmem:[%s1636_s1 + $0x8] sm:$0xff]   ;;  %v1248_v9 = vld [vmem:[%s1636_s1 + $0x10] sm:$0xff]  }
   0x3   :  { %v1241_v2 = vld [vmem:[%s1636_s1 + $0xc0] sm:$0xff]   ;;  %1098 = vmatpush3.bf16.msra.mxu0 %v1240_v1  ;;  %v1245_v6 = vld [vmem:[%s1636_s1 + $0xc8] sm:$0xff]   ;;  %v1249_v10 = vld [vmem:[%s1636_s1 + $0xd0] sm:$0xff]  }
   0x4   :  { %v1242_v3 = vld [vmem:[%s1636_s1 + $0x80] sm:$0xff]   ;;  %1125 = vmatprep.subr.bf16.mxu1 %v1241_v2  ;;  %1099 = vmatprep.subr.bf16.mxu0 %v1243_v4  ;;  %v1246_v7 = vld [vmem:[%s1636_s1 + $0x88] sm:$0xff]   ;;  %v1250_v11 = vld [vmem:[%s1636_s1 + $0x90] sm:$0xff]  }
   0x5   :  { %1126 = vmatpush3.bf16.msra.mxu1 %v1242_v3  ;;  %v1251_v12 = vld [vmem:[%s1636_s1 + $0x58] sm:$0xff]   ;;  %v1255_v16 = vld [vmem:[%s1636_s1 + $0x60] sm:$0xff]   ;;  %v1259_v20 = vld [vmem:[%s1636_s1 + $0x68] sm:$0xff]  }
   0x6   :  { %1127 = vmatprep.subr.bf16.mxu1 %v1245_v6  ;;  %v1252_v13 = vld [vmem:[%s1636_s1 + $0x18] sm:$0xff]   ;;  %v1256_v17 = vld [vmem:[%s1636_s1 + $0x20] sm:$0xff]   ;;  %v1260_v21 = vld [vmem:[%s1636_s1 + $0x28] sm:$0xff]  }
   0x7   :  { %1100 = vmatpush3.bf16.msra.mxu0 %v1244_v5  ;;  %v1253_v14 = vld [vmem:[%s1636_s1 + $0xd8] sm:$0xff]   ;;  %v1257_v18 = vld [vmem:[%s1636_s1 + $0xe0] sm:$0xff]   ;;  %v1261_v22 = vld [vmem:[%s1636_s1 + $0xe8] sm:$0xff]  }
   0x8   :  { %1101 = vmatprep.subr.bf16.mxu0 %v1247_v8  ;;  %v1254_v15 = vld [vmem:[%s1636_s1 + $0x98] sm:$0xff]   ;;  %v1258_v19 = vld [vmem:[%s1636_s1 + $0xa0] sm:$0xff]   ;;  %v1262_v23 = vld [vmem:[%s1636_s1 + $0xa8] sm:$0xff]  }
   0x9   :  { %1128 = vmatpush3.bf16.msra.mxu1 %v1246_v7  ;;  %v1263_v24 = vld [vmem:[%s1636_s1 + $0x70] sm:$0xff]   ;;  %v1267_v28 = vld [vmem:[%s1636_s1 + $0x78] sm:$0xff]   ;;  %v1270_v31 = vld [vmem:[%s1637_s0] ss:$36 sps:$4 sm:$0xff]  }
   0xa   :  { %1129 = vmatprep.subr.bf16.mxu1 %v1249_v10  ;;  %v1264_v25 = vld [vmem:[%s1636_s1 + $0x30] sm:$0xff]   ;;  %v1268_v29 = vld [vmem:[%s1636_s1 + $0x38] sm:$0xff]   ;;  %v1272_v32 = vld [vmem:[%s1637_s0 + $0x4] ss:$36 sps:$4 sm:$0xff]  }
   0xb   :  { %1102 = vmatpush3.bf16.msra.mxu0 %v1248_v9  ;;  %v1265_v26 = vld [vmem:[%s1636_s1 + $0xf0] sm:$0xff]   ;;  %v1269_v30 = vld [vmem:[%s1636_s1 + $0xf8] sm:$0xff]   ;;  %742 = vmatprep.mubr.bf16.mxu0 %v1272_v32  ;;  %v1274_v34 = vld [vmem:[%s1636_s1 + $0x140] sm:$0xff]  }
   0xc   :  { %1103 = vmatprep.subr.bf16.mxu0 %v1251_v12  ;;  %v1266_v27 = vld [vmem:[%s1636_s1 + $0xb0] sm:$0xff]   ;;  %v1273_v33 = vld [vmem:[%s1636_s1 + $0xb8] sm:$0xff]   ;;  %v1275_v35 = vld [vmem:[%s1637_s0 + $0x8] ss:$36 sps:$4 sm:$0xff]  }
   0xd   :  { %1130 = vmatpush3.bf16.msra.mxu1 %v1250_v11  ;;  %v1277_v36 = vld [vmem:[%s1637_s0 + $0xc] ss:$36 sps:$4 sm:$0xff]   ;;  %v1278_v37 = vld [vmem:[%s1636_s1 + $0x100] sm:$0xff]   ;;  %v1289_v48 = vld [vmem:[%s1636_s1 + $0x158] sm:$0xff]  }
   0xe   :  { %1131 = vmatprep.subr.bf16.mxu1 %v1253_v14  ;;  %791 = vmatprep.mubr.bf16.mxu1 %v1277_v36  ;;  %v1279_v38 = vld [vmem:[%s1636_s1 + $0x1c0] sm:$0xff]   ;;  %v1281_v40 = vld [vmem:[%s1636_s1 + $0x148] sm:$0xff]   ;;  %v1285_v44 = vld [vmem:[%s1636_s1 + $0x150] sm:$0xff]  }
   0xf   :  { %1104 = vmatpush3.bf16.msra.mxu0 %v1252_v13  ;;  %v1280_v39 = vld [vmem:[%s1636_s1 + $0x180] sm:$0xff]   ;;  %v1282_v41 = vld [vmem:[%s1636_s1 + $0x108] sm:$0xff]   ;;  %v1286_v45 = vld [vmem:[%s1636_s1 + $0x110] sm:$0xff]  }
  0x10   :  { %1105 = vmatprep.subr.bf16.mxu0 %v1255_v16  ;;  %v1283_v42 = vld [vmem:[%s1636_s1 + $0x1c8] sm:$0xff]   ;;  %v1287_v46 = vld [vmem:[%s1636_s1 + $0x1d0] sm:$0xff]   ;;  %v1290_v49 = vld [vmem:[%s1636_s1 + $0x118] sm:$0xff]  }
  0x11   :  { %1132 = vmatpush3.bf16.msra.mxu1 %v1254_v15  ;;  %v1284_v43 = vld [vmem:[%s1636_s1 + $0x188] sm:$0xff]   ;;  %v1288_v47 = vld [vmem:[%s1636_s1 + $0x190] sm:$0xff]   ;;  %v1291_v50 = vld [vmem:[%s1636_s1 + $0x1d8] sm:$0xff]  }
  0x12   :  { %1133 = vmatprep.subr.bf16.mxu1 %v1257_v18  ;;  %v1292_v51 = vld [vmem:[%s1636_s1 + $0x198] sm:$0xff]   ;;  %v1293_v52 = vld [vmem:[%s1636_s1 + $0x160] sm:$0xff]   ;;  %v1297_v56 = vld [vmem:[%s1636_s1 + $0x168] sm:$0xff]  }
  0x13   :  { %1106 = vmatpush3.bf16.msra.mxu0 %v1256_v17  ;;  %v1294_v53 = vld [vmem:[%s1636_s1 + $0x120] sm:$0xff]   ;;  %v1298_v57 = vld [vmem:[%s1637_s0 + $0x4c] ss:$36 sps:$4 sm:$0xff]   ;;  %v1303_v61 = vld [vmem:[%s1637_s0 + $0x54] ss:$36 sps:$4 sm:$0xff]  }
  0x14   :  { %1107 = vmatprep.subr.bf16.mxu0 %v1259_v20  ;;  %v1295_v54 = vld [vmem:[%s1636_s1 + $0x1e0] sm:$0xff]   ;;  %v1300_v58 = vld [vmem:[%s1636_s1 + $0x128] sm:$0xff]   ;;  %v1306_v63 = vld [vmem:[%s1637_s0 + $0x50] ss:$36 sps:$4 sm:$0xff]  }
  0x15   :  { %1134 = vmatpush3.bf16.msra.mxu1 %v1258_v19  ;;  %v1296_v55 = vld [vmem:[%s1636_s1 + $0x1a0] sm:$0xff]   ;;  %v1301_v59 = vld [vmem:[%s1637_s0 + $0x48] ss:$36 sps:$4 sm:$0xff]   ;;  %v1307_v0 = vld [vmem:[%s1636_s1 + $0x170] sm:$0xff]  }
  0x16   :  { %1135 = vmatprep.subr.bf16.mxu1 %v1261_v22  ;;  %v1302_v60 = vld [vmem:[%s1636_s1 + $0x1e8] sm:$0xff]   ;;  %v1308_v1 = vld [vmem:[%s1636_s1 + $0x130] sm:$0xff]   ;;  %v1311_v4 = vld [vmem:[%s1636_s1 + $0x178] sm:$0xff]  }
  0x17   :  { %1108 = vmatpush3.bf16.msra.mxu0 %v1260_v21  ;;  %v1305_v62 = vld [vmem:[%s1636_s1 + $0x1a8] sm:$0xff]   ;;  %v1309_v2 = vld [vmem:[%s1636_s1 + $0x1f0] sm:$0xff]   ;;  %v1312_v5 = vld [vmem:[%s1636_s1 + $0x138] sm:$0xff]  }
  0x18   :  { %1109 = vmatprep.subr.bf16.mxu0 %v1263_v24  ;;  %v1310_v3 = vld [vmem:[%s1636_s1 + $0x1b0] sm:$0xff]   ;;  %v1313_v6 = vld [vmem:[%s1636_s1 + $0x1f8] sm:$0xff]   ;;  %v1318_v10 = vld [vmem:[%s1636_s1 + $0x200] sm:$0xff]  }
  0x19   :  { %1136 = vmatpush3.bf16.msra.mxu1 %v1262_v23  ;;  %v1314_v7 = vld [vmem:[%s1637_s0 + $0x10] ss:$36 sps:$4 sm:$0xff]   ;;  %v1317_v9 = vld [vmem:[%s1636_s1 + $0x1b8] sm:$0xff]   ;;  %v1322_v13 = vld [vmem:[%s1636_s1 + $0x208] sm:$0xff]  }
  0x1a   :  { %1137 = vmatprep.subr.bf16.mxu1 %v1265_v26  ;;  %v1316_v8 = vld [vmem:[%s1637_s0 + $0x14] ss:$36 sps:$4 sm:$0xff]   ;;  %v1321_v12 = vld [vmem:[%s1637_s0 + $0x1c] ss:$36 sps:$4 sm:$0xff]   ;;  %v1327_v17 = vld [vmem:[%s1637_s0 + $0x64] ss:$36 sps:$4 sm:$0xff]  }
  0x1b   :  { %1110 = vmatpush3.bf16.msra.mxu0 %v1264_v25  ;;  %v1319_v11 = vld [vmem:[%s1637_s0 + $0x18] ss:$36 sps:$4 sm:$0xff]   ;;  %v1326_v16 = vld [vmem:[%s1636_s1 + $0x210] sm:$0xff]   ;;  %v1329_v18 = vld [vmem:[%s1637_s0 + $0x60] ss:$36 sps:$4 sm:$0xff]  }
  0x1c   :  { %1111 = vmatprep.subr.bf16.mxu0 %v1267_v28  ;;  %v1323_v14 = vld [vmem:[%s1637_s0 + $0x5c] ss:$36 sps:$4 sm:$0xff]   ;;  %v1332_v22 = vld [vmem:[%s1636_s1 + $0x228] sm:$0xff]   ;;  %v1333_v23 = vld [vmem:[%s1636_s1 + $0x230] sm:$0xff]  }
  0x1d   :  { %1138 = vmatpush3.bf16.msra.mxu1 %v1266_v27  ;;  %v1325_v15 = vld [vmem:[%s1637_s0 + $0x58] ss:$36 sps:$4 sm:$0xff]   ;;  %v1331_v20 = vld [vmem:[%s1636_s1 + $0x220] sm:$0xff]   ;;  %v1336_v25 = vld [vmem:[%s1637_s0 + $0x68] ss:$36 sps:$4 sm:$0xff]  }
  0x1e   :  { %1139 = vmatprep.subr.bf16.mxu1 %v1269_v30  ;;  %v1330_v19 = vld [vmem:[%s1636_s1 + $0x218] sm:$0xff]   ;;  %v1335_v21 = vld [vmem:[%s1637_s0 + $0x20] ss:$36 sps:$4 sm:$0xff]  }
  0x1f   :  { %1112 = vmatpush3.bf16.msra.mxu0 %v1268_v29  ;;  %v1334_v24 = vld [vmem:[%s1636_s1 + $0x238] sm:$0xff]   ;;  %v987_v27 = vld [vmem:[%s1638_s2] ss:$0 sm:$0xff] }
  0x20   :  { %1153 = vmatprep.subr.bf16.mxu0 %v1274_v34 }
  0x21   :  { %1140 = vmatpush3.bf16.msra.mxu1 %v1273_v33 }
  0x22   :  { %743 = vmatmul.mubr.bf16.vlgmr.msra.gmra.mrb[0].mxu0 %v1270_v31  ;;  %1181 = vmatprep.subr.bf16.mxu1 %v1279_v38 }
  0x23   :  { %1154 = vmatpush3.bf16.msra.mxu0 %v1278_v37  ;;  %750 = vmatprep.mubr.bf16.mxu0 %v1298_v57 }
  0x24   :  { %792 = vmatmul.mubr.bf16.vlgmr.msra.gmra.mrb[0].mxu1 %v1275_v35  ;;  %1155 = vmatprep.subr.bf16.mxu0 %v1281_v40 }
  0x25   :  { %1182 = vmatpush3.bf16.msra.mxu1 %v1280_v39  ;;  %799 = vmatprep.mubr.bf16.mxu1 %v1303_v61 }
  0x26   :  { %1183 = vmatprep.subr.bf16.mxu1 %v1283_v42 }
  0x27   :  { %1156 = vmatpush3.bf16.msra.mxu0 %v1282_v41 }
  0x28   :  { %1157 = vmatprep.subr.bf16.mxu0 %v1285_v44 }
  0x29   :  { %1184 = vmatpush3.bf16.msra.mxu1 %v1284_v43 }
  0x2a   :  { %1185 = vmatprep.subr.bf16.mxu1 %v1287_v46  ;;  %751 = vmatmul.mubr.bf16.gmra.mrb[4].mxu0 %v1301_v59 }
  0x2b   :  { %1158 = vmatpush3.bf16.msra.mxu0 %v1286_v45  ;;  %840 = vmatprep.mubr.bf16.mxu0 %v1316_v8 }
  0x2c   :  { %1159 = vmatprep.subr.bf16.mxu0 %v1289_v48  ;;  %800 = vmatmul.mubr.bf16.gmra.mrb[4].mxu1 %v1306_v63 }
  0x2d   :  { %1186 = vmatpush3.bf16.msra.mxu1 %v1288_v47  ;;  %889 = vmatprep.mubr.bf16.mxu1 %v1321_v12 }
  0x2e   :  { %1187 = vmatprep.subr.bf16.mxu1 %v1291_v50 }
  0x2f   :  { %1160 = vmatpush3.bf16.msra.mxu0 %v1290_v49 }
  0x30   :  { %1161 = vmatprep.subr.bf16.mxu0 %v1293_v52 }
  0x31   :  { %1188 = vmatpush3.bf16.msra.mxu1 %v1292_v51 }
  0x32   :  { %1189 = vmatprep.subr.bf16.mxu1 %v1295_v54 }
  0x33   :  { %1162 = vmatpush3.bf16.msra.mxu0 %v1294_v53 }
  0x34   :  { %1163 = vmatprep.subr.bf16.mxu0 %v1297_v56 }
  0x35   :  { %1190 = vmatpush3.bf16.msra.mxu1 %v1296_v55 }
  0x36   :  { %1191 = vmatprep.subr.bf16.mxu1 %v1302_v60 }
  0x37   :  { %1164 = vmatpush3.bf16.msra.mxu0 %v1300_v58 }
  0x38   :  { %1165 = vmatprep.subr.bf16.mxu0 %v1307_v0 }
  0x39   :  { %1192 = vmatpush3.bf16.msra.mxu1 %v1305_v62 }
  0x3a   :  { %1193 = vmatprep.subr.bf16.mxu1 %v1309_v2 }
  0x3b   :  { %1166 = vmatpush3.bf16.msra.mxu0 %v1308_v1 }
  0x3c   :  { %1167 = vmatprep.subr.bf16.mxu0 %v1311_v4 }
  0x3d   :  { %1194 = vmatpush3.bf16.msra.mxu1 %v1310_v3 }
  0x3e   :  { %1195 = vmatprep.subr.bf16.mxu1 %v1313_v6 }
  0x3f   :  { %1168 = vmatpush3.bf16.msra.mxu0 %v1312_v5 }
  0x40   :  { %1219 = vmatprep.subr.bf16.mxu0 %v1318_v10 }
  0x41   :  { %1196 = vmatpush3.bf16.msra.mxu1 %v1317_v9 }
  0x42   :  { %841 = vmatmul.mubr.bf16.vlgmr.msra.gmra.mrb[8].mxu0 %v1314_v7 }
  0x43   :  { %1220 = vmatpush3.bf16.msra.mxu0 %v1318_v10  ;;  %848 = vmatprep.mubr.bf16.mxu0 %v1323_v14 }
  0x44   :  { %890 = vmatmul.mubr.bf16.vlgmr.msra.gmra.mrb[8].mxu1 %v1319_v11  ;;  %1221 = vmatprep.subr.bf16.mxu0 %v1322_v13 }
  0x45   :  { %897 = vmatprep.mubr.bf16.mxu1 %v1327_v17 }
  0x47   :  { %1222 = vmatpush3.bf16.msra.mxu0 %v1322_v13 }
  0x48   :  { %1223 = vmatprep.subr.bf16.mxu0 %v1326_v16 }
  0x4a   :  { %849 = vmatmul.mubr.bf16.gmra.mrb[12].mxu0 %v1325_v15 }
  0x4b   :  { %1224 = vmatpush3.bf16.msra.mxu0 %v1326_v16  ;;  %1235 = vmatprep.mubr.bf16.mxu0 %v1335_v21 }
  0x4c   :  { %898 = vmatmul.mubr.bf16.gmra.mrb[12].mxu1 %v1329_v18  ;;  %1225 = vmatprep.subr.bf16.mxu0 %v1330_v19 }
  0x4f   :  { %1226 = vmatpush3.bf16.msra.mxu0 %v1330_v19 }
  0x50   :  { %1227 = vmatprep.subr.bf16.mxu0 %v1331_v20 }
  0x53   :  { %1228 = vmatpush3.bf16.msra.mxu0 %v1331_v20 }
  0x54   :  { %1229 = vmatprep.subr.bf16.mxu0 %v1332_v22 }
  0x57   :  { %1230 = vmatpush3.bf16.msra.mxu0 %v1332_v22 }
  0x58   :  { %1231 = vmatprep.subr.bf16.mxu0 %v1333_v23 }
  0x5b   :  { %1232 = vmatpush3.bf16.msra.mxu0 %v1333_v23 }
  0x5c   :  { %1233 = vmatprep.subr.bf16.mxu0 %v1334_v24 }
  0x5f   :  { %1234 = vmatpush3.bf16.msra.mxu0 %v1334_v24 }
  0x62   :  { %1236 = vmatmul.mubr.bf16.vlgmr.msra.gmra.mrb[16].mxu0 %v1336_v25 }
  0xf5   :  { %v1113_v26 = vpop.f32.mrb[0].mxu0 }
  0xf6   :  { %v1114_v28 = vpop.f32.mrb[1].mxu0 }
  0xf7   :  { %v1115_v29 = vadd.f32 %v1114_v28, %v1113_v26  ;;  %v1116_v30 = vpop.f32.mrb[2].mxu0  ;;  %v1141_v31 = vpop.f32.mrb[0].mxu1 }
  0xf8   :  { %v1117_v32 = vpop.f32.mrb[3].mxu0  ;;  %v1142_v35 = vpop.f32.mrb[1].mxu1 }
  0xf9   :  { %v745_v33 = vadd.f32 %v1115_v29, %v987_v27  ;;  %v1118_v34 = vadd.f32 %v1117_v32, %v1116_v30  ;;  %v1143_v36 = vadd.f32 %v1142_v35, %v1141_v31  ;;  %v1144_v37 = vpop.f32.mrb[2].mxu1 }
  0xfa   :  { %v1145_v39 = vpop.f32.mrb[3].mxu1 }
  0xfb   :  { %v748_v38 = vadd.f32 %v1118_v34, %v987_v27  ;;  %v794_v40 = vadd.f32 %v1143_v36, %v745_v33  ;;  %v1146_v41 = vadd.f32 %v1145_v39, %v1144_v37 }
  0xfd   :  { %v797_v42 = vadd.f32 %v1146_v41, %v748_v38  ;;  %v1119_v43 = vpop.f32.mrb[4].mxu0 }
  0xfe   :  { %v1120_v44 = vpop.f32.mrb[5].mxu0 }
  0xff   :  { %v1121_v45 = vadd.f32 %v1120_v44, %v1119_v43  ;;  %v1122_v46 = vpop.f32.mrb[6].mxu0  ;;  %v1147_v47 = vpop.f32.mrb[4].mxu1 }
 0x100   :  { %v1123_v48 = vpop.f32.mrb[7].mxu0  ;;  %v1148_v51 = vpop.f32.mrb[5].mxu1 }
 0x101   :  { %v753_v49 = vadd.f32 %v1121_v45, %v987_v27  ;;  %v1124_v50 = vadd.f32 %v1123_v48, %v1122_v46  ;;  %v1149_v52 = vadd.f32 %v1148_v51, %v1147_v47  ;;  %v1150_v53 = vpop.f32.mrb[6].mxu1 }
 0x102   :  { %v1151_v55 = vpop.f32.mrb[7].mxu1 }
 0x103   :  { %v756_v54 = vadd.f32 %v1124_v50, %v987_v27  ;;  %v802_v56 = vadd.f32 %v1149_v52, %v753_v49  ;;  %v1152_v57 = vadd.f32 %v1151_v55, %v1150_v53 }
 0x105   :  { %v805_v58 = vadd.f32 %v1152_v57, %v756_v54 }
 0x115   :  { %v1169_v59 = vpop.f32.mrb[8].mxu0 }
 0x116   :  { %v1170_v60 = vpop.f32.mrb[9].mxu0 }
 0x117   :  { %v1171_v61 = vadd.f32 %v1170_v60, %v1169_v59  ;;  %v1172_v62 = vpop.f32.mrb[10].mxu0  ;;  %v1197_v63 = vpop.f32.mrb[8].mxu1 }
 0x118   :  { %v1173_v0 = vpop.f32.mrb[11].mxu0  ;;  %v1198_v3 = vpop.f32.mrb[9].mxu1 }
 0x119   :  { %v843_v1 = vadd.f32 %v1171_v61, %v794_v40  ;;  %v1174_v2 = vadd.f32 %v1173_v0, %v1172_v62  ;;  %v1199_v4 = vadd.f32 %v1198_v3, %v1197_v63  ;;  %v1200_v5 = vpop.f32.mrb[10].mxu1 }
 0x11a   :  { %v1201_v7 = vpop.f32.mrb[11].mxu1 }
 0x11b   :  { %v846_v6 = vadd.f32 %v1174_v2, %v797_v42  ;;  %v1202_v8 = vadd.f32 %v1201_v7, %v1200_v5  ;;  %v892_v9 = vadd.f32 %v1199_v4, %v843_v1 }
 0x11d   :  { %v1175_v10 = vpop.f32.mrb[12].mxu0  ;;  %v895_v12 = vadd.f32 %v1202_v8, %v846_v6 }
 0x11e   :  { %v1176_v11 = vpop.f32.mrb[13].mxu0 }
 0x11f   :  { %v1177_v13 = vadd.f32 %v1176_v11, %v1175_v10  ;;  %v1178_v14 = vpop.f32.mrb[14].mxu0  ;;  %v1203_v15 = vpop.f32.mrb[12].mxu1 }
 0x120   :  { %v1179_v16 = vpop.f32.mrb[15].mxu0  ;;  %v1204_v19 = vpop.f32.mrb[13].mxu1 }
 0x121   :  { %v851_v17 = vadd.f32 %v1177_v13, %v802_v56  ;;  %v1180_v18 = vadd.f32 %v1179_v16, %v1178_v14  ;;  %v1205_v20 = vadd.f32 %v1204_v19, %v1203_v15  ;;  %v1206_v21 = vpop.f32.mrb[14].mxu1 }
 0x122   :  { %v1207_v23 = vpop.f32.mrb[15].mxu1 }
 0x123   :  { %v854_v22 = vadd.f32 %v1180_v18, %v805_v58  ;;  %v1208_v24 = vadd.f32 %v1207_v23, %v1206_v21  ;;  %v900_v25 = vadd.f32 %v1205_v20, %v851_v17 }
 0x125   :  { %v903_v26 = vadd.f32 %v1208_v24, %v854_v22 }
 0x135   :  { %v1237_v27 = vpop.f32.mrb[16].mxu0 }
 0x136   :  { %v949_v28 = vadd.f32 %v1237_v27, %v900_v25  ;;  %v940_v29 = vpop.f32.mrb[17].mxu0 }
 0x137   :  { %v941_v30 = vadd.f32 %v940_v29, %v892_v9  ;;  %v1238_v31 = vpop.f32.mrb[18].mxu0 }
 0x138   :  { %v957_v32 = vmul.f32 0.2, %v949_v28  ;;  %v952_v33 = vadd.f32 %v1238_v31, %v903_v26  ;;  %v943_v34 = vpop.f32.mrb[19].mxu0 }
 0x139   :  { %v955_v35 = vmul.f32 0.2, %v941_v30  ;;  %v944_v36 = vadd.f32 %v943_v34, %v895_v12 }
 0x13a   :  { %v958_v37 = vmul.f32 0.2, %v952_v33  ;;  %v961_v39 = vmax.f32 %v949_v28, %v957_v32 }
 0x13b   :  { %v956_v38 = vmul.f32 0.2, %v944_v36  ;;  %v959_v41 = vmax.f32 %v941_v30, %v955_v35 }
 0x13c   :  { %v962_v40 = vmax.f32 %v952_v33, %v958_v37 }
 0x13d   :  { %v960_v42 = vmax.f32 %v944_v36, %v956_v38 }
 0x13e   :  { %v1094_v43 = vpack.c.bf16 %v962_v40, %v961_v39 }
 0x13f   :  { %v1089_v44 = vpack.c.bf16 %v960_v42, %v959_v41 }
 0x140   :  { %1096 = vst [vmem:[%s1639_s3 + $0x8] sm:$0xff] %v1094_v43  }
 0x141   :  { %1090 = vst [vmem:[%s1639_s3] sm:$0xff] %v1089_v44  }

// kernel: discriminator_forward.7
= control target key start
LH: loop header
LB: loop body
LE: loop exit
PB: predicated region body
PF: predicated region fallthrough
CT: control target
= control target key end

     0   :  { %s2084_s1 = inlined_call_operand.vmem [shape: bf16[1152,256], index: 1, kind: input, shape index: {}]   ;;  %s2085_s0 = inlined_call_operand.vmem [shape: bf16[16,1152], index: 0, kind: input, shape index: {}]   ;;  %s2086_s2 = inlined_call_operand.vmem [shape: f32[1,256], index: 2, kind: input, shape index: {}]   ;;  %s2087_s3 = inlined_call_operand.vmem [shape: bf16[16,256], index: 3, kind: output, shape index: {}]  }
   0x1   :  { %v1366_v0 = vld [vmem:[%s2084_s1 + $0x4] ss:$8 sps:$4 sm:$0xff]   ;;  %v1370_v2 = vld [vmem:[%s2084_s1] ss:$8 sps:$4 sm:$0xff]   ;;  %v1372_v4 = vld [vmem:[%s2084_s1 + $0x14] ss:$8 sps:$4 sm:$0xff]  }
   0x2   :  { %v1368_v1 = vld [vmem:[%s2084_s1 + $0x204] ss:$8 sps:$4 sm:$0xff]   ;;  %947 = vmatprep.subr.bf16.mxu1 %v1366_v0  ;;  %v1371_v3 = vld [vmem:[%s2084_s1 + $0x200] ss:$8 sps:$4 sm:$0xff]   ;;  %v1374_v5 = vld [vmem:[%s2084_s1 + $0x214] ss:$8 sps:$4 sm:$0xff]  }
   0x3   :  { %1033 = vmatprep.subr.bf16.mxu0 %v1368_v1  ;;  %948 = vmatpush1.bf16.msra.mxu1 %v1370_v2  ;;  %v1376_v6 = vld [vmem:[%s2084_s1 + $0x10] ss:$8 sps:$4 sm:$0xff]   ;;  %v1378_v8 = vld [vmem:[%s2084_s1 + $0x24] ss:$8 sps:$4 sm:$0xff]   ;;  %v1382_v10 = vld [vmem:[%s2084_s1 + $0x20] ss:$8 sps:$4 sm:$0xff]  }
   0x4   :  { %1034 = vmatpush1.bf16.msra.mxu0 %v1371_v3  ;;  %949 = vmatprep.subr.bf16.mxu1 %v1372_v4  ;;  %v1377_v7 = vld [vmem:[%s2084_s1 + $0x210] ss:$8 sps:$4 sm:$0xff]   ;;  %v1380_v9 = vld [vmem:[%s2084_s1 + $0x224] ss:$8 sps:$4 sm:$0xff]   ;;  %v1383_v11 = vld [vmem:[%s2084_s1 + $0x220] ss:$8 sps:$4 sm:$0xff]  }
   0x5   :  { %1035 = vmatprep.subr.bf16.mxu0 %v1374_v5  ;;  %v1384_v12 = vld [vmem:[%s2084_s1 + $0x34] ss:$8 sps:$4 sm:$0xff]   ;;  %v1388_v14 = vld [vmem:[%s2084_s1 + $0x30] ss:$8 sps:$4 sm:$0xff]   ;;  %v1390_v16 = vld [vmem:[%s2084_s1 + $0x44] ss:$8 sps:$4 sm:$0xff]  }
   0x6   :  { %v1386_v13 = vld [vmem:[%s2084_s1 + $0x234] ss:$8 sps:$4 sm:$0xff]   ;;  %v1389_v15 = vld [vmem:[%s2084_s1 + $0x230] ss:$8 sps:$4 sm:$0xff]   ;;  %v1392_v17 = vld [vmem:[%s2084_s1 + $0x244] ss:$8 sps:$4 sm:$0xff]  }
   0x7   :  { %950 = vmatpush1.bf16.msra.mxu1 %v1376_v6  ;;  %v1394_v18 = vld [vmem:[%s2084_s1 + $0x40] ss:$8 sps:$4 sm:$0xff]   ;;  %v1396_v20 = vld [vmem:[%s2084_s1 + $0x54] ss:$8 sps:$4 sm:$0xff]   ;;  %v1400_v22 = vld [vmem:[%s2084_s1 + $0x50] ss:$8 sps:$4 sm:$0xff]  }
   0x8   :  { %1036 = vmatpush1.bf16.msra.mxu0 %v1377_v7  ;;  %951 = vmatprep.subr.bf16.mxu1 %v1378_v8  ;;  %v1395_v19 = vld [vmem:[%s2084_s1 + $0x240] ss:$8 sps:$4 sm:$0xff]   ;;  %v1398_v21 = vld [vmem:[%s2084_s1 + $0x254] ss:$8 sps:$4 sm:$0xff]   ;;  %v1401_v23 = vld [vmem:[%s2084_s1 + $0x250] ss:$8 sps:$4 sm:$0xff]  }
   0x9   :  { %1037 = vmatprep.subr.bf16.mxu0 %v1380_v9  ;;  %v1402_v24 = vld [vmem:[%s2084_s1 + $0x64] ss:$8 sps:$4 sm:$0xff]   ;;  %v1406_v26 = vld [vmem:[%s2084_s1 + $0x60] ss:$8 sps:$4 sm:$0xff]   ;;  %v1408_v28 = vld [vmem:[%s2084_s1 + $0x74] ss:$8 sps:$4 sm:$0xff]  }
   0xa   :  { %v1404_v25 = vld [vmem:[%s2084_s1 + $0x264] ss:$8 sps:$4 sm:$0xff]   ;;  %v1407_v27 = vld [vmem:[%s2084_s1 + $0x260] ss:$8 sps:$4 sm:$0xff]   ;;  %v1410_v29 = vld [vmem:[%s2084_s1 + $0x274] ss:$8 sps:$4 sm:$0xff]  }
   0xb   :  { %952 = vmatpush1.bf16.msra.mxu1 %v1382_v10  ;;  %v1412_v30 = vld [vmem:[%s2084_s1 + $0x70] ss:$8 sps:$4 sm:$0xff]   ;;  %v1414_v32 = vld [vmem:[%s2084_s1 + $0x84] ss:$8 sps:$4 sm:$0xff]   ;;  %v1418_v34 = vld [vmem:[%s2084_s1 + $0x80] ss:$8 sps:$4 sm:$0xff]  }
   0xc   :  { %1038 = vmatpush1.bf16.msra.mxu0 %v1383_v11  ;;  %953 = vmatprep.subr.bf16.mxu1 %v1384_v12  ;;  %v1413_v31 = vld [vmem:[%s2084_s1 + $0x270] ss:$8 sps:$4 sm:$0xff]   ;;  %v1416_v33 = vld [vmem:[%s2084_s1 + $0x284] ss:$8 sps:$4 sm:$0xff]   ;;  %v1419_v35 = vld [vmem:[%s2084_s1 + $0x280] ss:$8 sps:$4 sm:$0xff]  }
   0xd   :  { %1039 = vmatprep.subr.bf16.mxu0 %v1386_v13  ;;  %v1420_v36 = vld [vmem:[%s2084_s1 + $0x94] ss:$8 sps:$4 sm:$0xff]   ;;  %v1424_v38 = vld [vmem:[%s2084_s1 + $0x90] ss:$8 sps:$4 sm:$0xff]   ;;  %v1426_v40 = vld [vmem:[%s2084_s1 + $0xa4] ss:$8 sps:$4 sm:$0xff]  }
   0xe   :  { %v1422_v37 = vld [vmem:[%s2084_s1 + $0x294] ss:$8 sps:$4 sm:$0xff]   ;;  %v1425_v39 = vld [vmem:[%s2084_s1 + $0x290] ss:$8 sps:$4 sm:$0xff]   ;;  %v1428_v41 = vld [vmem:[%s2084_s1 + $0x2a4] ss:$8 sps:$4 sm:$0xff]  }
   0xf   :  { %954 = vmatpush1.bf16.msra.mxu1 %v1388_v14  ;;  %v1430_v42 = vld [vmem:[%s2084_s1 + $0xa0] ss:$8 sps:$4 sm:$0xff]   ;;  %v1432_v44 = vld [vmem:[%s2084_s1 + $0xb4] ss:$8 sps:$4 sm:$0xff]   ;;  %v1436_v46 = vld [vmem:[%s2084_s1 + $0xb0] ss:$8 sps:$4 sm:$0xff]  }
  0x10   :  { %1040 = vmatpush1.bf16.msra.mxu0 %v1389_v15  ;;  %955 = vmatprep.subr.bf16.mxu1 %v1390_v16  ;;  %v1431_v43 = vld [vmem:[%s2084_s1 + $0x2a0] ss:$8 sps:$4 sm:$0xff]   ;;  %v1434_v45 = vld [vmem:[%s2084_s1 + $0x2b4] ss:$8 sps:$4 sm:$0xff]   ;;  %v1437_v47 = vld [vmem:[%s2084_s1 + $0x2b0] ss:$8 sps:$4 sm:$0xff]  }
  0x11   :  { %1041 = vmatprep.subr.bf16.mxu0 %v1392_v17  ;;  %v1464_v48 = vld [vmem:[%s2085_s0 + $0x4] ss:$36 sps:$4 sm:$0xff]   ;;  %v1470_v51 = vld [vmem:[%s2085_s0 + $0x14] ss:$36 sps:$4 sm:$0xff]  }
  0x12   :  { %v1438_v49 = vld [vmem:[%s2084_s1 + $0xc4] ss:$8 sps:$4 sm:$0xff]   ;;  %979 = vmatprep.mubr.bf16.mxu1 %v1464_v48  ;;  %v1442_v52 = vld [vmem:[%s2084_s1 + $0xc0] ss:$8 sps:$4 sm:$0xff]   ;;  %v1444_v54 = vld [vmem:[%s2084_s1 + $0xd4] ss:$8 sps:$4 sm:$0xff]   ;;  %1065 = vmatprep.mubr.bf16.mxu0 %v1470_v51 }
  0x13   :  { %956 = vmatpush1.bf16.msra.mxu1 %v1394_v18  ;;  %v1440_v50 = vld [vmem:[%s2084_s1 + $0x2c4] ss:$8 sps:$4 sm:$0xff]   ;;  %v1443_v53 = vld [vmem:[%s2084_s1 + $0x2c0] ss:$8 sps:$4 sm:$0xff]   ;;  %v1446_v55 = vld [vmem:[%s2084_s1 + $0x2d4] ss:$8 sps:$4 sm:$0xff]  }
  0x14   :  { %1042 = vmatpush1.bf16.msra.mxu0 %v1395_v19  ;;  %957 = vmatprep.subr.bf16.mxu1 %v1396_v20  ;;  %v1448_v56 = vld [vmem:[%s2084_s1 + $0xd0] ss:$8 sps:$4 sm:$0xff]   ;;  %v1450_v58 = vld [vmem:[%s2084_s1 + $0xe4] ss:$8 sps:$4 sm:$0xff]   ;;  %v1454_v60 = vld [vmem:[%s2084_s1 + $0xe0] ss:$8 sps:$4 sm:$0xff]  }
  0x15   :  { %1043 = vmatprep.subr.bf16.mxu0 %v1398_v21  ;;  %v1449_v57 = vld [vmem:[%s2084_s1 + $0x2d0] ss:$8 sps:$4 sm:$0xff]   ;;  %v1452_v59 = vld [vmem:[%s2084_s1 + $0x2e4] ss:$8 sps:$4 sm:$0xff]   ;;  %v1455_v61 = vld [vmem:[%s2084_s1 + $0x2e0] ss:$8 sps:$4 sm:$0xff]  }
  0x16   :  { %v1456_v62 = vld [vmem:[%s2084_s1 + $0xf4] ss:$8 sps:$4 sm:$0xff]   ;;  %v1460_v0 = vld [vmem:[%s2084_s1 + $0xf0] ss:$8 sps:$4 sm:$0xff]   ;;  %v1467_v2 = vld [vmem:[%s2084_s1 + $0x104] ss:$8 sps:$4 sm:$0xff]  }
  0x17   :  { %958 = vmatpush1.bf16.msra.mxu1 %v1400_v22  ;;  %v1458_v63 = vld [vmem:[%s2084_s1 + $0x2f4] ss:$8 sps:$4 sm:$0xff]   ;;  %v1461_v1 = vld [vmem:[%s2084_s1 + $0x2f0] ss:$8 sps:$4 sm:$0xff]   ;;  %v1473_v3 = vld [vmem:[%s2084_s1 + $0x304] ss:$8 sps:$4 sm:$0xff]  }
  0x18   :  { %1044 = vmatpush1.bf16.msra.mxu0 %v1401_v23  ;;  %959 = vmatprep.subr.bf16.mxu1 %v1402_v24  ;;  %v1462_v4 = vld [vmem:[%s2085_s0] ss:$36 sps:$4 sm:$0xff]   ;;  %v1468_v6 = vld [vmem:[%s2085_s0 + $0x10] ss:$36 sps:$4 sm:$0xff]  }
  0x19   :  { %1045 = vmatprep.subr.bf16.mxu0 %v1404_v25  ;;  %v1465_v5 = vld [vmem:[%s2084_s1 + $0x100] ss:$8 sps:$4 sm:$0xff]   ;;  %v1476_v8 = vld [vmem:[%s2084_s1 + $0x114] ss:$8 sps:$4 sm:$0xff]   ;;  %v1474_v10 = vld [vmem:[%s2084_s1 + $0x110] ss:$8 sps:$4 sm:$0xff]  }
  0x1a   :  { %v1471_v7 = vld [vmem:[%s2084_s1 + $0x300] ss:$8 sps:$4 sm:$0xff]   ;;  %v1479_v9 = vld [vmem:[%s2084_s1 + $0x314] ss:$8 sps:$4 sm:$0xff]   ;;  %v1477_v11 = vld [vmem:[%s2084_s1 + $0x310] ss:$8 sps:$4 sm:$0xff]  }
  0x1b   :  { %960 = vmatpush1.bf16.msra.mxu1 %v1406_v26  ;;  %v1482_v12 = vld [vmem:[%s2084_s1 + $0x124] ss:$8 sps:$4 sm:$0xff]   ;;  %v1480_v14 = vld [vmem:[%s2084_s1 + $0x120] ss:$8 sps:$4 sm:$0xff]   ;;  %v1488_v16 = vld [vmem:[%s2084_s1 + $0x134] ss:$8 sps:$4 sm:$0xff]  }
  0x1c   :  { %1046 = vmatpush1.bf16.msra.mxu0 %v1407_v27  ;;  %961 = vmatprep.subr.bf16.mxu1 %v1408_v28  ;;  %v1485_v13 = vld [vmem:[%s2084_s1 + $0x324] ss:$8 sps:$4 sm:$0xff]   ;;  %v1483_v15 = vld [vmem:[%s2084_s1 + $0x320] ss:$8 sps:$4 sm:$0xff]   ;;  %v1491_v17 = vld [vmem:[%s2084_s1 + $0x334] ss:$8 sps:$4 sm:$0xff]  }
  0x1d   :  { %1047 = vmatprep.subr.bf16.mxu0 %v1410_v29  ;;  %v1486_v18 = vld [vmem:[%s2084_s1 + $0x130] ss:$8 sps:$4 sm:$0xff]   ;;  %v1494_v20 = vld [vmem:[%s2084_s1 + $0x144] ss:$8 sps:$4 sm:$0xff]   ;;  %v1492_v22 = vld [vmem:[%s2084_s1 + $0x140] ss:$8 sps:$4 sm:$0xff]  }
  0x1e   :  { %v1489_v19 = vld [vmem:[%s2084_s1 + $0x330] ss:$8 sps:$4 sm:$0xff]   ;;  %v1497_v21 = vld [vmem:[%s2084_s1 + $0x344] ss:$8 sps:$4 sm:$0xff]   ;;  %v1495_v23 = vld [vmem:[%s2084_s1 + $0x340] ss:$8 sps:$4 sm:$0xff]  }
  0x1f   :  { %962 = vmatpush1.bf16.msra.mxu1 %v1412_v30  ;;  %v1500_v24 = vld [vmem:[%s2084_s1 + $0x154] ss:$8 sps:$4 sm:$0xff]   ;;  %v1498_v26 = vld [vmem:[%s2084_s1 + $0x150] ss:$8 sps:$4 sm:$0xff]   ;;  %v1506_v28 = vld [vmem:[%s2084_s1 + $0x164] ss:$8 sps:$4 sm:$0xff]  }
  0x20   :  { %1048 = vmatpush1.bf16.msra.mxu0 %v1413_v31  ;;  %963 = vmatprep.subr.bf16.mxu1 %v1414_v32  ;;  %v1503_v25 = vld [vmem:[%s2084_s1 + $0x354] ss:$8 sps:$4 sm:$0xff]   ;;  %v1501_v27 = vld [vmem:[%s2084_s1 + $0x350] ss:$8 sps:$4 sm:$0xff]   ;;  %v1509_v29 = vld [vmem:[%s2084_s1 + $0x364] ss:$8 sps:$4 sm:$0xff]  }
  0x21   :  { %1049 = vmatprep.subr.bf16.mxu0 %v1416_v33  ;;  %v1504_v30 = vld [vmem:[%s2084_s1 + $0x160] ss:$8 sps:$4 sm:$0xff]   ;;  %v1512_v32 = vld [vmem:[%s2084_s1 + $0x174] ss:$8 sps:$4 sm:$0xff]  }
  0x22   :  { %v1507_v31 = vld [vmem:[%s2084_s1 + $0x360] ss:$8 sps:$4 sm:$0xff]   ;;  %v1515_v33 = vld [vmem:[%s2084_s1 + $0x374] ss:$8 sps:$4 sm:$0xff]  }
  0x23   :  { %964 = vmatpush1.bf16.msra.mxu1 %v1418_v34  ;;  %v1566_v34 = vld [vmem:[%s2085_s0 + $0xc] ss:$36 sps:$4 sm:$0xff]   ;;  %v1528_v48 = vld [vmem:[%s2084_s1 + $0x1a0] ss:$8 sps:$4 sm:$0xff]   ;;  %v1539_v51 = vld [vmem:[%s2084_s1 + $0x3b4] ss:$8 sps:$4 sm:$0xff]  }
  0x24   :  { %1050 = vmatpush1.bf16.msra.mxu0 %v1419_v35  ;;  %965 = vmatprep.subr.bf16.mxu1 %v1420_v36  ;;  %v1569_v35 = vld [vmem:[%s2085_s0 + $0x1c] ss:$36 sps:$4 sm:$0xff]   ;;  %v1510_v36 = vld [vmem:[%s2084_s1 + $0x170] ss:$8 sps:$4 sm:$0xff]  }
  0x25   :  { %1051 = vmatprep.subr.bf16.mxu0 %v1422_v37  ;;  %v1513_v37 = vld [vmem:[%s2084_s1 + $0x370] ss:$8 sps:$4 sm:$0xff]  }
  0x27   :  { %966 = vmatpush1.bf16.msra.mxu1 %v1424_v38  ;;  %v1518_v38 = vld [vmem:[%s2084_s1 + $0x184] ss:$8 sps:$4 sm:$0xff]  }
  0x28   :  { %1052 = vmatpush1.bf16.msra.mxu0 %v1425_v39  ;;  %967 = vmatprep.subr.bf16.mxu1 %v1426_v40  ;;  %v1521_v39 = vld [vmem:[%s2084_s1 + $0x384] ss:$8 sps:$4 sm:$0xff]   ;;  %v1516_v40 = vld [vmem:[%s2084_s1 + $0x180] ss:$8 sps:$4 sm:$0xff]  }
  0x29   :  { %1053 = vmatprep.subr.bf16.mxu0 %v1428_v41  ;;  %v1519_v41 = vld [vmem:[%s2084_s1 + $0x380] ss:$8 sps:$4 sm:$0xff]  }
  0x2b   :  { %968 = vmatpush1.bf16.msra.mxu1 %v1430_v42  ;;  %v1524_v42 = vld [vmem:[%s2084_s1 + $0x194] ss:$8 sps:$4 sm:$0xff]  }
  0x2c   :  { %1054 = vmatpush1.bf16.msra.mxu0 %v1431_v43  ;;  %969 = vmatprep.subr.bf16.mxu1 %v1432_v44  ;;  %v1527_v43 = vld [vmem:[%s2084_s1 + $0x394] ss:$8 sps:$4 sm:$0xff]   ;;  %v1522_v44 = vld [vmem:[%s2084_s1 + $0x190] ss:$8 sps:$4 sm:$0xff]  }
  0x2d   :  { %1055 = vmatprep.subr.bf16.mxu0 %v1434_v45  ;;  %v1525_v45 = vld [vmem:[%s2084_s1 + $0x390] ss:$8 sps:$4 sm:$0xff]  }
  0x2f   :  { %970 = vmatpush1.bf16.msra.mxu1 %v1436_v46  ;;  %v1530_v46 = vld [vmem:[%s2084_s1 + $0x1a4] ss:$8 sps:$4 sm:$0xff]  }
  0x30   :  { %1056 = vmatpush1.bf16.msra.mxu0 %v1437_v47  ;;  %971 = vmatprep.subr.bf16.mxu1 %v1438_v49  ;;  %v1533_v47 = vld [vmem:[%s2084_s1 + $0x3a4] ss:$8 sps:$4 sm:$0xff]   ;;  %v1531_v49 = vld [vmem:[%s2084_s1 + $0x3a0] ss:$8 sps:$4 sm:$0xff]  }
  0x31   :  { %1057 = vmatprep.subr.bf16.mxu0 %v1440_v50  ;;  %v1536_v50 = vld [vmem:[%s2084_s1 + $0x1b4] ss:$8 sps:$4 sm:$0xff]  }
  0x33   :  { %972 = vmatpush1.bf16.msra.mxu1 %v1442_v52  ;;  %v1534_v52 = vld [vmem:[%s2084_s1 + $0x1b0] ss:$8 sps:$4 sm:$0xff]  }
  0x34   :  { %1058 = vmatpush1.bf16.msra.mxu0 %v1443_v53  ;;  %973 = vmatprep.subr.bf16.mxu1 %v1444_v54  ;;  %v1537_v53 = vld [vmem:[%s2084_s1 + $0x3b0] ss:$8 sps:$4 sm:$0xff]   ;;  %v1542_v54 = vld [vmem:[%s2084_s1 + $0x1c4] ss:$8 sps:$4 sm:$0xff]  }
  0x35   :  { %1059 = vmatprep.subr.bf16.mxu0 %v1446_v55  ;;  %v1545_v55 = vld [vmem:[%s2084_s1 + $0x3c4] ss:$8 sps:$4 sm:$0xff]  }
  0x37   :  { %974 = vmatpush1.bf16.msra.mxu1 %v1448_v56  ;;  %v1540_v56 = vld [vmem:[%s2084_s1 + $0x1c0] ss:$8 sps:$4 sm:$0xff]  }
  0x38   :  { %1060 = vmatpush1.bf16.msra.mxu0 %v1449_v57  ;;  %975 = vmatprep.subr.bf16.mxu1 %v1450_v58  ;;  %v1543_v57 = vld [vmem:[%s2084_s1 + $0x3c0] ss:$8 sps:$4 sm:$0xff]   ;;  %v1548_v58 = vld [vmem:[%s2084_s1 + $0x1d4] ss:$8 sps:$4 sm:$0xff]  }
  0x39   :  { %1061 = vmatprep.subr.bf16.mxu0 %v1452_v59  ;;  %v1551_v59 = vld [vmem:[%s2084_s1 + $0x3d4] ss:$8 sps:$4 sm:$0xff]  }
  0x3b   :  { %976 = vmatpush1.bf16.msra.mxu1 %v1454_v60  ;;  %v1546_v60 = vld [vmem:[%s2084_s1 + $0x1d0] ss:$8 sps:$4 sm:$0xff]  }
  0x3c   :  { %1062 = vmatpush1.bf16.msra.mxu0 %v1455_v61  ;;  %977 = vmatprep.subr.bf16.mxu1 %v1456_v62  ;;  %v1549_v61 = vld [vmem:[%s2084_s1 + $0x3d0] ss:$8 sps:$4 sm:$0xff]   ;;  %v1554_v62 = vld [vmem:[%s2084_s1 + $0x1e4] ss:$8 sps:$4 sm:$0xff]  }
  0x3d   :  { %1063 = vmatprep.subr.bf16.mxu0 %v1458_v63  ;;  %v1557_v63 = vld [vmem:[%s2084_s1 + $0x3e4] ss:$8 sps:$4 sm:$0xff]  }
  0x3f   :  { %978 = vmatpush1.bf16.msra.mxu1 %v1460_v0  ;;  %v1552_v0 = vld [vmem:[%s2084_s1 + $0x1e0] ss:$8 sps:$4 sm:$0xff]  }
  0x40   :  { %1064 = vmatpush1.bf16.msra.mxu0 %v1461_v1  ;;  %990 = vmatprep.subr.bf16.mxu1 %v1467_v2  ;;  %v1555_v1 = vld [vmem:[%s2084_s1 + $0x3e0] ss:$8 sps:$4 sm:$0xff]   ;;  %v1560_v2 = vld [vmem:[%s2084_s1 + $0x1f4] ss:$8 sps:$4 sm:$0xff]  }
  0x41   :  { %1076 = vmatprep.subr.bf16.mxu0 %v1473_v3  ;;  %v1563_v3 = vld [vmem:[%s2084_s1 + $0x3f4] ss:$8 sps:$4 sm:$0xff]  }
  0x42   :  { %980 = vmatmul.mubr.bf16.vlgmr.msra.gmra.mrb[0].mxu1 %v1462_v4  ;;  %v1558_v4 = vld [vmem:[%s2084_s1 + $0x1f0] ss:$8 sps:$4 sm:$0xff]  }
  0x43   :  { %1066 = vmatmul.mubr.bf16.vlgmr.msra.gmra.mrb[0].mxu0 %v1468_v6  ;;  %991 = vmatpush1.bf16.msra.mxu1 %v1465_v5  ;;  %v1561_v5 = vld [vmem:[%s2084_s1 + $0x3f0] ss:$8 sps:$4 sm:$0xff]   ;;  %v1572_v6 = vld [vmem:[%s2084_s1 + $0x404] ss:$8 sps:$4 sm:$0xff]  }
  0x44   :  { %1077 = vmatpush1.bf16.msra.mxu0 %v1471_v7  ;;  %992 = vmatprep.subr.bf16.mxu1 %v1476_v8  ;;  %v1564_v7 = vld [vmem:[%s2085_s0 + $0x8] ss:$36 sps:$4 sm:$0xff]   ;;  %v1567_v8 = vld [vmem:[%s2085_s0 + $0x18] ss:$36 sps:$4 sm:$0xff]  }
  0x45   :  { %1078 = vmatprep.subr.bf16.mxu0 %v1479_v9  ;;  %1022 = vmatprep.mubr.bf16.mxu1 %v1566_v34  ;;  %v1570_v9 = vld [vmem:[%s2084_s1 + $0x400] ss:$8 sps:$4 sm:$0xff]  }
  0x46   :  { %1108 = vmatprep.mubr.bf16.mxu0 %v1569_v35 }
  0x47   :  { %993 = vmatpush1.bf16.msra.mxu1 %v1474_v10  ;;  %v1575_v10 = vld [vmem:[%s2084_s1 + $0x414] ss:$8 sps:$4 sm:$0xff]  }
  0x48   :  { %1079 = vmatpush1.bf16.msra.mxu0 %v1477_v11  ;;  %994 = vmatprep.subr.bf16.mxu1 %v1482_v12  ;;  %v1573_v11 = vld [vmem:[%s2084_s1 + $0x410] ss:$8 sps:$4 sm:$0xff]   ;;  %v1595_v12 = vmov 0  }
  0x49   :  { %1080 = vmatprep.subr.bf16.mxu0 %v1485_v13  ;;  %v1578_v13 = vld [vmem:[%s2084_s1 + $0x424] ss:$8 sps:$4 sm:$0xff]  }
  0x4b   :  { %995 = vmatpush1.bf16.msra.mxu1 %v1480_v14  ;;  %v1576_v14 = vld [vmem:[%s2084_s1 + $0x420] ss:$8 sps:$4 sm:$0xff]  }
  0x4c   :  { %1081 = vmatpush1.bf16.msra.mxu0 %v1483_v15  ;;  %996 = vmatprep.subr.bf16.mxu1 %v1488_v16  ;;  %v1581_v15 = vld [vmem:[%s2084_s1 + $0x434] ss:$8 sps:$4 sm:$0xff]   ;;  %v1579_v16 = vld [vmem:[%s2084_s1 + $0x430] ss:$8 sps:$4 sm:$0xff]  }
  0x4d   :  { %1082 = vmatprep.subr.bf16.mxu0 %v1491_v17  ;;  %v1584_v17 = vld [vmem:[%s2084_s1 + $0x444] ss:$8 sps:$4 sm:$0xff]  }
  0x4f   :  { %997 = vmatpush1.bf16.msra.mxu1 %v1486_v18  ;;  %v1582_v18 = vld [vmem:[%s2084_s1 + $0x440] ss:$8 sps:$4 sm:$0xff]  }
  0x50   :  { %1083 = vmatpush1.bf16.msra.mxu0 %v1489_v19  ;;  %998 = vmatprep.subr.bf16.mxu1 %v1494_v20  ;;  %v1587_v19 = vld [vmem:[%s2084_s1 + $0x454] ss:$8 sps:$4 sm:$0xff]   ;;  %v1585_v20 = vld [vmem:[%s2084_s1 + $0x450] ss:$8 sps:$4 sm:$0xff]  }
  0x51   :  { %1084 = vmatprep.subr.bf16.mxu0 %v1497_v21  ;;  %v1590_v21 = vld [vmem:[%s2084_s1 + $0x464] ss:$8 sps:$4 sm:$0xff]  }
  0x53   :  { %999 = vmatpush1.bf16.msra.mxu1 %v1492_v22  ;;  %v1588_v22 = vld [vmem:[%s2084_s1 + $0x460] ss:$8 sps:$4 sm:$0xff]  }
  0x54   :  { %1085 = vmatpush1.bf16.msra.mxu0 %v1495_v23  ;;  %1000 = vmatprep.subr.bf16.mxu1 %v1500_v24  ;;  %v1593_v23 = vld [vmem:[%s2084_s1 + $0x474] ss:$8 sps:$4 sm:$0xff]   ;;  %v1591_v24 = vld [vmem:[%s2084_s1 + $0x470] ss:$8 sps:$4 sm:$0xff]  }
  0x55   :  { %1086 = vmatprep.subr.bf16.mxu0 %v1503_v25  ;;  %v1594_v25 = vld [vmem:[%s2085_s0 + $0x20] ss:$36 sps:$4 sm:$0xff]  }
  0x57   :  { %1001 = vmatpush1.bf16.msra.mxu1 %v1498_v26 }
  0x58   :  { %1087 = vmatpush1.bf16.msra.mxu0 %v1501_v27  ;;  %1002 = vmatprep.subr.bf16.mxu1 %v1506_v28 }
  0x59   :  { %1088 = vmatprep.subr.bf16.mxu0 %v1509_v29 }
  0x5b   :  { %1003 = vmatpush1.bf16.msra.mxu1 %v1504_v30  ;;  %v171_v30 = vlaneseq }
  0x5c   :  { %1089 = vmatpush1.bf16.msra.mxu0 %v1507_v31  ;;  %1004 = vmatprep.subr.bf16.mxu1 %v1512_v32 }
  0x5d   :  { %1090 = vmatprep.subr.bf16.mxu0 %v1515_v33  ;;  %v172_v31 = vshrl.u32 %v171_v30, 7  ;;  %v169_v33 = vld [vmem:[%s2086_s2] sm:$0x3] }
  0x5f   :  { %1005 = vmatpush1.bf16.msra.mxu1 %v1510_v36  ;;  %v173_v32 = vsub.s32 0, %v172_v31  ;;  %v177_v34 = vsub.s32 1, %v172_v31 }
  0x60   :  { %1091 = vmatpush1.bf16.msra.mxu0 %v1513_v37  ;;  %1006 = vmatprep.subr.bf16.mxu1 %v1518_v38 }
  0x61   :  { %1092 = vmatprep.subr.bf16.mxu0 %v1521_v39  ;;  %v174_v35 = vrot.slane %v169_v33, %v173_v32  ;;  %v178_v36 = vrot.slane %v169_v33, %v177_v34 }
  0x63   :  { %1007 = vmatpush1.bf16.msra.mxu1 %v1516_v40 }
  0x64   :  { %1093 = vmatpush1.bf16.msra.mxu0 %v1519_v41  ;;  %1008 = vmatprep.subr.bf16.mxu1 %v1524_v42 }
  0x65   :  { %1094 = vmatprep.subr.bf16.mxu0 %v1527_v43 }
  0x67   :  { %1009 = vmatpush1.bf16.msra.mxu1 %v1522_v44 }
  0x68   :  { %1095 = vmatpush1.bf16.msra.mxu0 %v1525_v45  ;;  %1010 = vmatprep.subr.bf16.mxu1 %v1530_v46 }
  0x69   :  { %1096 = vmatprep.subr.bf16.mxu0 %v1533_v47 }
  0x6b   :  { %1011 = vmatpush1.bf16.msra.mxu1 %v1528_v48 }
  0x6c   :  { %1097 = vmatpush1.bf16.msra.mxu0 %v1531_v49  ;;  %1012 = vmatprep.subr.bf16.mxu1 %v1536_v50 }
  0x6d   :  { %1098 = vmatprep.subr.bf16.mxu0 %v1539_v51 }
  0x6f   :  { %1013 = vmatpush1.bf16.msra.mxu1 %v1534_v52 }
  0x70   :  { %1099 = vmatpush1.bf16.msra.mxu0 %v1537_v53  ;;  %1014 = vmatprep.subr.bf16.mxu1 %v1542_v54 }
  0x71   :  { %1100 = vmatprep.subr.bf16.mxu0 %v1545_v55 }
  0x73   :  { %1015 = vmatpush1.bf16.msra.mxu1 %v1540_v56 }
  0x74   :  { %1101 = vmatpush1.bf16.msra.mxu0 %v1543_v57  ;;  %1016 = vmatprep.subr.bf16.mxu1 %v1548_v58 }
  0x75   :  { %1102 = vmatprep.subr.bf16.mxu0 %v1551_v59 }
  0x77   :  { %1017 = vmatpush1.bf16.msra.mxu1 %v1546_v60 }
  0x78   :  { %1103 = vmatpush1.bf16.msra.mxu0 %v1549_v61  ;;  %1018 = vmatprep.subr.bf16.mxu1 %v1554_v62 }
  0x79   :  { %1104 = vmatprep.subr.bf16.mxu0 %v1557_v63 }
  0x7b   :  { %1019 = vmatpush1.bf16.msra.mxu1 %v1552_v0 }
  0x7c   :  { %1105 = vmatpush1.bf16.msra.mxu0 %v1555_v1  ;;  %1020 = vmatprep.subr.bf16.mxu1 %v1560_v2 }
  0x7d   :  { %1106 = vmatprep.subr.bf16.mxu0 %v1563_v3 }
  0x7f   :  { %1021 = vmatpush1.bf16.msra.mxu1 %v1558_v4 }
  0x80   :  { %1107 = vmatpush1.bf16.msra.mxu0 %v1561_v5 }
  0x81   :  { %1119 = vmatprep.subr.bf16.mxu0 %v1572_v6 }
  0x82   :  { %1023 = vmatmul.mubr.bf16.vlgmr.msra.gmra.mrb[0].mxu1 %v1564_v7 }
  0x83   :  { %1109 = vmatmul.mubr.bf16.vlgmr.msra.gmra.mrb[0].mxu0 %v1567_v8 }
  0x84   :  { %1120 = vmatpush1.bf16.msra.mxu0 %v1570_v9  ;;  %1151 = vmatprep.mubr.bf16.mxu0 %v1595_v12 }
  0x85   :  { %1121 = vmatprep.subr.bf16.mxu0 %v1575_v10 }
  0x88   :  { %1122 = vmatpush1.bf16.msra.mxu0 %v1573_v11 }
  0x89   :  { %1123 = vmatprep.subr.bf16.mxu0 %v1578_v13 }
  0x8c   :  { %1124 = vmatpush1.bf16.msra.mxu0 %v1576_v14 }
  0x8d   :  { %1125 = vmatprep.subr.bf16.mxu0 %v1581_v15 }
  0x90   :  { %1126 = vmatpush1.bf16.msra.mxu0 %v1579_v16 }
  0x91   :  { %1127 = vmatprep.subr.bf16.mxu0 %v1584_v17 }
  0x94   :  { %1128 = vmatpush1.bf16.msra.mxu0 %v1582_v18 }
  0x95   :  { %1129 = vmatprep.subr.bf16.mxu0 %v1587_v19 }
  0x98   :  { %1130 = vmatpush1.bf16.msra.mxu0 %v1585_v20 }
  0x99   :  { %1131 = vmatprep.subr.bf16.mxu0 %v1590_v21 }
  0x9c   :  { %1132 = vmatpush1.bf16.msra.mxu0 %v1588_v22 }
  0x9d   :  { %1133 = vmatprep.subr.bf16.mxu0 %v1593_v23 }
  0xa0   :  { %1134 = vmatpush1.bf16.msra.mxu0 %v1591_v24 }
  0xa3   :  { %1152 = vmatmul.mubr.bf16.vlgmr.msra.gmra.mrb[0].mxu0 %v1594_v25 }
 0x155   :  { %v1024_v26 = vpop.f32.mrb[0].mxu1 }
 0x156   :  { %v1026_v27 = vpop.f32.mrb[1].mxu1  ;;  %v1345_v37 = vadd.f32 %v1024_v26, %v174_v35 }
 0x157   :  { %v1028_v28 = vpop.f32.mrb[2].mxu1  ;;  %v1347_v38 = vadd.f32 %v1026_v27, %v178_v36 }
 0x158   :  { %v1030_v29 = vpop.f32.mrb[3].mxu1  ;;  %v1349_v40 = vadd.f32 %v1028_v28, %v174_v35 }
 0x159   :  { %v1351_v43 = vadd.f32 %v1030_v29, %v178_v36 }
 0x176   :  { %v1153_v39 = vpop.f32.mrb[0].mxu0 }
 0x177   :  { %v1346_v41 = vadd.f32 %v1345_v37, %v1153_v39  ;;  %v1155_v42 = vpop.f32.mrb[1].mxu0 }
 0x178   :  { %v1348_v44 = vadd.f32 %v1347_v38, %v1155_v42  ;;  %v1157_v45 = vpop.f32.mrb[2].mxu0 }
 0x179   :  { %v1162_v46 = vmul.f32 0.2, %v1346_v41  ;;  %v1350_v47 = vadd.f32 %v1349_v40, %v1157_v45  ;;  %v1159_v48 = vpop.f32.mrb[3].mxu0 }
 0x17a   :  { %v1163_v49 = vmul.f32 0.2, %v1348_v44  ;;  %v1352_v50 = vadd.f32 %v1351_v43, %v1159_v48 }
 0x17b   :  { %v1166_v51 = vmax.f32 %v1346_v41, %v1162_v46  ;;  %v1164_v52 = vmul.f32 0.2, %v1350_v47 }
 0x17c   :  { %v1167_v53 = vmax.f32 %v1348_v44, %v1163_v49  ;;  %v1165_v54 = vmul.f32 0.2, %v1352_v50 }
 0x17d   :  { %v1168_v55 = vmax.f32 %v1350_v47, %v1164_v52 }
 0x17e   :  { %v1343_v56 = vpack.c.bf16 %v1167_v53, %v1166_v51  ;;  %v1169_v57 = vmax.f32 %v1352_v50, %v1165_v54 }
 0x180   :  { %1182 = vst [vmem:[%s2087_s3] sm:$0xff] %v1343_v56  ;;  %v1344_v58 = vpack.c.bf16 %v1169_v57, %v1168_v55 }
 0x182   :  { %1183 = vst [vmem:[%s2087_s3 + $0x8] sm:$0xff] %v1344_v58 }

// kernel: discriminator_forward.8
= control target key start
LH: loop header
LB: loop body
LE: loop exit
PB: predicated region body
PF: predicated region fallthrough
CT: control target
= control target key end

     0   :  { %s4731_s12 = smov 0   ;;  %s4733_s13 = smov 0   ;;  %s5735_s0 = inlined_call_operand.vmem [shape: bf16[16,2304], index: 0, kind: input, shape index: {}]   ;;  %s5736_s1 = inlined_call_operand.vmem [shape: bf16[2304,512], index: 1, kind: input, shape index: {}]   ;;  %s5737_s2 = inlined_call_operand.vmem [shape: f32[1,512], index: 2, kind: input, shape index: {}]   ;;  %s5738_s3 = inlined_call_operand.vmem [shape: bf16[16,512], index: 3, kind: output, shape index: {}]  }
   0x1   :  { %s4735_s14 = smov 0   ;;  %s4737_s15 = smov 0  }
   0x2   :  { %s4739_s16 = smov 0  }
   0x3 LB: > { %s22_s17 = sadd.s32 1, %s4705_s15  ;;  %s3807_s18 = sadd.s32 4294967295, %s4709_s16   ;;  %s4709_s16 = sphi %s4739_s16, %s13_s16   ;;  %s4705_s15 = sphi %s4737_s15, %s5743_s15   ;;  %s4701_s14 = sphi %s4735_s14, %s5742_s14   ;;  %s4697_s13 = sphi %s4733_s13, %s5741_s13   ;;  %s4693_s12 = sphi %s4731_s12, %s5740_s12  }
   0x4   : > { %p23_p0 = scmp.ge.s32.totalorder %s22_s17, 2  ;;  %p65_p1 = scmp.ne.s32.totalorder %s4697_s13, %s4693_s12 }
   0x5   : > { %p66_p2 = scmp.eq.s32.totalorder %s4709_s16, 0  ;;  %p123_p4 = scmp.eq.s32.totalorder %s3807_s18, 1 }
   0x6   : > { %s5745_s17 = smov (%p23_p0, %s22_s17), 0  ;;  %s58_s20 = sadd.s32 1, %s4697_s13 }
   0x7   : > { %p67_p3 = por %p66_p2, %p65_p1  ;;  %s55_s19 = ssub.s32 %s4705_s15, %s5745_s17 }
   0x8   : > { %p56_p5 = scmp.eq.s32.totalorder %s55_s19, 0  ;;  %p4766_p6 = por %p123_p4, %p65_p1 }
   0x9   : > { %p3811_p7 = scmp.ge.s32.totalorder %s4709_s16, 2 }
   0xa   : > { %s4771_s22 = scalar_select %p56_p5, %s4697_s13, %s58_s20  }
   0xb   : > { %155 = sbr.rel (%p3811_p7) target bundleno = 166 (0xa6), region = 20 }
  0x12   : > { %158 = sbr.rel (!%p67_p3) target bundleno = 166 (0xa6), region = 24  ;;  %s160_s23 = sand.u32 (%p67_p3), 1, %s4697_s13  }
  0x13   : > { %s4130_s24 = sshll.u32 (%p67_p3), %s4705_s15, 3  ;;  %s4170_s25 = smul.u32 (%p67_p3), 2304, %s160_s23 }
  0x14   : > { %s4779_s28 = scalar_lea.vmem (%p67_p3), %s5736_s1, %s4130_s24 }
  0x15   : > { %v767_v0 = vld [vmem:[%s4779_s28] sm:$0xff] (%p67_p3)  ;;  %v769_v1 = vld [vmem:[%s4779_s28 + $0x10] sm:$0xff] (%p67_p3)  ;;  %s4787_s29 = scalar_lea.vmem (%p67_p3), [#allocation2], %s4170_s25 }
  0x16   : > { %v771_v2 = vld [vmem:[%s4779_s28 + $0x20] sm:$0xff] (%p67_p3)  ;;  %v773_v3 = vld [vmem:[%s4779_s28 + $0x30] sm:$0xff] (%p67_p3)  ;;  %768 = vst [vmem:[%s4787_s29] sm:$0xff] (%p67_p3), %v767_v0  ;;  %770 = vst [vmem:[%s4787_s29 + $0x8] sm:$0xff] (%p67_p3), %v769_v1 }
  0x17   : > { %v775_v4 = vld [vmem:[%s4779_s28 + $0x40] sm:$0xff] (%p67_p3)  ;;  %v777_v5 = vld [vmem:[%s4779_s28 + $0x50] sm:$0xff] (%p67_p3)  ;;  %772 = vst [vmem:[%s4787_s29 + $0x10] sm:$0xff] (%p67_p3), %v771_v2  ;;  %774 = vst [vmem:[%s4787_s29 + $0x18] sm:$0xff] (%p67_p3), %v773_v3 }
  0x18   : > { %776 = vst [vmem:[%s4787_s29 + $0x20] sm:$0xff] (%p67_p3), %v775_v4  ;;  %778 = vst [vmem:[%s4787_s29 + $0x28] sm:$0xff] (%p67_p3), %v777_v5  ;;  %v779_v6 = vld [vmem:[%s4779_s28 + $0x60] sm:$0xff] (%p67_p3)  ;;  %v781_v7 = vld [vmem:[%s4779_s28 + $0x70] sm:$0xff] (%p67_p3) }
  0x19   : > { %v783_v8 = vld [vmem:[%s4779_s28 + $0x80] sm:$0xff]  ;;  %780 = vst [vmem:[%s4787_s29 + $0x30] sm:$0xff] %v779_v6  ;;  %782 = vst [vmem:[%s4787_s29 + $0x38] sm:$0xff] %v781_v7  ;;  %v785_v9 = vld [vmem:[%s4779_s28 + $0x90] sm:$0xff] }
  0x1a   : > { %784 = vst [vmem:[%s4787_s29 + $0x40] sm:$0xff] %v783_v8  ;;  %v787_v10 = vld [vmem:[%s4779_s28 + $0xa0] sm:$0xff]  ;;  %v789_v11 = vld [vmem:[%s4779_s28 + $0xb0] sm:$0xff]  ;;  %786 = vst [vmem:[%s4787_s29 + $0x48] sm:$0xff] %v785_v9 }
  0x1b   : > { %788 = vst [vmem:[%s4787_s29 + $0x50] sm:$0xff] %v787_v10  ;;  %790 = vst [vmem:[%s4787_s29 + $0x58] sm:$0xff] %v789_v11  ;;  %v791_v12 = vld [vmem:[%s4779_s28 + $0xc0] sm:$0xff]  ;;  %v793_v13 = vld [vmem:[%s4779_s28 + $0xd0] sm:$0xff] }
  0x1c   : > { %v795_v14 = vld [vmem:[%s4779_s28 + $0xe0] sm:$0xff]  ;;  %792 = vst [vmem:[%s4787_s29 + $0x60] sm:$0xff] %v791_v12  ;;  %794 = vst [vmem:[%s4787_s29 + $0x68] sm:$0xff] %v793_v13  ;;  %v797_v15 = vld [vmem:[%s4779_s28 + $0xf0] sm:$0xff] }
  0x1d   : > { %796 = vst [vmem:[%s4787_s29 + $0x70] sm:$0xff] %v795_v14  ;;  %v799_v16 = vld [vmem:[%s4779_s28 + $0x100] sm:$0xff]  ;;  %v801_v17 = vld [vmem:[%s4779_s28 + $0x110] sm:$0xff]  ;;  %798 = vst [vmem:[%s4787_s29 + $0x78] sm:$0xff] %v797_v15 }
  0x1e   : > { %800 = vst [vmem:[%s4787_s29 + $0x80] sm:$0xff] %v799_v16  ;;  %802 = vst [vmem:[%s4787_s29 + $0x88] sm:$0xff] %v801_v17  ;;  %v803_v18 = vld [vmem:[%s4779_s28 + $0x120] sm:$0xff]  ;;  %v805_v19 = vld [vmem:[%s4779_s28 + $0x130] sm:$0xff] }
  0x1f   : > { %v807_v20 = vld [vmem:[%s4779_s28 + $0x140] sm:$0xff]  ;;  %804 = vst [vmem:[%s4787_s29 + $0x90] sm:$0xff] %v803_v18  ;;  %806 = vst [vmem:[%s4787_s29 + $0x98] sm:$0xff] %v805_v19  ;;  %v809_v21 = vld [vmem:[%s4779_s28 + $0x150] sm:$0xff] }
  0x20   : > { %808 = vst [vmem:[%s4787_s29 + $0xa0] sm:$0xff] %v807_v20  ;;  %v811_v22 = vld [vmem:[%s4779_s28 + $0x160] sm:$0xff]  ;;  %v813_v23 = vld [vmem:[%s4779_s28 + $0x170] sm:$0xff]  ;;  %810 = vst [vmem:[%s4787_s29 + $0xa8] sm:$0xff] %v809_v21 }
  0x21   : > { %812 = vst [vmem:[%s4787_s29 + $0xb0] sm:$0xff] %v811_v22  ;;  %814 = vst [vmem:[%s4787_s29 + $0xb8] sm:$0xff] %v813_v23  ;;  %v815_v24 = vld [vmem:[%s4779_s28 + $0x180] sm:$0xff]  ;;  %v817_v25 = vld [vmem:[%s4779_s28 + $0x190] sm:$0xff] }
  0x22   : > { %v819_v26 = vld [vmem:[%s4779_s28 + $0x1a0] sm:$0xff]  ;;  %816 = vst [vmem:[%s4787_s29 + $0xc0] sm:$0xff] %v815_v24  ;;  %818 = vst [vmem:[%s4787_s29 + $0xc8] sm:$0xff] %v817_v25  ;;  %v821_v27 = vld [vmem:[%s4779_s28 + $0x1b0] sm:$0xff] }
  0x23   : > { %820 = vst [vmem:[%s4787_s29 + $0xd0] sm:$0xff] %v819_v26  ;;  %v823_v28 = vld [vmem:[%s4779_s28 + $0x1c0] sm:$0xff]  ;;  %v825_v29 = vld [vmem:[%s4779_s28 + $0x1d0] sm:$0xff]  ;;  %822 = vst [vmem:[%s4787_s29 + $0xd8] sm:$0xff] %v821_v27 }
  0x24   : > { %824 = vst [vmem:[%s4787_s29 + $0xe0] sm:$0xff] %v823_v28  ;;  %826 = vst [vmem:[%s4787_s29 + $0xe8] sm:$0xff] %v825_v29  ;;  %v827_v30 = vld [vmem:[%s4779_s28 + $0x1e0] sm:$0xff]  ;;  %v829_v31 = vld [vmem:[%s4779_s28 + $0x1f0] sm:$0xff] }
  0x25   : > { %v831_v32 = vld [vmem:[%s4779_s28 + $0x200] sm:$0xff]  ;;  %828 = vst [vmem:[%s4787_s29 + $0xf0] sm:$0xff] %v827_v30  ;;  %830 = vst [vmem:[%s4787_s29 + $0xf8] sm:$0xff] %v829_v31  ;;  %v833_v33 = vld [vmem:[%s4779_s28 + $0x210] sm:$0xff] }
  0x26   : > { %832 = vst [vmem:[%s4787_s29 + $0x100] sm:$0xff] %v831_v32  ;;  %v835_v34 = vld [vmem:[%s4779_s28 + $0x220] sm:$0xff]  ;;  %v837_v35 = vld [vmem:[%s4779_s28 + $0x230] sm:$0xff]  ;;  %834 = vst [vmem:[%s4787_s29 + $0x108] sm:$0xff] %v833_v33 }
  0x27   : > { %836 = vst [vmem:[%s4787_s29 + $0x110] sm:$0xff] %v835_v34  ;;  %838 = vst [vmem:[%s4787_s29 + $0x118] sm:$0xff] %v837_v35  ;;  %v839_v36 = vld [vmem:[%s4779_s28 + $0x240] sm:$0xff]  ;;  %v841_v37 = vld [vmem:[%s4779_s28 + $0x250] sm:$0xff] }
  0x28   : > { %v843_v38 = vld [vmem:[%s4779_s28 + $0x260] sm:$0xff]  ;;  %840 = vst [vmem:[%s4787_s29 + $0x120] sm:$0xff] %v839_v36  ;;  %842 = vst [vmem:[%s4787_s29 + $0x128] sm:$0xff] %v841_v37  ;;  %v845_v39 = vld [vmem:[%s4779_s28 + $0x270] sm:$0xff] }
  0x29   : > { %844 = vst [vmem:[%s4787_s29 + $0x130] sm:$0xff] %v843_v38  ;;  %v847_v40 = vld [vmem:[%s4779_s28 + $0x280] sm:$0xff]  ;;  %v849_v41 = vld [vmem:[%s4779_s28 + $0x290] sm:$0xff]  ;;  %846 = vst [vmem:[%s4787_s29 + $0x138] sm:$0xff] %v845_v39 }
  0x2a   : > { %848 = vst [vmem:[%s4787_s29 + $0x140] sm:$0xff] %v847_v40  ;;  %850 = vst [vmem:[%s4787_s29 + $0x148] sm:$0xff] %v849_v41  ;;  %v851_v42 = vld [vmem:[%s4779_s28 + $0x2a0] sm:$0xff]  ;;  %v853_v43 = vld [vmem:[%s4779_s28 + $0x2b0] sm:$0xff] }
  0x2b   : > { %v855_v44 = vld [vmem:[%s4779_s28 + $0x2c0] sm:$0xff]  ;;  %852 = vst [vmem:[%s4787_s29 + $0x150] sm:$0xff] %v851_v42  ;;  %854 = vst [vmem:[%s4787_s29 + $0x158] sm:$0xff] %v853_v43  ;;  %v857_v45 = vld [vmem:[%s4779_s28 + $0x2d0] sm:$0xff] }
  0x2c   : > { %856 = vst [vmem:[%s4787_s29 + $0x160] sm:$0xff] %v855_v44  ;;  %v859_v46 = vld [vmem:[%s4779_s28 + $0x2e0] sm:$0xff]  ;;  %v861_v47 = vld [vmem:[%s4779_s28 + $0x2f0] sm:$0xff]  ;;  %858 = vst [vmem:[%s4787_s29 + $0x168] sm:$0xff] %v857_v45 }
  0x2d   : > { %860 = vst [vmem:[%s4787_s29 + $0x170] sm:$0xff] %v859_v46  ;;  %862 = vst [vmem:[%s4787_s29 + $0x178] sm:$0xff] %v861_v47  ;;  %v863_v48 = vld [vmem:[%s4779_s28 + $0x300] sm:$0xff]  ;;  %v865_v49 = vld [vmem:[%s4779_s28 + $0x310] sm:$0xff] }
  0x2e   : > { %v867_v50 = vld [vmem:[%s4779_s28 + $0x320] sm:$0xff]  ;;  %864 = vst [vmem:[%s4787_s29 + $0x180] sm:$0xff] %v863_v48  ;;  %866 = vst [vmem:[%s4787_s29 + $0x188] sm:$0xff] %v865_v49  ;;  %v869_v51 = vld [vmem:[%s4779_s28 + $0x330] sm:$0xff] }
  0x2f   : > { %868 = vst [vmem:[%s4787_s29 + $0x190] sm:$0xff] %v867_v50  ;;  %v871_v52 = vld [vmem:[%s4779_s28 + $0x340] sm:$0xff]  ;;  %v873_v53 = vld [vmem:[%s4779_s28 + $0x350] sm:$0xff]  ;;  %870 = vst [vmem:[%s4787_s29 + $0x198] sm:$0xff] %v869_v51 }
  0x30   : > { %872 = vst [vmem:[%s4787_s29 + $0x1a0] sm:$0xff] %v871_v52  ;;  %874 = vst [vmem:[%s4787_s29 + $0x1a8] sm:$0xff] %v873_v53  ;;  %v875_v54 = vld [vmem:[%s4779_s28 + $0x360] sm:$0xff]  ;;  %v877_v55 = vld [vmem:[%s4779_s28 + $0x370] sm:$0xff] }
  0x31   : > { %v879_v56 = vld [vmem:[%s4779_s28 + $0x380] sm:$0xff]  ;;  %876 = vst [vmem:[%s4787_s29 + $0x1b0] sm:$0xff] %v875_v54  ;;  %878 = vst [vmem:[%s4787_s29 + $0x1b8] sm:$0xff] %v877_v55  ;;  %v881_v57 = vld [vmem:[%s4779_s28 + $0x390] sm:$0xff] }
  0x32   : > { %880 = vst [vmem:[%s4787_s29 + $0x1c0] sm:$0xff] %v879_v56  ;;  %v883_v58 = vld [vmem:[%s4779_s28 + $0x3a0] sm:$0xff]  ;;  %v885_v59 = vld [vmem:[%s4779_s28 + $0x3b0] sm:$0xff]  ;;  %882 = vst [vmem:[%s4787_s29 + $0x1c8] sm:$0xff] %v881_v57 }
  0x33   : > { %884 = vst [vmem:[%s4787_s29 + $0x1d0] sm:$0xff] %v883_v58  ;;  %886 = vst [vmem:[%s4787_s29 + $0x1d8] sm:$0xff] %v885_v59  ;;  %v887_v60 = vld [vmem:[%s4779_s28 + $0x3c0] sm:$0xff]  ;;  %v889_v61 = vld [vmem:[%s4779_s28 + $0x3d0] sm:$0xff] }
  0x34   : > { %v891_v62 = vld [vmem:[%s4779_s28 + $0x3e0] sm:$0xff]  ;;  %888 = vst [vmem:[%s4787_s29 + $0x1e0] sm:$0xff] %v887_v60  ;;  %890 = vst [vmem:[%s4787_s29 + $0x1e8] sm:$0xff] %v889_v61  ;;  %v893_v63 = vld [vmem:[%s4779_s28 + $0x3f0] sm:$0xff] }
  0x35   : > { %892 = vst [vmem:[%s4787_s29 + $0x1f0] sm:$0xff] %v891_v62  ;;  %v895_v0 = vld [vmem:[%s4779_s28 + $0x400] sm:$0xff]  ;;  %v897_v1 = vld [vmem:[%s4779_s28 + $0x410] sm:$0xff]  ;;  %894 = vst [vmem:[%s4787_s29 + $0x1f8] sm:$0xff] %v893_v63 }
  0x36   : > { %896 = vst [vmem:[%s4787_s29 + $0x200] sm:$0xff] %v895_v0  ;;  %898 = vst [vmem:[%s4787_s29 + $0x208] sm:$0xff] %v897_v1  ;;  %v899_v2 = vld [vmem:[%s4779_s28 + $0x420] sm:$0xff]  ;;  %v901_v3 = vld [vmem:[%s4779_s28 + $0x430] sm:$0xff] }
  0x37   : > { %v903_v4 = vld [vmem:[%s4779_s28 + $0x440] sm:$0xff]  ;;  %900 = vst [vmem:[%s4787_s29 + $0x210] sm:$0xff] %v899_v2  ;;  %902 = vst [vmem:[%s4787_s29 + $0x218] sm:$0xff] %v901_v3  ;;  %v905_v5 = vld [vmem:[%s4779_s28 + $0x450] sm:$0xff] }
  0x38   : > { %904 = vst [vmem:[%s4787_s29 + $0x220] sm:$0xff] %v903_v4  ;;  %v907_v6 = vld [vmem:[%s4779_s28 + $0x460] sm:$0xff]  ;;  %v909_v7 = vld [vmem:[%s4779_s28 + $0x470] sm:$0xff]  ;;  %906 = vst [vmem:[%s4787_s29 + $0x228] sm:$0xff] %v905_v5 }
  0x39   : > { %908 = vst [vmem:[%s4787_s29 + $0x230] sm:$0xff] %v907_v6  ;;  %910 = vst [vmem:[%s4787_s29 + $0x238] sm:$0xff] %v909_v7  ;;  %v911_v8 = vld [vmem:[%s4779_s28 + $0x480] sm:$0xff]  ;;  %v913_v9 = vld [vmem:[%s4779_s28 + $0x490] sm:$0xff] }
  0x3a   : > { %v915_v10 = vld [vmem:[%s4779_s28 + $0x4a0] sm:$0xff]  ;;  %912 = vst [vmem:[%s4787_s29 + $0x240] sm:$0xff] %v911_v8  ;;  %914 = vst [vmem:[%s4787_s29 + $0x248] sm:$0xff] %v913_v9  ;;  %v917_v11 = vld [vmem:[%s4779_s28 + $0x4b0] sm:$0xff] }
  0x3b   : > { %916 = vst [vmem:[%s4787_s29 + $0x250] sm:$0xff] %v915_v10  ;;  %v919_v12 = vld [vmem:[%s4779_s28 + $0x4c0] sm:$0xff]  ;;  %v921_v13 = vld [vmem:[%s4779_s28 + $0x4d0] sm:$0xff]  ;;  %918 = vst [vmem:[%s4787_s29 + $0x258] sm:$0xff] %v917_v11 }
  0x3c   : > { %920 = vst [vmem:[%s4787_s29 + $0x260] sm:$0xff] %v919_v12  ;;  %922 = vst [vmem:[%s4787_s29 + $0x268] sm:$0xff] %v921_v13  ;;  %v923_v14 = vld [vmem:[%s4779_s28 + $0x4e0] sm:$0xff]  ;;  %v925_v15 = vld [vmem:[%s4779_s28 + $0x4f0] sm:$0xff] }
  0x3d   : > { %v927_v16 = vld [vmem:[%s4779_s28 + $0x500] sm:$0xff]  ;;  %924 = vst [vmem:[%s4787_s29 + $0x270] sm:$0xff] %v923_v14  ;;  %926 = vst [vmem:[%s4787_s29 + $0x278] sm:$0xff] %v925_v15  ;;  %v929_v17 = vld [vmem:[%s4779_s28 + $0x510] sm:$0xff] }
  0x3e   : > { %928 = vst [vmem:[%s4787_s29 + $0x280] sm:$0xff] %v927_v16  ;;  %v931_v18 = vld [vmem:[%s4779_s28 + $0x520] sm:$0xff]  ;;  %v933_v19 = vld [vmem:[%s4779_s28 + $0x530] sm:$0xff]  ;;  %930 = vst [vmem:[%s4787_s29 + $0x288] sm:$0xff] %v929_v17 }
  0x3f   : > { %932 = vst [vmem:[%s4787_s29 + $0x290] sm:$0xff] %v931_v18  ;;  %934 = vst [vmem:[%s4787_s29 + $0x298] sm:$0xff] %v933_v19  ;;  %v935_v20 = vld [vmem:[%s4779_s28 + $0x540] sm:$0xff]  ;;  %v937_v21 = vld [vmem:[%s4779_s28 + $0x550] sm:$0xff] }
  0x40   : > { %v939_v22 = vld [vmem:[%s4779_s28 + $0x560] sm:$0xff]  ;;  %936 = vst [vmem:[%s4787_s29 + $0x2a0] sm:$0xff] %v935_v20  ;;  %938 = vst [vmem:[%s4787_s29 + $0x2a8] sm:$0xff] %v937_v21  ;;  %v941_v23 = vld [vmem:[%s4779_s28 + $0x570] sm:$0xff] }
  0x41   : > { %940 = vst [vmem:[%s4787_s29 + $0x2b0] sm:$0xff] %v939_v22  ;;  %v943_v24 = vld [vmem:[%s4779_s28 + $0x580] sm:$0xff]  ;;  %v945_v25 = vld [vmem:[%s4779_s28 + $0x590] sm:$0xff]  ;;  %942 = vst [vmem:[%s4787_s29 + $0x2b8] sm:$0xff] %v941_v23 }
  0x42   : > { %944 = vst [vmem:[%s4787_s29 + $0x2c0] sm:$0xff] %v943_v24  ;;  %946 = vst [vmem:[%s4787_s29 + $0x2c8] sm:$0xff] %v945_v25  ;;  %v947_v26 = vld [vmem:[%s4779_s28 + $0x5a0] sm:$0xff]  ;;  %v949_v27 = vld [vmem:[%s4779_s28 + $0x5b0] sm:$0xff] }
  0x43   : > { %v951_v28 = vld [vmem:[%s4779_s28 + $0x5c0] sm:$0xff]  ;;  %948 = vst [vmem:[%s4787_s29 + $0x2d0] sm:$0xff] %v947_v26  ;;  %950 = vst [vmem:[%s4787_s29 + $0x2d8] sm:$0xff] %v949_v27  ;;  %v953_v29 = vld [vmem:[%s4779_s28 + $0x5d0] sm:$0xff] }
  0x44   : > { %952 = vst [vmem:[%s4787_s29 + $0x2e0] sm:$0xff] %v951_v28  ;;  %v955_v30 = vld [vmem:[%s4779_s28 + $0x5e0] sm:$0xff]  ;;  %v957_v31 = vld [vmem:[%s4779_s28 + $0x5f0] sm:$0xff]  ;;  %954 = vst [vmem:[%s4787_s29 + $0x2e8] sm:$0xff] %v953_v29 }
  0x45   : > { %956 = vst [vmem:[%s4787_s29 + $0x2f0] sm:$0xff] %v955_v30  ;;  %958 = vst [vmem:[%s4787_s29 + $0x2f8] sm:$0xff] %v957_v31  ;;  %v959_v32 = vld [vmem:[%s4779_s28 + $0x600] sm:$0xff]  ;;  %v961_v33 = vld [vmem:[%s4779_s28 + $0x610] sm:$0xff] }
  0x46   : > { %v963_v34 = vld [vmem:[%s4779_s28 + $0x620] sm:$0xff]  ;;  %960 = vst [vmem:[%s4787_s29 + $0x300] sm:$0xff] %v959_v32  ;;  %962 = vst [vmem:[%s4787_s29 + $0x308] sm:$0xff] %v961_v33  ;;  %v965_v35 = vld [vmem:[%s4779_s28 + $0x630] sm:$0xff] }
  0x47   : > { %964 = vst [vmem:[%s4787_s29 + $0x310] sm:$0xff] %v963_v34  ;;  %v967_v36 = vld [vmem:[%s4779_s28 + $0x640] sm:$0xff]  ;;  %v969_v37 = vld [vmem:[%s4779_s28 + $0x650] sm:$0xff]  ;;  %966 = vst [vmem:[%s4787_s29 + $0x318] sm:$0xff] %v965_v35 }
  0x48   : > { %968 = vst [vmem:[%s4787_s29 + $0x320] sm:$0xff] %v967_v36  ;;  %970 = vst [vmem:[%s4787_s29 + $0x328] sm:$0xff] %v969_v37  ;;  %v971_v38 = vld [vmem:[%s4779_s28 + $0x660] sm:$0xff]  ;;  %v973_v39 = vld [vmem:[%s4779_s28 + $0x670] sm:$0xff] }
  0x49   : > { %v975_v40 = vld [vmem:[%s4779_s28 + $0x680] sm:$0xff]  ;;  %972 = vst [vmem:[%s4787_s29 + $0x330] sm:$0xff] %v971_v38  ;;  %974 = vst [vmem:[%s4787_s29 + $0x338] sm:$0xff] %v973_v39  ;;  %v977_v41 = vld [vmem:[%s4779_s28 + $0x690] sm:$0xff] }
  0x4a   : > { %976 = vst [vmem:[%s4787_s29 + $0x340] sm:$0xff] %v975_v40  ;;  %v979_v42 = vld [vmem:[%s4779_s28 + $0x6a0] sm:$0xff]  ;;  %v981_v43 = vld [vmem:[%s4779_s28 + $0x6b0] sm:$0xff]  ;;  %978 = vst [vmem:[%s4787_s29 + $0x348] sm:$0xff] %v977_v41 }
  0x4b   : > { %980 = vst [vmem:[%s4787_s29 + $0x350] sm:$0xff] %v979_v42  ;;  %982 = vst [vmem:[%s4787_s29 + $0x358] sm:$0xff] %v981_v43  ;;  %v983_v44 = vld [vmem:[%s4779_s28 + $0x6c0] sm:$0xff]  ;;  %v985_v45 = vld [vmem:[%s4779_s28 + $0x6d0] sm:$0xff] }
  0x4c   : > { %v987_v46 = vld [vmem:[%s4779_s28 + $0x6e0] sm:$0xff]  ;;  %984 = vst [vmem:[%s4787_s29 + $0x360] sm:$0xff] %v983_v44  ;;  %986 = vst [vmem:[%s4787_s29 + $0x368] sm:$0xff] %v985_v45  ;;  %v989_v47 = vld [vmem:[%s4779_s28 + $0x6f0] sm:$0xff] }
  0x4d   : > { %988 = vst [vmem:[%s4787_s29 + $0x370] sm:$0xff] %v987_v46  ;;  %v991_v48 = vld [vmem:[%s4779_s28 + $0x700] sm:$0xff]  ;;  %v993_v49 = vld [vmem:[%s4779_s28 + $0x710] sm:$0xff]  ;;  %990 = vst [vmem:[%s4787_s29 + $0x378] sm:$0xff] %v989_v47 }
  0x4e   : > { %992 = vst [vmem:[%s4787_s29 + $0x380] sm:$0xff] %v991_v48  ;;  %994 = vst [vmem:[%s4787_s29 + $0x388] sm:$0xff] %v993_v49  ;;  %v995_v50 = vld [vmem:[%s4779_s28 + $0x720] sm:$0xff]  ;;  %v997_v51 = vld [vmem:[%s4779_s28 + $0x730] sm:$0xff] }
  0x4f   : > { %v999_v52 = vld [vmem:[%s4779_s28 + $0x740] sm:$0xff]  ;;  %996 = vst [vmem:[%s4787_s29 + $0x390] sm:$0xff] %v995_v50  ;;  %998 = vst [vmem:[%s4787_s29 + $0x398] sm:$0xff] %v997_v51  ;;  %v1001_v53 = vld [vmem:[%s4779_s28 + $0x750] sm:$0xff] }
  0x50   : > { %1000 = vst [vmem:[%s4787_s29 + $0x3a0] sm:$0xff] %v999_v52  ;;  %v1003_v54 = vld [vmem:[%s4779_s28 + $0x760] sm:$0xff]  ;;  %v1005_v55 = vld [vmem:[%s4779_s28 + $0x770] sm:$0xff]  ;;  %1002 = vst [vmem:[%s4787_s29 + $0x3a8] sm:$0xff] %v1001_v53 }
  0x51   : > { %1004 = vst [vmem:[%s4787_s29 + $0x3b0] sm:$0xff] %v1003_v54  ;;  %1006 = vst [vmem:[%s4787_s29 + $0x3b8] sm:$0xff] %v1005_v55  ;;  %v1007_v56 = vld [vmem:[%s4779_s28 + $0x780] sm:$0xff]  ;;  %v1009_v57 = vld [vmem:[%s4779_s28 + $0x790] sm:$0xff] }
  0x52   : > { %v1011_v58 = vld [vmem:[%s4779_s28 + $0x7a0] sm:$0xff]  ;;  %1008 = vst [vmem:[%s4787_s29 + $0x3c0] sm:$0xff] %v1007_v56  ;;  %1010 = vst [vmem:[%s4787_s29 + $0x3c8] sm:$0xff] %v1009_v57  ;;  %v1013_v59 = vld [vmem:[%s4779_s28 + $0x7b0] sm:$0xff] }
  0x53   : > { %1012 = vst [vmem:[%s4787_s29 + $0x3d0] sm:$0xff] %v1011_v58  ;;  %v1015_v60 = vld [vmem:[%s4779_s28 + $0x7c0] sm:$0xff]  ;;  %v1017_v61 = vld [vmem:[%s4779_s28 + $0x7d0] sm:$0xff]  ;;  %1014 = vst [vmem:[%s4787_s29 + $0x3d8] sm:$0xff] %v1013_v59 }
  0x54   : > { %1016 = vst [vmem:[%s4787_s29 + $0x3e0] sm:$0xff] %v1015_v60  ;;  %1018 = vst [vmem:[%s4787_s29 + $0x3e8] sm:$0xff] %v1017_v61  ;;  %v1019_v62 = vld [vmem:[%s4779_s28 + $0x7e0] sm:$0xff]  ;;  %v1021_v63 = vld [vmem:[%s4779_s28 + $0x7f0] sm:$0xff] }
  0x55   : > { %v1023_v0 = vld [vmem:[%s4779_s28 + $0x800] sm:$0xff]  ;;  %1020 = vst [vmem:[%s4787_s29 + $0x3f0] sm:$0xff] %v1019_v62  ;;  %1022 = vst [vmem:[%s4787_s29 + $0x3f8] sm:$0xff] %v1021_v63  ;;  %v1025_v1 = vld [vmem:[%s4779_s28 + $0x810] sm:$0xff] }
  0x56   : > { %1024 = vst [vmem:[%s4787_s29 + $0x400] sm:$0xff] %v1023_v0  ;;  %v1027_v2 = vld [vmem:[%s4779_s28 + $0x820] sm:$0xff]  ;;  %v1029_v3 = vld [vmem:[%s4779_s28 + $0x830] sm:$0xff]  ;;  %1026 = vst [vmem:[%s4787_s29 + $0x408] sm:$0xff] %v1025_v1 }
  0x57   : > { %1028 = vst [vmem:[%s4787_s29 + $0x410] sm:$0xff] %v1027_v2  ;;  %1030 = vst [vmem:[%s4787_s29 + $0x418] sm:$0xff] %v1029_v3  ;;  %v1031_v4 = vld [vmem:[%s4779_s28 + $0x840] sm:$0xff]  ;;  %v1033_v5 = vld [vmem:[%s4779_s28 + $0x850] sm:$0xff] }
  0x58   : > { %v1035_v6 = vld [vmem:[%s4779_s28 + $0x860] sm:$0xff]  ;;  %1032 = vst [vmem:[%s4787_s29 + $0x420] sm:$0xff] %v1031_v4  ;;  %1034 = vst [vmem:[%s4787_s29 + $0x428] sm:$0xff] %v1033_v5  ;;  %v1037_v7 = vld [vmem:[%s4779_s28 + $0x870] sm:$0xff] }
  0x59   : > { %1036 = vst [vmem:[%s4787_s29 + $0x430] sm:$0xff] %v1035_v6  ;;  %v1039_v8 = vld [vmem:[%s4779_s28 + $0x880] sm:$0xff]  ;;  %v1041_v9 = vld [vmem:[%s4779_s28 + $0x890] sm:$0xff]  ;;  %1038 = vst [vmem:[%s4787_s29 + $0x438] sm:$0xff] %v1037_v7 }
  0x5a   : > { %1040 = vst [vmem:[%s4787_s29 + $0x440] sm:$0xff] %v1039_v8  ;;  %1042 = vst [vmem:[%s4787_s29 + $0x448] sm:$0xff] %v1041_v9  ;;  %v1043_v10 = vld [vmem:[%s4779_s28 + $0x8a0] sm:$0xff]  ;;  %v1045_v11 = vld [vmem:[%s4779_s28 + $0x8b0] sm:$0xff] }
  0x5b   : > { %v1047_v12 = vld [vmem:[%s4779_s28 + $0x8c0] sm:$0xff]  ;;  %1044 = vst [vmem:[%s4787_s29 + $0x450] sm:$0xff] %v1043_v10  ;;  %1046 = vst [vmem:[%s4787_s29 + $0x458] sm:$0xff] %v1045_v11  ;;  %v1049_v13 = vld [vmem:[%s4779_s28 + $0x8d0] sm:$0xff] }
  0x5c   : > { %1048 = vst [vmem:[%s4787_s29 + $0x460] sm:$0xff] %v1047_v12  ;;  %v1051_v14 = vld [vmem:[%s4779_s28 + $0x8e0] sm:$0xff]  ;;  %v1053_v15 = vld [vmem:[%s4779_s28 + $0x8f0] sm:$0xff]  ;;  %1050 = vst [vmem:[%s4787_s29 + $0x468] sm:$0xff] %v1049_v13 }
  0x5d   : > { %1052 = vst [vmem:[%s4787_s29 + $0x470] sm:$0xff] %v1051_v14  ;;  %1054 = vst [vmem:[%s4787_s29 + $0x478] sm:$0xff] %v1053_v15  ;;  %v1055_v16 = vld [vmem:[%s4779_s28 + $0x900] sm:$0xff]  ;;  %v1057_v17 = vld [vmem:[%s4779_s28 + $0x910] sm:$0xff] }
  0x5e   : > { %v1059_v18 = vld [vmem:[%s4779_s28 + $0x920] sm:$0xff]  ;;  %1056 = vst [vmem:[%s4787_s29 + $0x480] sm:$0xff] %v1055_v16  ;;  %1058 = vst [vmem:[%s4787_s29 + $0x488] sm:$0xff] %v1057_v17  ;;  %v1061_v19 = vld [vmem:[%s4779_s28 + $0x930] sm:$0xff] }
  0x5f   : > { %1060 = vst [vmem:[%s4787_s29 + $0x490] sm:$0xff] %v1059_v18  ;;  %v1063_v20 = vld [vmem:[%s4779_s28 + $0x940] sm:$0xff]  ;;  %v1065_v21 = vld [vmem:[%s4779_s28 + $0x950] sm:$0xff]  ;;  %1062 = vst [vmem:[%s4787_s29 + $0x498] sm:$0xff] %v1061_v19 }
  0x60   : > { %1064 = vst [vmem:[%s4787_s29 + $0x4a0] sm:$0xff] %v1063_v20  ;;  %1066 = vst [vmem:[%s4787_s29 + $0x4a8] sm:$0xff] %v1065_v21  ;;  %v1067_v22 = vld [vmem:[%s4779_s28 + $0x960] sm:$0xff]  ;;  %v1069_v23 = vld [vmem:[%s4779_s28 + $0x970] sm:$0xff] }
  0x61   : > { %v1071_v24 = vld [vmem:[%s4779_s28 + $0x980] sm:$0xff]  ;;  %1068 = vst [vmem:[%s4787_s29 + $0x4b0] sm:$0xff] %v1067_v22  ;;  %1070 = vst [vmem:[%s4787_s29 + $0x4b8] sm:$0xff] %v1069_v23  ;;  %v1073_v25 = vld [vmem:[%s4779_s28 + $0x990] sm:$0xff] }
  0x62   : > { %1072 = vst [vmem:[%s4787_s29 + $0x4c0] sm:$0xff] %v1071_v24  ;;  %v1075_v26 = vld [vmem:[%s4779_s28 + $0x9a0] sm:$0xff]  ;;  %v1077_v27 = vld [vmem:[%s4779_s28 + $0x9b0] sm:$0xff]  ;;  %1074 = vst [vmem:[%s4787_s29 + $0x4c8] sm:$0xff] %v1073_v25 }
  0x63   : > { %1076 = vst [vmem:[%s4787_s29 + $0x4d0] sm:$0xff] %v1075_v26  ;;  %1078 = vst [vmem:[%s4787_s29 + $0x4d8] sm:$0xff] %v1077_v27  ;;  %v1079_v28 = vld [vmem:[%s4779_s28 + $0x9c0] sm:$0xff]  ;;  %v1081_v29 = vld [vmem:[%s4779_s28 + $0x9d0] sm:$0xff] }
  0x64   : > { %v1083_v30 = vld [vmem:[%s4779_s28 + $0x9e0] sm:$0xff]  ;;  %1080 = vst [vmem:[%s4787_s29 + $0x4e0] sm:$0xff] %v1079_v28  ;;  %1082 = vst [vmem:[%s4787_s29 + $0x4e8] sm:$0xff] %v1081_v29  ;;  %v1085_v31 = vld [vmem:[%s4779_s28 + $0x9f0] sm:$0xff] }
  0x65   : > { %1084 = vst [vmem:[%s4787_s29 + $0x4f0] sm:$0xff] %v1083_v30  ;;  %v1087_v32 = vld [vmem:[%s4779_s28 + $0xa00] sm:$0xff]  ;;  %v1089_v33 = vld [vmem:[%s4779_s28 + $0xa10] sm:$0xff]  ;;  %1086 = vst [vmem:[%s4787_s29 + $0x4f8] sm:$0xff] %v1085_v31 }
  0x66   : > { %1088 = vst [vmem:[%s4787_s29 + $0x500] sm:$0xff] %v1087_v32  ;;  %1090 = vst [vmem:[%s4787_s29 + $0x508] sm:$0xff] %v1089_v33  ;;  %v1091_v34 = vld [vmem:[%s4779_s28 + $0xa20] sm:$0xff]  ;;  %v1093_v35 = vld [vmem:[%s4779_s28 + $0xa30] sm:$0xff] }
  0x67   : > { %v1095_v36 = vld [vmem:[%s4779_s28 + $0xa40] sm:$0xff]  ;;  %1092 = vst [vmem:[%s4787_s29 + $0x510] sm:$0xff] %v1091_v34  ;;  %1094 = vst [vmem:[%s4787_s29 + $0x518] sm:$0xff] %v1093_v35  ;;  %v1097_v37 = vld [vmem:[%s4779_s28 + $0xa50] sm:$0xff] }
  0x68   : > { %1096 = vst [vmem:[%s4787_s29 + $0x520] sm:$0xff] %v1095_v36  ;;  %v1099_v38 = vld [vmem:[%s4779_s28 + $0xa60] sm:$0xff]  ;;  %v1101_v39 = vld [vmem:[%s4779_s28 + $0xa70] sm:$0xff]  ;;  %1098 = vst [vmem:[%s4787_s29 + $0x528] sm:$0xff] %v1097_v37 }
  0x69   : > { %1100 = vst [vmem:[%s4787_s29 + $0x530] sm:$0xff] %v1099_v38  ;;  %1102 = vst [vmem:[%s4787_s29 + $0x538] sm:$0xff] %v1101_v39  ;;  %v1103_v40 = vld [vmem:[%s4779_s28 + $0xa80] sm:$0xff]  ;;  %v1105_v41 = vld [vmem:[%s4779_s28 + $0xa90] sm:$0xff] }
  0x6a   : > { %v1107_v42 = vld [vmem:[%s4779_s28 + $0xaa0] sm:$0xff]  ;;  %1104 = vst [vmem:[%s4787_s29 + $0x540] sm:$0xff] %v1103_v40  ;;  %1106 = vst [vmem:[%s4787_s29 + $0x548] sm:$0xff] %v1105_v41  ;;  %v1109_v43 = vld [vmem:[%s4779_s28 + $0xab0] sm:$0xff] }
  0x6b   : > { %1108 = vst [vmem:[%s4787_s29 + $0x550] sm:$0xff] %v1107_v42  ;;  %v1111_v44 = vld [vmem:[%s4779_s28 + $0xac0] sm:$0xff]  ;;  %v1113_v45 = vld [vmem:[%s4779_s28 + $0xad0] sm:$0xff]  ;;  %1110 = vst [vmem:[%s4787_s29 + $0x558] sm:$0xff] %v1109_v43 }
  0x6c   : > { %1112 = vst [vmem:[%s4787_s29 + $0x560] sm:$0xff] %v1111_v44  ;;  %1114 = vst [vmem:[%s4787_s29 + $0x568] sm:$0xff] %v1113_v45  ;;  %v1115_v46 = vld [vmem:[%s4779_s28 + $0xae0] sm:$0xff]  ;;  %v1117_v47 = vld [vmem:[%s4779_s28 + $0xaf0] sm:$0xff] }
  0x6d   : > { %v1119_v48 = vld [vmem:[%s4779_s28 + $0xb00] sm:$0xff]  ;;  %1116 = vst [vmem:[%s4787_s29 + $0x570] sm:$0xff] %v1115_v46  ;;  %1118 = vst [vmem:[%s4787_s29 + $0x578] sm:$0xff] %v1117_v47  ;;  %v1121_v49 = vld [vmem:[%s4779_s28 + $0xb10] sm:$0xff] }
  0x6e   : > { %1120 = vst [vmem:[%s4787_s29 + $0x580] sm:$0xff] %v1119_v48  ;;  %v1123_v50 = vld [vmem:[%s4779_s28 + $0xb20] sm:$0xff]  ;;  %v1125_v51 = vld [vmem:[%s4779_s28 + $0xb30] sm:$0xff]  ;;  %1122 = vst [vmem:[%s4787_s29 + $0x588] sm:$0xff] %v1121_v49 }
  0x6f   : > { %1124 = vst [vmem:[%s4787_s29 + $0x590] sm:$0xff] %v1123_v50  ;;  %1126 = vst [vmem:[%s4787_s29 + $0x598] sm:$0xff] %v1125_v51  ;;  %v1127_v52 = vld [vmem:[%s4779_s28 + $0xb40] sm:$0xff]  ;;  %v1129_v53 = vld [vmem:[%s4779_s28 + $0xb50] sm:$0xff] }
  0x70   : > { %v1131_v54 = vld [vmem:[%s4779_s28 + $0xb60] sm:$0xff]  ;;  %1128 = vst [vmem:[%s4787_s29 + $0x5a0] sm:$0xff] %v1127_v52  ;;  %1130 = vst [vmem:[%s4787_s29 + $0x5a8] sm:$0xff] %v1129_v53  ;;  %v1133_v55 = vld [vmem:[%s4779_s28 + $0xb70] sm:$0xff] }
  0x71   : > { %1132 = vst [vmem:[%s4787_s29 + $0x5b0] sm:$0xff] %v1131_v54  ;;  %v1135_v56 = vld [vmem:[%s4779_s28 + $0xb80] sm:$0xff]  ;;  %v1137_v57 = vld [vmem:[%s4779_s28 + $0xb90] sm:$0xff]  ;;  %1134 = vst [vmem:[%s4787_s29 + $0x5b8] sm:$0xff] %v1133_v55 }
  0x72   : > { %1136 = vst [vmem:[%s4787_s29 + $0x5c0] sm:$0xff] %v1135_v56  ;;  %1138 = vst [vmem:[%s4787_s29 + $0x5c8] sm:$0xff] %v1137_v57  ;;  %v1139_v58 = vld [vmem:[%s4779_s28 + $0xba0] sm:$0xff]  ;;  %v1141_v59 = vld [vmem:[%s4779_s28 + $0xbb0] sm:$0xff] }
  0x73   : > { %v1143_v60 = vld [vmem:[%s4779_s28 + $0xbc0] sm:$0xff]  ;;  %1140 = vst [vmem:[%s4787_s29 + $0x5d0] sm:$0xff] %v1139_v58  ;;  %1142 = vst [vmem:[%s4787_s29 + $0x5d8] sm:$0xff] %v1141_v59  ;;  %v1145_v61 = vld [vmem:[%s4779_s28 + $0xbd0] sm:$0xff] }
  0x74   : > { %1144 = vst [vmem:[%s4787_s29 + $0x5e0] sm:$0xff] %v1143_v60  ;;  %v1147_v62 = vld [vmem:[%s4779_s28 + $0xbe0] sm:$0xff]  ;;  %v1149_v63 = vld [vmem:[%s4779_s28 + $0xbf0] sm:$0xff]  ;;  %1146 = vst [vmem:[%s4787_s29 + $0x5e8] sm:$0xff] %v1145_v61 }
  0x75   : > { %1148 = vst [vmem:[%s4787_s29 + $0x5f0] sm:$0xff] %v1147_v62  ;;  %1150 = vst [vmem:[%s4787_s29 + $0x5f8] sm:$0xff] %v1149_v63  ;;  %v1151_v0 = vld [vmem:[%s4779_s28 + $0xc00] sm:$0xff]  ;;  %v1153_v1 = vld [vmem:[%s4779_s28 + $0xc10] sm:$0xff] }
  0x76   : > { %v1155_v2 = vld [vmem:[%s4779_s28 + $0xc20] sm:$0xff]  ;;  %1152 = vst [vmem:[%s4787_s29 + $0x600] sm:$0xff] %v1151_v0  ;;  %1154 = vst [vmem:[%s4787_s29 + $0x608] sm:$0xff] %v1153_v1  ;;  %v1157_v3 = vld [vmem:[%s4779_s28 + $0xc30] sm:$0xff] }
  0x77   : > { %1156 = vst [vmem:[%s4787_s29 + $0x610] sm:$0xff] %v1155_v2  ;;  %v1159_v4 = vld [vmem:[%s4779_s28 + $0xc40] sm:$0xff]  ;;  %v1161_v5 = vld [vmem:[%s4779_s28 + $0xc50] sm:$0xff]  ;;  %1158 = vst [vmem:[%s4787_s29 + $0x618] sm:$0xff] %v1157_v3 }
  0x78   : > { %1160 = vst [vmem:[%s4787_s29 + $0x620] sm:$0xff] %v1159_v4  ;;  %1162 = vst [vmem:[%s4787_s29 + $0x628] sm:$0xff] %v1161_v5  ;;  %v1163_v6 = vld [vmem:[%s4779_s28 + $0xc60] sm:$0xff]  ;;  %v1165_v7 = vld [vmem:[%s4779_s28 + $0xc70] sm:$0xff] }
  0x79   : > { %v1167_v8 = vld [vmem:[%s4779_s28 + $0xc80] sm:$0xff]  ;;  %1164 = vst [vmem:[%s4787_s29 + $0x630] sm:$0xff] %v1163_v6  ;;  %1166 = vst [vmem:[%s4787_s29 + $0x638] sm:$0xff] %v1165_v7  ;;  %v1169_v9 = vld [vmem:[%s4779_s28 + $0xc90] sm:$0xff] }
  0x7a   : > { %1168 = vst [vmem:[%s4787_s29 + $0x640] sm:$0xff] %v1167_v8  ;;  %v1171_v10 = vld [vmem:[%s4779_s28 + $0xca0] sm:$0xff]  ;;  %v1173_v11 = vld [vmem:[%s4779_s28 + $0xcb0] sm:$0xff]  ;;  %1170 = vst [vmem:[%s4787_s29 + $0x648] sm:$0xff] %v1169_v9 }
  0x7b   : > { %1172 = vst [vmem:[%s4787_s29 + $0x650] sm:$0xff] %v1171_v10  ;;  %1174 = vst [vmem:[%s4787_s29 + $0x658] sm:$0xff] %v1173_v11  ;;  %v1175_v12 = vld [vmem:[%s4779_s28 + $0xcc0] sm:$0xff]  ;;  %v1177_v13 = vld [vmem:[%s4779_s28 + $0xcd0] sm:$0xff] }
  0x7c   : > { %v1179_v14 = vld [vmem:[%s4779_s28 + $0xce0] sm:$0xff]  ;;  %1176 = vst [vmem:[%s4787_s29 + $0x660] sm:$0xff] %v1175_v12  ;;  %1178 = vst [vmem:[%s4787_s29 + $0x668] sm:$0xff] %v1177_v13  ;;  %v1181_v15 = vld [vmem:[%s4779_s28 + $0xcf0] sm:$0xff] }
  0x7d   : > { %1180 = vst [vmem:[%s4787_s29 + $0x670] sm:$0xff] %v1179_v14  ;;  %v1183_v16 = vld [vmem:[%s4779_s28 + $0xd00] sm:$0xff]  ;;  %v1185_v17 = vld [vmem:[%s4779_s28 + $0xd10] sm:$0xff]  ;;  %1182 = vst [vmem:[%s4787_s29 + $0x678] sm:$0xff] %v1181_v15 }
  0x7e   : > { %1184 = vst [vmem:[%s4787_s29 + $0x680] sm:$0xff] %v1183_v16  ;;  %1186 = vst [vmem:[%s4787_s29 + $0x688] sm:$0xff] %v1185_v17  ;;  %v1187_v18 = vld [vmem:[%s4779_s28 + $0xd20] sm:$0xff]  ;;  %v1189_v19 = vld [vmem:[%s4779_s28 + $0xd30] sm:$0xff] }
  0x7f   : > { %v1191_v20 = vld [vmem:[%s4779_s28 + $0xd40] sm:$0xff]  ;;  %1188 = vst [vmem:[%s4787_s29 + $0x690] sm:$0xff] %v1187_v18  ;;  %1190 = vst [vmem:[%s4787_s29 + $0x698] sm:$0xff] %v1189_v19  ;;  %v1193_v21 = vld [vmem:[%s4779_s28 + $0xd50] sm:$0xff] }
  0x80   : > { %1192 = vst [vmem:[%s4787_s29 + $0x6a0] sm:$0xff] %v1191_v20  ;;  %v1195_v22 = vld [vmem:[%s4779_s28 + $0xd60] sm:$0xff]  ;;  %v1197_v23 = vld [vmem:[%s4779_s28 + $0xd70] sm:$0xff]  ;;  %1194 = vst [vmem:[%s4787_s29 + $0x6a8] sm:$0xff] %v1193_v21 }
  0x81   : > { %1196 = vst [vmem:[%s4787_s29 + $0x6b0] sm:$0xff] %v1195_v22  ;;  %1198 = vst [vmem:[%s4787_s29 + $0x6b8] sm:$0xff] %v1197_v23  ;;  %v1199_v24 = vld [vmem:[%s4779_s28 + $0xd80] sm:$0xff]  ;;  %v1201_v25 = vld [vmem:[%s4779_s28 + $0xd90] sm:$0xff] }
  0x82   : > { %v1203_v26 = vld [vmem:[%s4779_s28 + $0xda0] sm:$0xff]  ;;  %1200 = vst [vmem:[%s4787_s29 + $0x6c0] sm:$0xff] %v1199_v24  ;;  %1202 = vst [vmem:[%s4787_s29 + $0x6c8] sm:$0xff] %v1201_v25  ;;  %v1205_v27 = vld [vmem:[%s4779_s28 + $0xdb0] sm:$0xff] }
  0x83   : > { %1204 = vst [vmem:[%s4787_s29 + $0x6d0] sm:$0xff] %v1203_v26  ;;  %v1207_v28 = vld [vmem:[%s4779_s28 + $0xdc0] sm:$0xff]  ;;  %v1209_v29 = vld [vmem:[%s4779_s28 + $0xdd0] sm:$0xff]  ;;  %1206 = vst [vmem:[%s4787_s29 + $0x6d8] sm:$0xff] %v1205_v27 }
  0x84   : > { %1208 = vst [vmem:[%s4787_s29 + $0x6e0] sm:$0xff] %v1207_v28  ;;  %1210 = vst [vmem:[%s4787_s29 + $0x6e8] sm:$0xff] %v1209_v29  ;;  %v1211_v30 = vld [vmem:[%s4779_s28 + $0xde0] sm:$0xff]  ;;  %v1213_v31 = vld [vmem:[%s4779_s28 + $0xdf0] sm:$0xff] }
  0x85   : > { %v1215_v32 = vld [vmem:[%s4779_s28 + $0xe00] sm:$0xff]  ;;  %1212 = vst [vmem:[%s4787_s29 + $0x6f0] sm:$0xff] %v1211_v30  ;;  %1214 = vst [vmem:[%s4787_s29 + $0x6f8] sm:$0xff] %v1213_v31  ;;  %v1217_v33 = vld [vmem:[%s4779_s28 + $0xe10] sm:$0xff] }
  0x86   : > { %1216 = vst [vmem:[%s4787_s29 + $0x700] sm:$0xff] %v1215_v32  ;;  %v1219_v34 = vld [vmem:[%s4779_s28 + $0xe20] sm:$0xff]  ;;  %v1221_v35 = vld [vmem:[%s4779_s28 + $0xe30] sm:$0xff]  ;;  %1218 = vst [vmem:[%s4787_s29 + $0x708] sm:$0xff] %v1217_v33 }
  0x87   : > { %1220 = vst [vmem:[%s4787_s29 + $0x710] sm:$0xff] %v1219_v34  ;;  %1222 = vst [vmem:[%s4787_s29 + $0x718] sm:$0xff] %v1221_v35  ;;  %v1223_v36 = vld [vmem:[%s4779_s28 + $0xe40] sm:$0xff]  ;;  %v1225_v37 = vld [vmem:[%s4779_s28 + $0xe50] sm:$0xff] }
  0x88   : > { %v1227_v38 = vld [vmem:[%s4779_s28 + $0xe60] sm:$0xff]  ;;  %1224 = vst [vmem:[%s4787_s29 + $0x720] sm:$0xff] %v1223_v36  ;;  %1226 = vst [vmem:[%s4787_s29 + $0x728] sm:$0xff] %v1225_v37  ;;  %v1229_v39 = vld [vmem:[%s4779_s28 + $0xe70] sm:$0xff] }
  0x89   : > { %1228 = vst [vmem:[%s4787_s29 + $0x730] sm:$0xff] %v1227_v38  ;;  %v1231_v40 = vld [vmem:[%s4779_s28 + $0xe80] sm:$0xff]  ;;  %v1233_v41 = vld [vmem:[%s4779_s28 + $0xe90] sm:$0xff]  ;;  %1230 = vst [vmem:[%s4787_s29 + $0x738] sm:$0xff] %v1229_v39 }
  0x8a   : > { %1232 = vst [vmem:[%s4787_s29 + $0x740] sm:$0xff] %v1231_v40  ;;  %1234 = vst [vmem:[%s4787_s29 + $0x748] sm:$0xff] %v1233_v41  ;;  %v1235_v42 = vld [vmem:[%s4779_s28 + $0xea0] sm:$0xff]  ;;  %v1237_v43 = vld [vmem:[%s4779_s28 + $0xeb0] sm:$0xff] }
  0x8b   : > { %v1239_v44 = vld [vmem:[%s4779_s28 + $0xec0] sm:$0xff]  ;;  %1236 = vst [vmem:[%s4787_s29 + $0x750] sm:$0xff] %v1235_v42  ;;  %1238 = vst [vmem:[%s4787_s29 + $0x758] sm:$0xff] %v1237_v43  ;;  %v1241_v45 = vld [vmem:[%s4779_s28 + $0xed0] sm:$0xff] }
  0x8c   : > { %1240 = vst [vmem:[%s4787_s29 + $0x760] sm:$0xff] %v1239_v44  ;;  %v1243_v46 = vld [vmem:[%s4779_s28 + $0xee0] sm:$0xff]  ;;  %v1245_v47 = vld [vmem:[%s4779_s28 + $0xef0] sm:$0xff]  ;;  %1242 = vst [vmem:[%s4787_s29 + $0x768] sm:$0xff] %v1241_v45 }
  0x8d   : > { %1244 = vst [vmem:[%s4787_s29 + $0x770] sm:$0xff] %v1243_v46  ;;  %1246 = vst [vmem:[%s4787_s29 + $0x778] sm:$0xff] %v1245_v47  ;;  %v1247_v48 = vld [vmem:[%s4779_s28 + $0xf00] sm:$0xff]  ;;  %v1249_v49 = vld [vmem:[%s4779_s28 + $0xf10] sm:$0xff] }
  0x8e   : > { %v1251_v50 = vld [vmem:[%s4779_s28 + $0xf20] sm:$0xff]  ;;  %1248 = vst [vmem:[%s4787_s29 + $0x780] sm:$0xff] %v1247_v48  ;;  %1250 = vst [vmem:[%s4787_s29 + $0x788] sm:$0xff] %v1249_v49  ;;  %v1253_v51 = vld [vmem:[%s4779_s28 + $0xf30] sm:$0xff] }
  0x8f   : > { %1252 = vst [vmem:[%s4787_s29 + $0x790] sm:$0xff] %v1251_v50  ;;  %v1255_v52 = vld [vmem:[%s4779_s28 + $0xf40] sm:$0xff]  ;;  %v1257_v53 = vld [vmem:[%s4779_s28 + $0xf50] sm:$0xff]  ;;  %1254 = vst [vmem:[%s4787_s29 + $0x798] sm:$0xff] %v1253_v51 }
  0x90   : > { %1256 = vst [vmem:[%s4787_s29 + $0x7a0] sm:$0xff] %v1255_v52  ;;  %1258 = vst [vmem:[%s4787_s29 + $0x7a8] sm:$0xff] %v1257_v53  ;;  %v1259_v54 = vld [vmem:[%s4779_s28 + $0xf60] sm:$0xff]  ;;  %v1261_v55 = vld [vmem:[%s4779_s28 + $0xf70] sm:$0xff] }
  0x91   : > { %v1263_v56 = vld [vmem:[%s4779_s28 + $0xf80] sm:$0xff]  ;;  %1260 = vst [vmem:[%s4787_s29 + $0x7b0] sm:$0xff] %v1259_v54  ;;  %1262 = vst [vmem:[%s4787_s29 + $0x7b8] sm:$0xff] %v1261_v55  ;;  %v1265_v57 = vld [vmem:[%s4779_s28 + $0xf90] sm:$0xff] }
  0x92   : > { %1264 = vst [vmem:[%s4787_s29 + $0x7c0] sm:$0xff] %v1263_v56  ;;  %v1267_v58 = vld [vmem:[%s4779_s28 + $0xfa0] sm:$0xff]  ;;  %v1269_v59 = vld [vmem:[%s4779_s28 + $0xfb0] sm:$0xff]  ;;  %1266 = vst [vmem:[%s4787_s29 + $0x7c8] sm:$0xff] %v1265_v57 }
  0x93   : > { %1268 = vst [vmem:[%s4787_s29 + $0x7d0] sm:$0xff] %v1267_v58  ;;  %1270 = vst [vmem:[%s4787_s29 + $0x7d8] sm:$0xff] %v1269_v59  ;;  %v1271_v60 = vld [vmem:[%s4779_s28 + $0xfc0] sm:$0xff]  ;;  %v1273_v61 = vld [vmem:[%s4779_s28 + $0xfd0] sm:$0xff] }
  0x94   : > { %v1275_v62 = vld [vmem:[%s4779_s28 + $0xfe0] sm:$0xff]  ;;  %1272 = vst [vmem:[%s4787_s29 + $0x7e0] sm:$0xff] %v1271_v60  ;;  %1274 = vst [vmem:[%s4787_s29 + $0x7e8] sm:$0xff] %v1273_v61  ;;  %v1277_v63 = vld [vmem:[%s4779_s28 + $0xff0] sm:$0xff] }
  0x95   : > { %1276 = vst [vmem:[%s4787_s29 + $0x7f0] sm:$0xff] %v1275_v62  ;;  %v1279_v0 = vld [vmem:[%s4779_s28 + $0x1000] sm:$0xff]  ;;  %v1281_v1 = vld [vmem:[%s4779_s28 + $0x1010] sm:$0xff]  ;;  %1278 = vst [vmem:[%s4787_s29 + $0x7f8] sm:$0xff] %v1277_v63 }
  0x96   : > { %1280 = vst [vmem:[%s4787_s29 + $0x800] sm:$0xff] %v1279_v0  ;;  %1282 = vst [vmem:[%s4787_s29 + $0x808] sm:$0xff] %v1281_v1  ;;  %v1283_v2 = vld [vmem:[%s4779_s28 + $0x1020] sm:$0xff]  ;;  %v1285_v3 = vld [vmem:[%s4779_s28 + $0x1030] sm:$0xff] }
  0x97   : > { %v1287_v4 = vld [vmem:[%s4779_s28 + $0x1040] sm:$0xff]  ;;  %1284 = vst [vmem:[%s4787_s29 + $0x810] sm:$0xff] %v1283_v2  ;;  %1286 = vst [vmem:[%s4787_s29 + $0x818] sm:$0xff] %v1285_v3  ;;  %v1289_v5 = vld [vmem:[%s4779_s28 + $0x1050] sm:$0xff] }
  0x98   : > { %1288 = vst [vmem:[%s4787_s29 + $0x820] sm:$0xff] %v1287_v4  ;;  %v1291_v6 = vld [vmem:[%s4779_s28 + $0x1060] sm:$0xff]  ;;  %v1293_v7 = vld [vmem:[%s4779_s28 + $0x1070] sm:$0xff]  ;;  %1290 = vst [vmem:[%s4787_s29 + $0x828] sm:$0xff] %v1289_v5 }
  0x99   : > { %1292 = vst [vmem:[%s4787_s29 + $0x830] sm:$0xff] %v1291_v6  ;;  %1294 = vst [vmem:[%s4787_s29 + $0x838] sm:$0xff] %v1293_v7  ;;  %v1295_v8 = vld [vmem:[%s4779_s28 + $0x1080] sm:$0xff]  ;;  %v1297_v9 = vld [vmem:[%s4779_s28 + $0x1090] sm:$0xff] }
  0x9a   : > { %v1299_v10 = vld [vmem:[%s4779_s28 + $0x10a0] sm:$0xff]  ;;  %1296 = vst [vmem:[%s4787_s29 + $0x840] sm:$0xff] %v1295_v8  ;;  %1298 = vst [vmem:[%s4787_s29 + $0x848] sm:$0xff] %v1297_v9  ;;  %v1301_v11 = vld [vmem:[%s4779_s28 + $0x10b0] sm:$0xff] }
  0x9b   : > { %1300 = vst [vmem:[%s4787_s29 + $0x850] sm:$0xff] %v1299_v10  ;;  %v1303_v12 = vld [vmem:[%s4779_s28 + $0x10c0] sm:$0xff]  ;;  %v1305_v13 = vld [vmem:[%s4779_s28 + $0x10d0] sm:$0xff]  ;;  %1302 = vst [vmem:[%s4787_s29 + $0x858] sm:$0xff] %v1301_v11 }
  0x9c   : > { %1304 = vst [vmem:[%s4787_s29 + $0x860] sm:$0xff] %v1303_v12  ;;  %1306 = vst [vmem:[%s4787_s29 + $0x868] sm:$0xff] %v1305_v13  ;;  %v1307_v14 = vld [vmem:[%s4779_s28 + $0x10e0] sm:$0xff]  ;;  %v1309_v15 = vld [vmem:[%s4779_s28 + $0x10f0] sm:$0xff] }
  0x9d   : > { %v1311_v16 = vld [vmem:[%s4779_s28 + $0x1100] sm:$0xff]  ;;  %1308 = vst [vmem:[%s4787_s29 + $0x870] sm:$0xff] %v1307_v14  ;;  %1310 = vst [vmem:[%s4787_s29 + $0x878] sm:$0xff] %v1309_v15  ;;  %v1313_v17 = vld [vmem:[%s4779_s28 + $0x1110] sm:$0xff] }
  0x9e   : > { %1312 = vst [vmem:[%s4787_s29 + $0x880] sm:$0xff] %v1311_v16  ;;  %v1315_v18 = vld [vmem:[%s4779_s28 + $0x1120] sm:$0xff]  ;;  %v1317_v19 = vld [vmem:[%s4779_s28 + $0x1130] sm:$0xff]  ;;  %1314 = vst [vmem:[%s4787_s29 + $0x888] sm:$0xff] %v1313_v17 }
  0x9f   : > { %1316 = vst [vmem:[%s4787_s29 + $0x890] sm:$0xff] %v1315_v18  ;;  %1318 = vst [vmem:[%s4787_s29 + $0x898] sm:$0xff] %v1317_v19  ;;  %v1319_v20 = vld [vmem:[%s4779_s28 + $0x1140] sm:$0xff]  ;;  %v1321_v21 = vld [vmem:[%s4779_s28 + $0x1150] sm:$0xff] }
  0xa0   : > { %v1323_v22 = vld [vmem:[%s4779_s28 + $0x1160] sm:$0xff]  ;;  %1320 = vst [vmem:[%s4787_s29 + $0x8a0] sm:$0xff] %v1319_v20  ;;  %1322 = vst [vmem:[%s4787_s29 + $0x8a8] sm:$0xff] %v1321_v21  ;;  %v1325_v23 = vld [vmem:[%s4779_s28 + $0x1170] sm:$0xff] }
  0xa1   : > { %1324 = vst [vmem:[%s4787_s29 + $0x8b0] sm:$0xff] %v1323_v22  ;;  %v1327_v24 = vld [vmem:[%s4779_s28 + $0x1180] sm:$0xff]  ;;  %v1329_v25 = vld [vmem:[%s4779_s28 + $0x1190] sm:$0xff]  ;;  %1326 = vst [vmem:[%s4787_s29 + $0x8b8] sm:$0xff] %v1325_v23 }
  0xa2   : > { %1328 = vst [vmem:[%s4787_s29 + $0x8c0] sm:$0xff] %v1327_v24  ;;  %1330 = vst [vmem:[%s4787_s29 + $0x8c8] sm:$0xff] %v1329_v25  ;;  %v1331_v26 = vld [vmem:[%s4779_s28 + $0x11a0] sm:$0xff]  ;;  %v1333_v27 = vld [vmem:[%s4779_s28 + $0x11b0] sm:$0xff] }
  0xa3   : > { %v1335_v28 = vld [vmem:[%s4779_s28 + $0x11c0] sm:$0xff]  ;;  %1332 = vst [vmem:[%s4787_s29 + $0x8d0] sm:$0xff] %v1331_v26  ;;  %1334 = vst [vmem:[%s4787_s29 + $0x8d8] sm:$0xff] %v1333_v27  ;;  %v1337_v29 = vld [vmem:[%s4779_s28 + $0x11d0] sm:$0xff] }
  0xa4   : > { %1336 = vst [vmem:[%s4787_s29 + $0x8e0] sm:$0xff] %v1335_v28  ;;  %v1339_v30 = vld [vmem:[%s4779_s28 + $0x11e0] sm:$0xff]  ;;  %v1341_v31 = vld [vmem:[%s4779_s28 + $0x11f0] sm:$0xff]  ;;  %1338 = vst [vmem:[%s4787_s29 + $0x8e8] sm:$0xff] %v1337_v29 }
  0xa5   : > { %1340 = vst [vmem:[%s4787_s29 + $0x8f0] sm:$0xff] %v1339_v30  ;;  %1342 = vst [vmem:[%s4787_s29 + $0x8f8] sm:$0xff] %v1341_v31 }
  0xa6 PF: > { %p3814_p8 = scmp.ge.s32.totalorder %s4709_s16, 1  ;;  %p1355_p9 = scmp.lt.s32.totalorder %s4709_s16, 3 }
  0xa8   : > { %p1356_p10 = pnand %p3814_p8, %p1355_p9 }
  0xa9   : > { %s1362_s30 = sand.u32 (!%p1356_p10), 1, %s4693_s12   ;;  %v4310_v32 = vld [vmem:[%s5735_s0 + $0x4] ss:$72 sps:$4 sm:$0xff] (!%p1356_p10)   ;;  %s3816_s7 = sshll.u32 (!%p1356_p10), %s4701_s14, 1 }
  0xaa   : > { %1359 = sbr.rel (%p1356_p10) target bundleno = 728 (0x2d8), region = 66  ;;  %v4316_v33 = vld [vmem:[%s5735_s0 + $0x24] ss:$72 sps:$4 sm:$0xff] (!%p1356_p10)   ;;  %3289 = vmatprep.mubr.bf16.mxu1 (!%p1356_p10), %v4310_v32  ;;  %p1403_p11 = scmp.lt.s32.totalorder (!%p1356_p10), %s3816_s7, 3 }
  0xab   : > { %s4171_s4 = smul.u32 (!%p1356_p10), 2304, %s1362_s30  ;;  %3461 = vmatprep.mubr.bf16.mxu0 (!%p1356_p10), %v4316_v33  ;;  %s3815_s11 = sshll.u32 (!%p1356_p10), %s1362_s30, 4 }
  0xac   : > { %s1393_s18 = scalar_lea.vmem (!%p1356_p10), [#allocation3], %s3815_s11 }
  0xad   : > { %s5370_s9 = scalar_lea.vmem (!%p1356_p10), [#allocation2], %s4171_s4 }
  0xae   : > { %v4212_v34 = vld [vmem:[%s5370_s9 + $0x4] ss:$8 sps:$4 sm:$0xff] (!%p1356_p10)   ;;  %v4216_v36 = vld [vmem:[%s5370_s9] ss:$8 sps:$4 sm:$0xff] (!%p1356_p10)   ;;  %v4218_v38 = vld [vmem:[%s5370_s9 + $0x14] ss:$8 sps:$4 sm:$0xff] (!%p1356_p10)  }
  0xaf   : > { %v4214_v35 = vld [vmem:[%s5370_s9 + $0x404] ss:$8 sps:$4 sm:$0xff] (!%p1356_p10)   ;;  %3257 = vmatprep.subr.bf16.mxu1 (!%p1356_p10), %v4212_v34  ;;  %v4217_v37 = vld [vmem:[%s5370_s9 + $0x400] ss:$8 sps:$4 sm:$0xff] (!%p1356_p10)   ;;  %v4220_v39 = vld [vmem:[%s5370_s9 + $0x414] ss:$8 sps:$4 sm:$0xff] (!%p1356_p10)  }
  0xb0   : > { %3429 = vmatprep.subr.bf16.mxu0 (!%p1356_p10), %v4214_v35  ;;  %3258 = vmatpush1.bf16.msra.mxu1 (!%p1356_p10), %v4216_v36  ;;  %v4222_v40 = vld [vmem:[%s5370_s9 + $0x10] ss:$8 sps:$4 sm:$0xff] (!%p1356_p10)   ;;  %v4224_v42 = vld [vmem:[%s5370_s9 + $0x24] ss:$8 sps:$4 sm:$0xff] (!%p1356_p10)   ;;  %v4228_v44 = vld [vmem:[%s5370_s9 + $0x20] ss:$8 sps:$4 sm:$0xff] (!%p1356_p10)  }
  0xb1   : > { %3430 = vmatpush1.bf16.msra.mxu0 %v4217_v37  ;;  %3259 = vmatprep.subr.bf16.mxu1 %v4218_v38  ;;  %v4223_v41 = vld [vmem:[%s5370_s9 + $0x410] ss:$8 sps:$4 sm:$0xff]   ;;  %v4226_v43 = vld [vmem:[%s5370_s9 + $0x424] ss:$8 sps:$4 sm:$0xff]   ;;  %v4229_v45 = vld [vmem:[%s5370_s9 + $0x420] ss:$8 sps:$4 sm:$0xff]  }
  0xb2   : > { %3431 = vmatprep.subr.bf16.mxu0 %v4220_v39  ;;  %v4230_v46 = vld [vmem:[%s5370_s9 + $0x34] ss:$8 sps:$4 sm:$0xff]   ;;  %v4234_v48 = vld [vmem:[%s5370_s9 + $0x30] ss:$8 sps:$4 sm:$0xff]   ;;  %v4236_v50 = vld [vmem:[%s5370_s9 + $0x44] ss:$8 sps:$4 sm:$0xff]  }
  0xb3   : > { %v4232_v47 = vld [vmem:[%s5370_s9 + $0x434] ss:$8 sps:$4 sm:$0xff]   ;;  %v4235_v49 = vld [vmem:[%s5370_s9 + $0x430] ss:$8 sps:$4 sm:$0xff]   ;;  %v4238_v51 = vld [vmem:[%s5370_s9 + $0x444] ss:$8 sps:$4 sm:$0xff]  }
  0xb4   : > { %3260 = vmatpush1.bf16.msra.mxu1 %v4222_v40  ;;  %v4240_v52 = vld [vmem:[%s5370_s9 + $0x40] ss:$8 sps:$4 sm:$0xff]   ;;  %v4242_v54 = vld [vmem:[%s5370_s9 + $0x54] ss:$8 sps:$4 sm:$0xff]   ;;  %v4246_v56 = vld [vmem:[%s5370_s9 + $0x50] ss:$8 sps:$4 sm:$0xff]  }
  0xb5   : > { %3432 = vmatpush1.bf16.msra.mxu0 %v4223_v41  ;;  %3261 = vmatprep.subr.bf16.mxu1 %v4224_v42  ;;  %v4241_v53 = vld [vmem:[%s5370_s9 + $0x440] ss:$8 sps:$4 sm:$0xff]   ;;  %v4244_v55 = vld [vmem:[%s5370_s9 + $0x454] ss:$8 sps:$4 sm:$0xff]   ;;  %v4247_v57 = vld [vmem:[%s5370_s9 + $0x450] ss:$8 sps:$4 sm:$0xff]  }
  0xb6   : > { %3433 = vmatprep.subr.bf16.mxu0 %v4226_v43  ;;  %v4248_v58 = vld [vmem:[%s5370_s9 + $0x64] ss:$8 sps:$4 sm:$0xff]   ;;  %v4252_v60 = vld [vmem:[%s5370_s9 + $0x60] ss:$8 sps:$4 sm:$0xff]   ;;  %v4254_v62 = vld [vmem:[%s5370_s9 + $0x74] ss:$8 sps:$4 sm:$0xff]  }
  0xb7   : > { %v4250_v59 = vld [vmem:[%s5370_s9 + $0x464] ss:$8 sps:$4 sm:$0xff]   ;;  %v4253_v61 = vld [vmem:[%s5370_s9 + $0x460] ss:$8 sps:$4 sm:$0xff]   ;;  %v4256_v63 = vld [vmem:[%s5370_s9 + $0x474] ss:$8 sps:$4 sm:$0xff]  }
  0xb8   : > { %3262 = vmatpush1.bf16.msra.mxu1 %v4228_v44  ;;  %v4258_v0 = vld [vmem:[%s5370_s9 + $0x70] ss:$8 sps:$4 sm:$0xff]   ;;  %v4260_v2 = vld [vmem:[%s5370_s9 + $0x84] ss:$8 sps:$4 sm:$0xff]   ;;  %v4264_v4 = vld [vmem:[%s5370_s9 + $0x80] ss:$8 sps:$4 sm:$0xff]  }
  0xb9   : > { %3434 = vmatpush1.bf16.msra.mxu0 %v4229_v45  ;;  %3263 = vmatprep.subr.bf16.mxu1 %v4230_v46  ;;  %v4259_v1 = vld [vmem:[%s5370_s9 + $0x470] ss:$8 sps:$4 sm:$0xff]   ;;  %v4262_v3 = vld [vmem:[%s5370_s9 + $0x484] ss:$8 sps:$4 sm:$0xff]   ;;  %v4265_v5 = vld [vmem:[%s5370_s9 + $0x480] ss:$8 sps:$4 sm:$0xff]  }
  0xba   : > { %3435 = vmatprep.subr.bf16.mxu0 %v4232_v47  ;;  %v4266_v6 = vld [vmem:[%s5370_s9 + $0x94] ss:$8 sps:$4 sm:$0xff]   ;;  %v4270_v8 = vld [vmem:[%s5370_s9 + $0x90] ss:$8 sps:$4 sm:$0xff]   ;;  %v4272_v10 = vld [vmem:[%s5370_s9 + $0xa4] ss:$8 sps:$4 sm:$0xff]  }
  0xbb   : > { %v4268_v7 = vld [vmem:[%s5370_s9 + $0x494] ss:$8 sps:$4 sm:$0xff]   ;;  %v4271_v9 = vld [vmem:[%s5370_s9 + $0x490] ss:$8 sps:$4 sm:$0xff]   ;;  %v4274_v11 = vld [vmem:[%s5370_s9 + $0x4a4] ss:$8 sps:$4 sm:$0xff]  }
  0xbc   : > { %3264 = vmatpush1.bf16.msra.mxu1 %v4234_v48  ;;  %v4276_v12 = vld [vmem:[%s5370_s9 + $0xa0] ss:$8 sps:$4 sm:$0xff]   ;;  %v4278_v14 = vld [vmem:[%s5370_s9 + $0xb4] ss:$8 sps:$4 sm:$0xff]   ;;  %v4282_v16 = vld [vmem:[%s5370_s9 + $0xb0] ss:$8 sps:$4 sm:$0xff]  }
  0xbd   : > { %3436 = vmatpush1.bf16.msra.mxu0 %v4235_v49  ;;  %3265 = vmatprep.subr.bf16.mxu1 %v4236_v50  ;;  %v4277_v13 = vld [vmem:[%s5370_s9 + $0x4a0] ss:$8 sps:$4 sm:$0xff]   ;;  %v4280_v15 = vld [vmem:[%s5370_s9 + $0x4b4] ss:$8 sps:$4 sm:$0xff]   ;;  %v4283_v17 = vld [vmem:[%s5370_s9 + $0x4b0] ss:$8 sps:$4 sm:$0xff]  }
  0xbe   : > { %3437 = vmatprep.subr.bf16.mxu0 %v4238_v51  ;;  %v4284_v18 = vld [vmem:[%s5370_s9 + $0xc4] ss:$8 sps:$4 sm:$0xff]   ;;  %v4288_v20 = vld [vmem:[%s5370_s9 + $0xc0] ss:$8 sps:$4 sm:$0xff]   ;;  %v4290_v22 = vld [vmem:[%s5370_s9 + $0xd4] ss:$8 sps:$4 sm:$0xff]  }
  0xbf   : > { %v4286_v19 = vld [vmem:[%s5370_s9 + $0x4c4] ss:$8 sps:$4 sm:$0xff]   ;;  %v4289_v21 = vld [vmem:[%s5370_s9 + $0x4c0] ss:$8 sps:$4 sm:$0xff]   ;;  %v4292_v23 = vld [vmem:[%s5370_s9 + $0x4d4] ss:$8 sps:$4 sm:$0xff]  }
  0xc0   : > { %3266 = vmatpush1.bf16.msra.mxu1 %v4240_v52  ;;  %v4294_v24 = vld [vmem:[%s5370_s9 + $0xd0] ss:$8 sps:$4 sm:$0xff]   ;;  %v4296_v26 = vld [vmem:[%s5370_s9 + $0xe4] ss:$8 sps:$4 sm:$0xff]   ;;  %v4300_v28 = vld [vmem:[%s5370_s9 + $0xe0] ss:$8 sps:$4 sm:$0xff]  }
  0xc1   : > { %3438 = vmatpush1.bf16.msra.mxu0 %v4241_v53  ;;  %3267 = vmatprep.subr.bf16.mxu1 %v4242_v54  ;;  %v4295_v25 = vld [vmem:[%s5370_s9 + $0x4d0] ss:$8 sps:$4 sm:$0xff]   ;;  %v4298_v27 = vld [vmem:[%s5370_s9 + $0x4e4] ss:$8 sps:$4 sm:$0xff]   ;;  %v4301_v29 = vld [vmem:[%s5370_s9 + $0x4e0] ss:$8 sps:$4 sm:$0xff]  }
  0xc2   : > { %3439 = vmatprep.subr.bf16.mxu0 %v4244_v55  ;;  %v4302_v30 = vld [vmem:[%s5370_s9 + $0xf4] ss:$8 sps:$4 sm:$0xff]   ;;  %v4306_v32 = vld [vmem:[%s5370_s9 + $0xf0] ss:$8 sps:$4 sm:$0xff]   ;;  %v4313_v34 = vld [vmem:[%s5370_s9 + $0x104] ss:$8 sps:$4 sm:$0xff]  }
  0xc3   : > { %v4304_v31 = vld [vmem:[%s5370_s9 + $0x4f4] ss:$8 sps:$4 sm:$0xff]   ;;  %v4307_v33 = vld [vmem:[%s5370_s9 + $0x4f0] ss:$8 sps:$4 sm:$0xff]   ;;  %v4319_v35 = vld [vmem:[%s5370_s9 + $0x504] ss:$8 sps:$4 sm:$0xff]  }
  0xc4   : > { %3268 = vmatpush1.bf16.msra.mxu1 %v4246_v56  ;;  %v4308_v36 = vld [vmem:[%s5735_s0] ss:$72 sps:$4 sm:$0xff]   ;;  %v4322_v40 = vld [vmem:[%s5370_s9 + $0x114] ss:$8 sps:$4 sm:$0xff]   ;;  %v4320_v42 = vld [vmem:[%s5370_s9 + $0x110] ss:$8 sps:$4 sm:$0xff]  }
  0xc5   : > { %3440 = vmatpush1.bf16.msra.mxu0 %v4247_v57  ;;  %3269 = vmatprep.subr.bf16.mxu1 %v4248_v58  ;;  %v4314_v37 = vld [vmem:[%s5735_s0 + $0x20] ss:$72 sps:$4 sm:$0xff]   ;;  %v4325_v41 = vld [vmem:[%s5370_s9 + $0x514] ss:$8 sps:$4 sm:$0xff]   ;;  %v4323_v43 = vld [vmem:[%s5370_s9 + $0x510] ss:$8 sps:$4 sm:$0xff]  }
  0xc6   : > { %3441 = vmatprep.subr.bf16.mxu0 %v4250_v59  ;;  %v4311_v38 = vld [vmem:[%s5370_s9 + $0x100] ss:$8 sps:$4 sm:$0xff]   ;;  %v4328_v44 = vld [vmem:[%s5370_s9 + $0x124] ss:$8 sps:$4 sm:$0xff]   ;;  %v4334_v48 = vld [vmem:[%s5370_s9 + $0x134] ss:$8 sps:$4 sm:$0xff]  }
  0xc7   : > { %v4317_v39 = vld [vmem:[%s5370_s9 + $0x500] ss:$8 sps:$4 sm:$0xff]   ;;  %v4331_v45 = vld [vmem:[%s5370_s9 + $0x524] ss:$8 sps:$4 sm:$0xff]   ;;  %v4337_v49 = vld [vmem:[%s5370_s9 + $0x534] ss:$8 sps:$4 sm:$0xff]  }
  0xc8   : > { %3270 = vmatpush1.bf16.msra.mxu1 %v4252_v60  ;;  %v4326_v46 = vld [vmem:[%s5370_s9 + $0x120] ss:$8 sps:$4 sm:$0xff]   ;;  %v4332_v50 = vld [vmem:[%s5370_s9 + $0x130] ss:$8 sps:$4 sm:$0xff]   ;;  %v4340_v52 = vld [vmem:[%s5370_s9 + $0x144] ss:$8 sps:$4 sm:$0xff]  }
  0xc9   : > { %3442 = vmatpush1.bf16.msra.mxu0 %v4253_v61  ;;  %3271 = vmatprep.subr.bf16.mxu1 %v4254_v62  ;;  %v4329_v47 = vld [vmem:[%s5370_s9 + $0x520] ss:$8 sps:$4 sm:$0xff]   ;;  %v4335_v51 = vld [vmem:[%s5370_s9 + $0x530] ss:$8 sps:$4 sm:$0xff]   ;;  %v4343_v53 = vld [vmem:[%s5370_s9 + $0x544] ss:$8 sps:$4 sm:$0xff]  }
  0xca   : > { %3443 = vmatprep.subr.bf16.mxu0 %v4256_v63  ;;  %v4338_v54 = vld [vmem:[%s5370_s9 + $0x140] ss:$8 sps:$4 sm:$0xff]   ;;  %v4346_v56 = vld [vmem:[%s5370_s9 + $0x154] ss:$8 sps:$4 sm:$0xff]   ;;  %v4344_v58 = vld [vmem:[%s5370_s9 + $0x150] ss:$8 sps:$4 sm:$0xff]  }
  0xcb   : > { %v4341_v55 = vld [vmem:[%s5370_s9 + $0x540] ss:$8 sps:$4 sm:$0xff]   ;;  %v4349_v57 = vld [vmem:[%s5370_s9 + $0x554] ss:$8 sps:$4 sm:$0xff]   ;;  %v4347_v59 = vld [vmem:[%s5370_s9 + $0x550] ss:$8 sps:$4 sm:$0xff]  }
  0xcc   : > { %3272 = vmatpush1.bf16.msra.mxu1 %v4258_v0  ;;  %v4352_v60 = vld [vmem:[%s5370_s9 + $0x164] ss:$8 sps:$4 sm:$0xff]   ;;  %v4350_v63 = vld [vmem:[%s5370_s9 + $0x160] ss:$8 sps:$4 sm:$0xff]   ;;  %s5747_s7 = smov (!%p1403_p11, %s3816_s7), 3  ;;  %s4133_s19 = sshll.u32 (%p4766_p6), %s4701_s14, 3 }
  0xcd   : > { %3444 = vmatpush1.bf16.msra.mxu0 %v4259_v1  ;;  %3273 = vmatprep.subr.bf16.mxu1 %v4260_v2  ;;  %v4355_v61 = vld [vmem:[%s5370_s9 + $0x564] ss:$8 sps:$4 sm:$0xff]   ;;  %v4353_v0 = vld [vmem:[%s5370_s9 + $0x560] ss:$8 sps:$4 sm:$0xff]   ;;  %v4358_v2 = vld [vmem:[%s5370_s9 + $0x174] ss:$8 sps:$4 sm:$0xff]   ;;  %s3678_s20 = scalar_lea.vmem (%p4766_p6), %s5738_s3, %s4133_s19 }
  0xce   : > { %3445 = vmatprep.subr.bf16.mxu0 %v4262_v3  ;;  %v4412_v62 = vld [vmem:[%s5735_s0 + $0xc] ss:$72 sps:$4 sm:$0xff]  }
  0xcf   : > { %v4418_v1 = vld [vmem:[%s5735_s0 + $0x2c] ss:$72 sps:$4 sm:$0xff]  }
  0xd0   : > { %3274 = vmatpush1.bf16.msra.mxu1 %v4264_v4  ;;  %v4361_v3 = vld [vmem:[%s5370_s9 + $0x574] ss:$8 sps:$4 sm:$0xff]   ;;  %v4356_v4 = vld [vmem:[%s5370_s9 + $0x170] ss:$8 sps:$4 sm:$0xff]  }
  0xd1   : > { %3446 = vmatpush1.bf16.msra.mxu0 %v4265_v5  ;;  %3275 = vmatprep.subr.bf16.mxu1 %v4266_v6  ;;  %v4359_v5 = vld [vmem:[%s5370_s9 + $0x570] ss:$8 sps:$4 sm:$0xff]   ;;  %v4364_v6 = vld [vmem:[%s5370_s9 + $0x184] ss:$8 sps:$4 sm:$0xff]  }
  0xd2   : > { %3447 = vmatprep.subr.bf16.mxu0 %v4268_v7  ;;  %v4367_v7 = vld [vmem:[%s5370_s9 + $0x584] ss:$8 sps:$4 sm:$0xff]  }
  0xd4   : > { %3276 = vmatpush1.bf16.msra.mxu1 %v4270_v8  ;;  %v4362_v8 = vld [vmem:[%s5370_s9 + $0x180] ss:$8 sps:$4 sm:$0xff]  }
  0xd5   : > { %3448 = vmatpush1.bf16.msra.mxu0 %v4271_v9  ;;  %3277 = vmatprep.subr.bf16.mxu1 %v4272_v10  ;;  %v4365_v9 = vld [vmem:[%s5370_s9 + $0x580] ss:$8 sps:$4 sm:$0xff]   ;;  %v4370_v10 = vld [vmem:[%s5370_s9 + $0x194] ss:$8 sps:$4 sm:$0xff]  }
  0xd6   : > { %3449 = vmatprep.subr.bf16.mxu0 %v4274_v11  ;;  %v4373_v11 = vld [vmem:[%s5370_s9 + $0x594] ss:$8 sps:$4 sm:$0xff]  }
  0xd8   : > { %3278 = vmatpush1.bf16.msra.mxu1 %v4276_v12  ;;  %v4368_v12 = vld [vmem:[%s5370_s9 + $0x190] ss:$8 sps:$4 sm:$0xff]  }
  0xd9   : > { %3450 = vmatpush1.bf16.msra.mxu0 %v4277_v13  ;;  %3279 = vmatprep.subr.bf16.mxu1 %v4278_v14  ;;  %v4371_v13 = vld [vmem:[%s5370_s9 + $0x590] ss:$8 sps:$4 sm:$0xff]   ;;  %v4376_v14 = vld [vmem:[%s5370_s9 + $0x1a4] ss:$8 sps:$4 sm:$0xff]  }
  0xda   : > { %3451 = vmatprep.subr.bf16.mxu0 %v4280_v15  ;;  %v4379_v15 = vld [vmem:[%s5370_s9 + $0x5a4] ss:$8 sps:$4 sm:$0xff]  }
  0xdc   : > { %3280 = vmatpush1.bf16.msra.mxu1 %v4282_v16  ;;  %v4374_v16 = vld [vmem:[%s5370_s9 + $0x1a0] ss:$8 sps:$4 sm:$0xff]  }
  0xdd   : > { %3452 = vmatpush1.bf16.msra.mxu0 %v4283_v17  ;;  %3281 = vmatprep.subr.bf16.mxu1 %v4284_v18  ;;  %v4377_v17 = vld [vmem:[%s5370_s9 + $0x5a0] ss:$8 sps:$4 sm:$0xff]   ;;  %v4382_v18 = vld [vmem:[%s5370_s9 + $0x1b4] ss:$8 sps:$4 sm:$0xff]  }
  0xde   : > { %3453 = vmatprep.subr.bf16.mxu0 %v4286_v19  ;;  %v4385_v19 = vld [vmem:[%s5370_s9 + $0x5b4] ss:$8 sps:$4 sm:$0xff]  }
  0xe0   : > { %3282 = vmatpush1.bf16.msra.mxu1 %v4288_v20  ;;  %v4380_v20 = vld [vmem:[%s5370_s9 + $0x1b0] ss:$8 sps:$4 sm:$0xff]  }
  0xe1   : > { %3454 = vmatpush1.bf16.msra.mxu0 %v4289_v21  ;;  %3283 = vmatprep.subr.bf16.mxu1 %v4290_v22  ;;  %v4383_v21 = vld [vmem:[%s5370_s9 + $0x5b0] ss:$8 sps:$4 sm:$0xff]   ;;  %v4388_v22 = vld [vmem:[%s5370_s9 + $0x1c4] ss:$8 sps:$4 sm:$0xff]  }
  0xe2   : > { %3455 = vmatprep.subr.bf16.mxu0 %v4292_v23  ;;  %v4391_v23 = vld [vmem:[%s5370_s9 + $0x5c4] ss:$8 sps:$4 sm:$0xff]  }
  0xe4   : > { %3284 = vmatpush1.bf16.msra.mxu1 %v4294_v24  ;;  %v4386_v24 = vld [vmem:[%s5370_s9 + $0x1c0] ss:$8 sps:$4 sm:$0xff]  }
  0xe5   : > { %3456 = vmatpush1.bf16.msra.mxu0 %v4295_v25  ;;  %3285 = vmatprep.subr.bf16.mxu1 %v4296_v26  ;;  %v4389_v25 = vld [vmem:[%s5370_s9 + $0x5c0] ss:$8 sps:$4 sm:$0xff]   ;;  %v4394_v26 = vld [vmem:[%s5370_s9 + $0x1d4] ss:$8 sps:$4 sm:$0xff]  }
  0xe6   : > { %3457 = vmatprep.subr.bf16.mxu0 %v4298_v27  ;;  %v4397_v27 = vld [vmem:[%s5370_s9 + $0x5d4] ss:$8 sps:$4 sm:$0xff]  }
  0xe8   : > { %3286 = vmatpush1.bf16.msra.mxu1 %v4300_v28  ;;  %v4392_v28 = vld [vmem:[%s5370_s9 + $0x1d0] ss:$8 sps:$4 sm:$0xff]  }
  0xe9   : > { %3458 = vmatpush1.bf16.msra.mxu0 %v4301_v29  ;;  %3287 = vmatprep.subr.bf16.mxu1 %v4302_v30  ;;  %v4395_v29 = vld [vmem:[%s5370_s9 + $0x5d0] ss:$8 sps:$4 sm:$0xff]   ;;  %v4400_v30 = vld [vmem:[%s5370_s9 + $0x1e4] ss:$8 sps:$4 sm:$0xff]  }
  0xea   : > { %3459 = vmatprep.subr.bf16.mxu0 %v4304_v31  ;;  %v4403_v31 = vld [vmem:[%s5370_s9 + $0x5e4] ss:$8 sps:$4 sm:$0xff]  }
  0xec   : > { %3288 = vmatpush1.bf16.msra.mxu1 %v4306_v32  ;;  %v4398_v32 = vld [vmem:[%s5370_s9 + $0x1e0] ss:$8 sps:$4 sm:$0xff]  }
  0xed   : > { %3460 = vmatpush1.bf16.msra.mxu0 %v4307_v33  ;;  %3300 = vmatprep.subr.bf16.mxu1 %v4313_v34  ;;  %v4401_v33 = vld [vmem:[%s5370_s9 + $0x5e0] ss:$8 sps:$4 sm:$0xff]   ;;  %v4406_v34 = vld [vmem:[%s5370_s9 + $0x1f4] ss:$8 sps:$4 sm:$0xff]  }
  0xee   : > { %3472 = vmatprep.subr.bf16.mxu0 %v4319_v35  ;;  %v4409_v35 = vld [vmem:[%s5370_s9 + $0x5f4] ss:$8 sps:$4 sm:$0xff]  }
  0xef   : > { %3290 = vmatmul.mubr.bf16.vlgmr.msra.gmra.mrb[0].mxu1 %v4308_v36  ;;  %v4404_v36 = vld [vmem:[%s5370_s9 + $0x1f0] ss:$8 sps:$4 sm:$0xff]  }
  0xf0   : > { %3462 = vmatmul.mubr.bf16.vlgmr.msra.gmra.mrb[0].mxu0 %v4314_v37  ;;  %3301 = vmatpush1.bf16.msra.mxu1 %v4311_v38  ;;  %v4407_v37 = vld [vmem:[%s5370_s9 + $0x5f0] ss:$8 sps:$4 sm:$0xff]   ;;  %v4415_v38 = vld [vmem:[%s5370_s9 + $0x204] ss:$8 sps:$4 sm:$0xff]  }
  0xf1   : > { %3473 = vmatpush1.bf16.msra.mxu0 %v4317_v39  ;;  %3302 = vmatprep.subr.bf16.mxu1 %v4322_v40  ;;  %v4421_v39 = vld [vmem:[%s5370_s9 + $0x604] ss:$8 sps:$4 sm:$0xff]   ;;  %v4410_v40 = vld [vmem:[%s5735_s0 + $0x8] ss:$72 sps:$4 sm:$0xff]  }
  0xf2   : > { %3474 = vmatprep.subr.bf16.mxu0 %v4325_v41  ;;  %3332 = vmatprep.mubr.bf16.mxu1 %v4412_v62  ;;  %v4413_v41 = vld [vmem:[%s5370_s9 + $0x200] ss:$8 sps:$4 sm:$0xff]   ;;  %v4448_v62 = vld [vmem:[%s5370_s9 + $0x254] ss:$8 sps:$4 sm:$0xff]  }
  0xf3   : > { %3504 = vmatprep.mubr.bf16.mxu0 %v4418_v1  ;;  %v4449_v1 = vld [vmem:[%s5370_s9 + $0x650] ss:$8 sps:$4 sm:$0xff]  }
  0xf4   : > { %3303 = vmatpush1.bf16.msra.mxu1 %v4320_v42  ;;  %v4416_v42 = vld [vmem:[%s5735_s0 + $0x28] ss:$72 sps:$4 sm:$0xff]  }
  0xf5   : > { %3475 = vmatpush1.bf16.msra.mxu0 %v4323_v43  ;;  %3304 = vmatprep.subr.bf16.mxu1 %v4328_v44  ;;  %v4419_v43 = vld [vmem:[%s5370_s9 + $0x600] ss:$8 sps:$4 sm:$0xff]   ;;  %v4424_v44 = vld [vmem:[%s5370_s9 + $0x214] ss:$8 sps:$4 sm:$0xff]  }
  0xf6   : > { %3476 = vmatprep.subr.bf16.mxu0 %v4331_v45  ;;  %v4427_v45 = vld [vmem:[%s5370_s9 + $0x614] ss:$8 sps:$4 sm:$0xff]  }
  0xf8   : > { %3305 = vmatpush1.bf16.msra.mxu1 %v4326_v46  ;;  %v4422_v46 = vld [vmem:[%s5370_s9 + $0x210] ss:$8 sps:$4 sm:$0xff]  }
  0xf9   : > { %3477 = vmatpush1.bf16.msra.mxu0 %v4329_v47  ;;  %3306 = vmatprep.subr.bf16.mxu1 %v4334_v48  ;;  %v4514_v47 = vld [vmem:[%s5735_s0 + $0x14] ss:$72 sps:$4 sm:$0xff]   ;;  %v4425_v48 = vld [vmem:[%s5370_s9 + $0x610] ss:$8 sps:$4 sm:$0xff]  }
  0xfa   : > { %3478 = vmatprep.subr.bf16.mxu0 %v4337_v49  ;;  %v4430_v49 = vld [vmem:[%s5370_s9 + $0x224] ss:$8 sps:$4 sm:$0xff]  }
  0xfc   : > { %3307 = vmatpush1.bf16.msra.mxu1 %v4332_v50  ;;  %v4433_v50 = vld [vmem:[%s5370_s9 + $0x624] ss:$8 sps:$4 sm:$0xff]  }
  0xfd   : > { %3479 = vmatpush1.bf16.msra.mxu0 %v4335_v51  ;;  %3308 = vmatprep.subr.bf16.mxu1 %v4340_v52  ;;  %v4520_v51 = vld [vmem:[%s5735_s0 + $0x34] ss:$72 sps:$4 sm:$0xff]   ;;  %v4428_v52 = vld [vmem:[%s5370_s9 + $0x220] ss:$8 sps:$4 sm:$0xff]  }
  0xfe   : > { %3480 = vmatprep.subr.bf16.mxu0 %v4343_v53  ;;  %v4431_v53 = vld [vmem:[%s5370_s9 + $0x620] ss:$8 sps:$4 sm:$0xff]  }
 0x100   : > { %3309 = vmatpush1.bf16.msra.mxu1 %v4338_v54  ;;  %v4436_v54 = vld [vmem:[%s5370_s9 + $0x234] ss:$8 sps:$4 sm:$0xff]  }
 0x101   : > { %3481 = vmatpush1.bf16.msra.mxu0 %v4341_v55  ;;  %3310 = vmatprep.subr.bf16.mxu1 %v4346_v56  ;;  %v4439_v55 = vld [vmem:[%s5370_s9 + $0x634] ss:$8 sps:$4 sm:$0xff]   ;;  %v4434_v56 = vld [vmem:[%s5370_s9 + $0x230] ss:$8 sps:$4 sm:$0xff]  }
 0x102   : > { %3482 = vmatprep.subr.bf16.mxu0 %v4349_v57  ;;  %v4437_v57 = vld [vmem:[%s5370_s9 + $0x630] ss:$8 sps:$4 sm:$0xff]  }
 0x104   : > { %3311 = vmatpush1.bf16.msra.mxu1 %v4344_v58  ;;  %v4442_v58 = vld [vmem:[%s5370_s9 + $0x244] ss:$8 sps:$4 sm:$0xff]  }
 0x105   : > { %3483 = vmatpush1.bf16.msra.mxu0 %v4347_v59  ;;  %3312 = vmatprep.subr.bf16.mxu1 %v4352_v60  ;;  %v4445_v59 = vld [vmem:[%s5370_s9 + $0x644] ss:$8 sps:$4 sm:$0xff]   ;;  %v4440_v60 = vld [vmem:[%s5370_s9 + $0x240] ss:$8 sps:$4 sm:$0xff]  }
 0x106   : > { %3484 = vmatprep.subr.bf16.mxu0 %v4355_v61  ;;  %v4443_v61 = vld [vmem:[%s5370_s9 + $0x640] ss:$8 sps:$4 sm:$0xff]  }
 0x108   : > { %3313 = vmatpush1.bf16.msra.mxu1 %v4350_v63  ;;  %v4451_v63 = vld [vmem:[%s5370_s9 + $0x654] ss:$8 sps:$4 sm:$0xff]  }
 0x109   : > { %3485 = vmatpush1.bf16.msra.mxu0 %v4353_v0  ;;  %3314 = vmatprep.subr.bf16.mxu1 %v4358_v2  ;;  %v4446_v0 = vld [vmem:[%s5370_s9 + $0x250] ss:$8 sps:$4 sm:$0xff]   ;;  %v4454_v2 = vld [vmem:[%s5370_s9 + $0x264] ss:$8 sps:$4 sm:$0xff]  }
 0x10a   : > { %3486 = vmatprep.subr.bf16.mxu0 %v4361_v3  ;;  %v4457_v3 = vld [vmem:[%s5370_s9 + $0x664] ss:$8 sps:$4 sm:$0xff]  }
 0x10c   : > { %3315 = vmatpush1.bf16.msra.mxu1 %v4356_v4  ;;  %v4452_v4 = vld [vmem:[%s5370_s9 + $0x260] ss:$8 sps:$4 sm:$0xff]  }
 0x10d   : > { %3487 = vmatpush1.bf16.msra.mxu0 %v4359_v5  ;;  %3316 = vmatprep.subr.bf16.mxu1 %v4364_v6  ;;  %v4455_v5 = vld [vmem:[%s5370_s9 + $0x660] ss:$8 sps:$4 sm:$0xff]   ;;  %v4460_v6 = vld [vmem:[%s5370_s9 + $0x274] ss:$8 sps:$4 sm:$0xff]  }
 0x10e   : > { %3488 = vmatprep.subr.bf16.mxu0 %v4367_v7  ;;  %v4463_v7 = vld [vmem:[%s5370_s9 + $0x674] ss:$8 sps:$4 sm:$0xff]  }
 0x110   : > { %3317 = vmatpush1.bf16.msra.mxu1 %v4362_v8  ;;  %v4458_v8 = vld [vmem:[%s5370_s9 + $0x270] ss:$8 sps:$4 sm:$0xff]  }
 0x111   : > { %3489 = vmatpush1.bf16.msra.mxu0 %v4365_v9  ;;  %3318 = vmatprep.subr.bf16.mxu1 %v4370_v10  ;;  %v4461_v9 = vld [vmem:[%s5370_s9 + $0x670] ss:$8 sps:$4 sm:$0xff]   ;;  %v4466_v10 = vld [vmem:[%s5370_s9 + $0x284] ss:$8 sps:$4 sm:$0xff]  }
 0x112   : > { %3490 = vmatprep.subr.bf16.mxu0 %v4373_v11  ;;  %v4469_v11 = vld [vmem:[%s5370_s9 + $0x684] ss:$8 sps:$4 sm:$0xff]  }
 0x114   : > { %3319 = vmatpush1.bf16.msra.mxu1 %v4368_v12  ;;  %v4464_v12 = vld [vmem:[%s5370_s9 + $0x280] ss:$8 sps:$4 sm:$0xff]  }
 0x115   : > { %3491 = vmatpush1.bf16.msra.mxu0 %v4371_v13  ;;  %3320 = vmatprep.subr.bf16.mxu1 %v4376_v14  ;;  %v4467_v13 = vld [vmem:[%s5370_s9 + $0x680] ss:$8 sps:$4 sm:$0xff]   ;;  %v4472_v14 = vld [vmem:[%s5370_s9 + $0x294] ss:$8 sps:$4 sm:$0xff]  }
 0x116   : > { %3492 = vmatprep.subr.bf16.mxu0 %v4379_v15  ;;  %v4475_v15 = vld [vmem:[%s5370_s9 + $0x694] ss:$8 sps:$4 sm:$0xff]  }
 0x118   : > { %3321 = vmatpush1.bf16.msra.mxu1 %v4374_v16  ;;  %v4470_v16 = vld [vmem:[%s5370_s9 + $0x290] ss:$8 sps:$4 sm:$0xff]  }
 0x119   : > { %3493 = vmatpush1.bf16.msra.mxu0 %v4377_v17  ;;  %3322 = vmatprep.subr.bf16.mxu1 %v4382_v18  ;;  %v4473_v17 = vld [vmem:[%s5370_s9 + $0x690] ss:$8 sps:$4 sm:$0xff]   ;;  %v4478_v18 = vld [vmem:[%s5370_s9 + $0x2a4] ss:$8 sps:$4 sm:$0xff]  }
 0x11a   : > { %3494 = vmatprep.subr.bf16.mxu0 %v4385_v19  ;;  %v4481_v19 = vld [vmem:[%s5370_s9 + $0x6a4] ss:$8 sps:$4 sm:$0xff]  }
 0x11c   : > { %3323 = vmatpush1.bf16.msra.mxu1 %v4380_v20  ;;  %v4476_v20 = vld [vmem:[%s5370_s9 + $0x2a0] ss:$8 sps:$4 sm:$0xff]  }
 0x11d   : > { %3495 = vmatpush1.bf16.msra.mxu0 %v4383_v21  ;;  %3324 = vmatprep.subr.bf16.mxu1 %v4388_v22  ;;  %v4479_v21 = vld [vmem:[%s5370_s9 + $0x6a0] ss:$8 sps:$4 sm:$0xff]   ;;  %v4484_v22 = vld [vmem:[%s5370_s9 + $0x2b4] ss:$8 sps:$4 sm:$0xff]  }
 0x11e   : > { %3496 = vmatprep.subr.bf16.mxu0 %v4391_v23  ;;  %v4487_v23 = vld [vmem:[%s5370_s9 + $0x6b4] ss:$8 sps:$4 sm:$0xff]  }
 0x120   : > { %3325 = vmatpush1.bf16.msra.mxu1 %v4386_v24  ;;  %v4482_v24 = vld [vmem:[%s5370_s9 + $0x2b0] ss:$8 sps:$4 sm:$0xff]  }
 0x121   : > { %3497 = vmatpush1.bf16.msra.mxu0 %v4389_v25  ;;  %3326 = vmatprep.subr.bf16.mxu1 %v4394_v26  ;;  %v4485_v25 = vld [vmem:[%s5370_s9 + $0x6b0] ss:$8 sps:$4 sm:$0xff]   ;;  %v4490_v26 = vld [vmem:[%s5370_s9 + $0x2c4] ss:$8 sps:$4 sm:$0xff]  }
 0x122   : > { %3498 = vmatprep.subr.bf16.mxu0 %v4397_v27  ;;  %v4493_v27 = vld [vmem:[%s5370_s9 + $0x6c4] ss:$8 sps:$4 sm:$0xff]  }
 0x124   : > { %3327 = vmatpush1.bf16.msra.mxu1 %v4392_v28  ;;  %v4488_v28 = vld [vmem:[%s5370_s9 + $0x2c0] ss:$8 sps:$4 sm:$0xff]  }
 0x125   : > { %3499 = vmatpush1.bf16.msra.mxu0 %v4395_v29  ;;  %3328 = vmatprep.subr.bf16.mxu1 %v4400_v30  ;;  %v4491_v29 = vld [vmem:[%s5370_s9 + $0x6c0] ss:$8 sps:$4 sm:$0xff]   ;;  %v4496_v30 = vld [vmem:[%s5370_s9 + $0x2d4] ss:$8 sps:$4 sm:$0xff]  }
 0x126   : > { %3500 = vmatprep.subr.bf16.mxu0 %v4403_v31  ;;  %v4499_v31 = vld [vmem:[%s5370_s9 + $0x6d4] ss:$8 sps:$4 sm:$0xff]  }
 0x128   : > { %3329 = vmatpush1.bf16.msra.mxu1 %v4398_v32  ;;  %v4494_v32 = vld [vmem:[%s5370_s9 + $0x2d0] ss:$8 sps:$4 sm:$0xff]  }
 0x129   : > { %3501 = vmatpush1.bf16.msra.mxu0 %v4401_v33  ;;  %3330 = vmatprep.subr.bf16.mxu1 %v4406_v34  ;;  %v4497_v33 = vld [vmem:[%s5370_s9 + $0x6d0] ss:$8 sps:$4 sm:$0xff]   ;;  %v4502_v34 = vld [vmem:[%s5370_s9 + $0x2e4] ss:$8 sps:$4 sm:$0xff]  }
 0x12a   : > { %3502 = vmatprep.subr.bf16.mxu0 %v4409_v35  ;;  %v4505_v35 = vld [vmem:[%s5370_s9 + $0x6e4] ss:$8 sps:$4 sm:$0xff]  }
 0x12c   : > { %3331 = vmatpush1.bf16.msra.mxu1 %v4404_v36  ;;  %v4500_v36 = vld [vmem:[%s5370_s9 + $0x2e0] ss:$8 sps:$4 sm:$0xff]  }
 0x12d   : > { %3503 = vmatpush1.bf16.msra.mxu0 %v4407_v37  ;;  %3343 = vmatprep.subr.bf16.mxu1 %v4415_v38  ;;  %v4503_v37 = vld [vmem:[%s5370_s9 + $0x6e0] ss:$8 sps:$4 sm:$0xff]   ;;  %v4508_v38 = vld [vmem:[%s5370_s9 + $0x2f4] ss:$8 sps:$4 sm:$0xff]  }
 0x12e   : > { %3515 = vmatprep.subr.bf16.mxu0 %v4421_v39  ;;  %v4511_v39 = vld [vmem:[%s5370_s9 + $0x6f4] ss:$8 sps:$4 sm:$0xff]  }
 0x12f   : > { %3333 = vmatmul.mubr.bf16.vlgmr.msra.gmra.mrb[0].mxu1 %v4410_v40  ;;  %v4506_v40 = vld [vmem:[%s5370_s9 + $0x2f0] ss:$8 sps:$4 sm:$0xff]  }
 0x130   : > { %3505 = vmatmul.mubr.bf16.vlgmr.msra.gmra.mrb[0].mxu0 %v4416_v42  ;;  %3344 = vmatpush1.bf16.msra.mxu1 %v4413_v41  ;;  %v4509_v41 = vld [vmem:[%s5370_s9 + $0x6f0] ss:$8 sps:$4 sm:$0xff]   ;;  %v4517_v42 = vld [vmem:[%s5370_s9 + $0x304] ss:$8 sps:$4 sm:$0xff]  }
 0x131   : > { %3516 = vmatpush1.bf16.msra.mxu0 %v4419_v43  ;;  %3345 = vmatprep.subr.bf16.mxu1 %v4424_v44  ;;  %v4523_v43 = vld [vmem:[%s5370_s9 + $0x704] ss:$8 sps:$4 sm:$0xff]   ;;  %v4512_v44 = vld [vmem:[%s5735_s0 + $0x10] ss:$72 sps:$4 sm:$0xff]  }
 0x132   : > { %3517 = vmatprep.subr.bf16.mxu0 %v4427_v45  ;;  %3375 = vmatprep.mubr.bf16.mxu1 %v4514_v47  ;;  %v4515_v45 = vld [vmem:[%s5370_s9 + $0x300] ss:$8 sps:$4 sm:$0xff]  }
 0x133   : > { %3547 = vmatprep.mubr.bf16.mxu0 %v4520_v51  ;;  %v4521_v47 = vld [vmem:[%s5370_s9 + $0x700] ss:$8 sps:$4 sm:$0xff]   ;;  %v4619_v51 = vld [vmem:[%s5735_s0 + $0x3c] ss:$72 sps:$4 sm:$0xff]  }
 0x134   : > { %3346 = vmatpush1.bf16.msra.mxu1 %v4422_v46  ;;  %v4518_v46 = vld [vmem:[%s5735_s0 + $0x30] ss:$72 sps:$4 sm:$0xff]  }
 0x135   : > { %3518 = vmatpush1.bf16.msra.mxu0 %v4425_v48  ;;  %3347 = vmatprep.subr.bf16.mxu1 %v4430_v49  ;;  %v4526_v48 = vld [vmem:[%s5370_s9 + $0x314] ss:$8 sps:$4 sm:$0xff]  }
 0x136   : > { %3519 = vmatprep.subr.bf16.mxu0 %v4433_v50  ;;  %v4529_v49 = vld [vmem:[%s5370_s9 + $0x714] ss:$8 sps:$4 sm:$0xff]  }
 0x137   : > { %v4616_v50 = vld [vmem:[%s5735_s0 + $0x1c] ss:$72 sps:$4 sm:$0xff]  }
 0x138   : > { %3348 = vmatpush1.bf16.msra.mxu1 %v4428_v52  ;;  %v4524_v52 = vld [vmem:[%s5370_s9 + $0x310] ss:$8 sps:$4 sm:$0xff]  }
 0x139   : > { %3520 = vmatpush1.bf16.msra.mxu0 %v4431_v53  ;;  %3349 = vmatprep.subr.bf16.mxu1 %v4436_v54  ;;  %v4527_v53 = vld [vmem:[%s5370_s9 + $0x710] ss:$8 sps:$4 sm:$0xff]   ;;  %v4532_v54 = vld [vmem:[%s5370_s9 + $0x324] ss:$8 sps:$4 sm:$0xff]  }
 0x13a   : > { %3521 = vmatprep.subr.bf16.mxu0 %v4439_v55  ;;  %v4535_v55 = vld [vmem:[%s5370_s9 + $0x724] ss:$8 sps:$4 sm:$0xff]  }
 0x13c   : > { %3350 = vmatpush1.bf16.msra.mxu1 %v4434_v56  ;;  %v4530_v56 = vld [vmem:[%s5370_s9 + $0x320] ss:$8 sps:$4 sm:$0xff]  }
 0x13d   : > { %3522 = vmatpush1.bf16.msra.mxu0 %v4437_v57  ;;  %3351 = vmatprep.subr.bf16.mxu1 %v4442_v58  ;;  %v4533_v57 = vld [vmem:[%s5370_s9 + $0x720] ss:$8 sps:$4 sm:$0xff]   ;;  %v4538_v58 = vld [vmem:[%s5370_s9 + $0x334] ss:$8 sps:$4 sm:$0xff]  }
 0x13e   : > { %3523 = vmatprep.subr.bf16.mxu0 %v4445_v59  ;;  %v4541_v59 = vld [vmem:[%s5370_s9 + $0x734] ss:$8 sps:$4 sm:$0xff]  }
 0x140   : > { %3352 = vmatpush1.bf16.msra.mxu1 %v4440_v60  ;;  %v4536_v60 = vld [vmem:[%s5370_s9 + $0x330] ss:$8 sps:$4 sm:$0xff]  }
 0x141   : > { %3524 = vmatpush1.bf16.msra.mxu0 %v4443_v61  ;;  %3353 = vmatprep.subr.bf16.mxu1 %v4448_v62  ;;  %v4539_v61 = vld [vmem:[%s5370_s9 + $0x730] ss:$8 sps:$4 sm:$0xff]   ;;  %v4544_v62 = vld [vmem:[%s5370_s9 + $0x344] ss:$8 sps:$4 sm:$0xff]  }
 0x142   : > { %3525 = vmatprep.subr.bf16.mxu0 %v4451_v63  ;;  %v4547_v63 = vld [vmem:[%s5370_s9 + $0x744] ss:$8 sps:$4 sm:$0xff]  }
 0x144   : > { %3354 = vmatpush1.bf16.msra.mxu1 %v4446_v0  ;;  %v4542_v0 = vld [vmem:[%s5370_s9 + $0x340] ss:$8 sps:$4 sm:$0xff]  }
 0x145   : > { %3526 = vmatpush1.bf16.msra.mxu0 %v4449_v1  ;;  %3355 = vmatprep.subr.bf16.mxu1 %v4454_v2  ;;  %v4545_v1 = vld [vmem:[%s5370_s9 + $0x740] ss:$8 sps:$4 sm:$0xff]   ;;  %v4550_v2 = vld [vmem:[%s5370_s9 + $0x354] ss:$8 sps:$4 sm:$0xff]  }
 0x146   : > { %3527 = vmatprep.subr.bf16.mxu0 %v4457_v3  ;;  %v4553_v3 = vld [vmem:[%s5370_s9 + $0x754] ss:$8 sps:$4 sm:$0xff]  }
 0x148   : > { %3356 = vmatpush1.bf16.msra.mxu1 %v4452_v4  ;;  %v4548_v4 = vld [vmem:[%s5370_s9 + $0x350] ss:$8 sps:$4 sm:$0xff]  }
 0x149   : > { %3528 = vmatpush1.bf16.msra.mxu0 %v4455_v5  ;;  %3357 = vmatprep.subr.bf16.mxu1 %v4460_v6  ;;  %v4551_v5 = vld [vmem:[%s5370_s9 + $0x750] ss:$8 sps:$4 sm:$0xff]   ;;  %v4556_v6 = vld [vmem:[%s5370_s9 + $0x364] ss:$8 sps:$4 sm:$0xff]  }
 0x14a   : > { %3529 = vmatprep.subr.bf16.mxu0 %v4463_v7  ;;  %v4559_v7 = vld [vmem:[%s5370_s9 + $0x764] ss:$8 sps:$4 sm:$0xff]  }
 0x14c   : > { %3358 = vmatpush1.bf16.msra.mxu1 %v4458_v8  ;;  %v4554_v8 = vld [vmem:[%s5370_s9 + $0x360] ss:$8 sps:$4 sm:$0xff]  }
 0x14d   : > { %3530 = vmatpush1.bf16.msra.mxu0 %v4461_v9  ;;  %3359 = vmatprep.subr.bf16.mxu1 %v4466_v10  ;;  %v4557_v9 = vld [vmem:[%s5370_s9 + $0x760] ss:$8 sps:$4 sm:$0xff]   ;;  %v4562_v10 = vld [vmem:[%s5370_s9 + $0x374] ss:$8 sps:$4 sm:$0xff]  }
 0x14e   : > { %3531 = vmatprep.subr.bf16.mxu0 %v4469_v11  ;;  %v4565_v11 = vld [vmem:[%s5370_s9 + $0x774] ss:$8 sps:$4 sm:$0xff]  }
 0x150   : > { %3360 = vmatpush1.bf16.msra.mxu1 %v4464_v12  ;;  %v4560_v12 = vld [vmem:[%s5370_s9 + $0x370] ss:$8 sps:$4 sm:$0xff]  }
 0x151   : > { %3532 = vmatpush1.bf16.msra.mxu0 %v4467_v13  ;;  %3361 = vmatprep.subr.bf16.mxu1 %v4472_v14  ;;  %v4563_v13 = vld [vmem:[%s5370_s9 + $0x770] ss:$8 sps:$4 sm:$0xff]   ;;  %v4568_v14 = vld [vmem:[%s5370_s9 + $0x384] ss:$8 sps:$4 sm:$0xff]  }
 0x152   : > { %3533 = vmatprep.subr.bf16.mxu0 %v4475_v15  ;;  %v4571_v15 = vld [vmem:[%s5370_s9 + $0x784] ss:$8 sps:$4 sm:$0xff]  }
 0x154   : > { %3362 = vmatpush1.bf16.msra.mxu1 %v4470_v16  ;;  %v4566_v16 = vld [vmem:[%s5370_s9 + $0x380] ss:$8 sps:$4 sm:$0xff]  }
 0x155   : > { %3534 = vmatpush1.bf16.msra.mxu0 %v4473_v17  ;;  %3363 = vmatprep.subr.bf16.mxu1 %v4478_v18  ;;  %v4569_v17 = vld [vmem:[%s5370_s9 + $0x780] ss:$8 sps:$4 sm:$0xff]   ;;  %v4574_v18 = vld [vmem:[%s5370_s9 + $0x394] ss:$8 sps:$4 sm:$0xff]  }
 0x156   : > { %3535 = vmatprep.subr.bf16.mxu0 %v4481_v19  ;;  %v4577_v19 = vld [vmem:[%s5370_s9 + $0x794] ss:$8 sps:$4 sm:$0xff]  }
 0x158   : > { %3364 = vmatpush1.bf16.msra.mxu1 %v4476_v20  ;;  %v4572_v20 = vld [vmem:[%s5370_s9 + $0x390] ss:$8 sps:$4 sm:$0xff]  }
 0x159   : > { %3536 = vmatpush1.bf16.msra.mxu0 %v4479_v21  ;;  %3365 = vmatprep.subr.bf16.mxu1 %v4484_v22  ;;  %v4575_v21 = vld [vmem:[%s5370_s9 + $0x790] ss:$8 sps:$4 sm:$0xff]   ;;  %v4580_v22 = vld [vmem:[%s5370_s9 + $0x3a4] ss:$8 sps:$4 sm:$0xff]  }
 0x15a   : > { %3537 = vmatprep.subr.bf16.mxu0 %v4487_v23  ;;  %v4583_v23 = vld [vmem:[%s5370_s9 + $0x7a4] ss:$8 sps:$4 sm:$0xff]  }
 0x15c   : > { %3366 = vmatpush1.bf16.msra.mxu1 %v4482_v24  ;;  %v4578_v24 = vld [vmem:[%s5370_s9 + $0x3a0] ss:$8 sps:$4 sm:$0xff]  }
 0x15d   : > { %3538 = vmatpush1.bf16.msra.mxu0 %v4485_v25  ;;  %3367 = vmatprep.subr.bf16.mxu1 %v4490_v26  ;;  %v4581_v25 = vld [vmem:[%s5370_s9 + $0x7a0] ss:$8 sps:$4 sm:$0xff]   ;;  %v4586_v26 = vld [vmem:[%s5370_s9 + $0x3b4] ss:$8 sps:$4 sm:$0xff]  }
 0x15e   : > { %3539 = vmatprep.subr.bf16.mxu0 %v4493_v27  ;;  %v4589_v27 = vld [vmem:[%s5370_s9 + $0x7b4] ss:$8 sps:$4 sm:$0xff]  }
 0x160   : > { %3368 = vmatpush1.bf16.msra.mxu1 %v4488_v28  ;;  %v4584_v28 = vld [vmem:[%s5370_s9 + $0x3b0] ss:$8 sps:$4 sm:$0xff]  }
 0x161   : > { %3540 = vmatpush1.bf16.msra.mxu0 %v4491_v29  ;;  %3369 = vmatprep.subr.bf16.mxu1 %v4496_v30  ;;  %v4587_v29 = vld [vmem:[%s5370_s9 + $0x7b0] ss:$8 sps:$4 sm:$0xff]   ;;  %v4592_v30 = vld [vmem:[%s5370_s9 + $0x3c4] ss:$8 sps:$4 sm:$0xff]  }
 0x162   : > { %3541 = vmatprep.subr.bf16.mxu0 %v4499_v31  ;;  %v4595_v31 = vld [vmem:[%s5370_s9 + $0x7c4] ss:$8 sps:$4 sm:$0xff]  }
 0x164   : > { %3370 = vmatpush1.bf16.msra.mxu1 %v4494_v32  ;;  %v4590_v32 = vld [vmem:[%s5370_s9 + $0x3c0] ss:$8 sps:$4 sm:$0xff]  }
 0x165   : > { %3542 = vmatpush1.bf16.msra.mxu0 %v4497_v33  ;;  %3371 = vmatprep.subr.bf16.mxu1 %v4502_v34  ;;  %v4593_v33 = vld [vmem:[%s5370_s9 + $0x7c0] ss:$8 sps:$4 sm:$0xff]   ;;  %v4598_v34 = vld [vmem:[%s5370_s9 + $0x3d4] ss:$8 sps:$4 sm:$0xff]  }
 0x166   : > { %3543 = vmatprep.subr.bf16.mxu0 %v4505_v35  ;;  %v4601_v35 = vld [vmem:[%s5370_s9 + $0x7d4] ss:$8 sps:$4 sm:$0xff]  }
 0x168   : > { %3372 = vmatpush1.bf16.msra.mxu1 %v4500_v36  ;;  %v4596_v36 = vld [vmem:[%s5370_s9 + $0x3d0] ss:$8 sps:$4 sm:$0xff]  }
 0x169   : > { %3544 = vmatpush1.bf16.msra.mxu0 %v4503_v37  ;;  %3373 = vmatprep.subr.bf16.mxu1 %v4508_v38  ;;  %v4599_v37 = vld [vmem:[%s5370_s9 + $0x7d0] ss:$8 sps:$4 sm:$0xff]   ;;  %v4604_v38 = vld [vmem:[%s5370_s9 + $0x3e4] ss:$8 sps:$4 sm:$0xff]  }
 0x16a   : > { %3545 = vmatprep.subr.bf16.mxu0 %v4511_v39  ;;  %v4607_v39 = vld [vmem:[%s5370_s9 + $0x7e4] ss:$8 sps:$4 sm:$0xff]  }
 0x16c   : > { %3374 = vmatpush1.bf16.msra.mxu1 %v4506_v40  ;;  %v4602_v40 = vld [vmem:[%s5370_s9 + $0x3e0] ss:$8 sps:$4 sm:$0xff]  }
 0x16d   : > { %3546 = vmatpush1.bf16.msra.mxu0 %v4509_v41  ;;  %3386 = vmatprep.subr.bf16.mxu1 %v4517_v42  ;;  %v4605_v41 = vld [vmem:[%s5370_s9 + $0x7e0] ss:$8 sps:$4 sm:$0xff]   ;;  %v4610_v42 = vld [vmem:[%s5370_s9 + $0x3f4] ss:$8 sps:$4 sm:$0xff]  }
 0x16e   : > { %3558 = vmatprep.subr.bf16.mxu0 %v4523_v43  ;;  %v4613_v43 = vld [vmem:[%s5370_s9 + $0x7f4] ss:$8 sps:$4 sm:$0xff]  }
 0x16f   : > { %3376 = vmatmul.mubr.bf16.vlgmr.msra.gmra.mrb[0].mxu1 %v4512_v44  ;;  %v4608_v44 = vld [vmem:[%s5370_s9 + $0x3f0] ss:$8 sps:$4 sm:$0xff]  }
 0x170   : > { %3548 = vmatmul.mubr.bf16.vlgmr.msra.gmra.mrb[0].mxu0 %v4518_v46  ;;  %3387 = vmatpush1.bf16.msra.mxu1 %v4515_v45  ;;  %v4611_v45 = vld [vmem:[%s5370_s9 + $0x7f0] ss:$8 sps:$4 sm:$0xff]   ;;  %v4622_v46 = vld [vmem:[%s5370_s9 + $0x804] ss:$8 sps:$4 sm:$0xff]  }
 0x171   : > { %3559 = vmatpush1.bf16.msra.mxu0 %v4521_v47  ;;  %3388 = vmatprep.subr.bf16.mxu1 %v4526_v48  ;;  %v4614_v47 = vld [vmem:[%s5735_s0 + $0x18] ss:$72 sps:$4 sm:$0xff]  }
 0x172   : > { %3560 = vmatprep.subr.bf16.mxu0 %v4529_v49  ;;  %3418 = vmatprep.mubr.bf16.mxu1 %v4616_v50  ;;  %v4617_v48 = vld [vmem:[%s5735_s0 + $0x38] ss:$72 sps:$4 sm:$0xff]   ;;  %v4670_v50 = vld [vmem:[%s5735_s0 + $0x44] ss:$72 sps:$4 sm:$0xff]  }
 0x173   : > { %3590 = vmatprep.mubr.bf16.mxu0 %v4619_v51  ;;  %v4620_v49 = vld [vmem:[%s5370_s9 + $0x800] ss:$8 sps:$4 sm:$0xff]   ;;  %v4625_v51 = vld [vmem:[%s5370_s9 + $0x814] ss:$8 sps:$4 sm:$0xff]  }
 0x174   : > { %3389 = vmatpush1.bf16.msra.mxu1 %v4524_v52  ;;  %v4623_v52 = vld [vmem:[%s5370_s9 + $0x810] ss:$8 sps:$4 sm:$0xff]  }
 0x175   : > { %3561 = vmatpush1.bf16.msra.mxu0 %v4527_v53  ;;  %3390 = vmatprep.subr.bf16.mxu1 %v4532_v54  ;;  %v4628_v53 = vld [vmem:[%s5370_s9 + $0x824] ss:$8 sps:$4 sm:$0xff]   ;;  %v4626_v54 = vld [vmem:[%s5370_s9 + $0x820] ss:$8 sps:$4 sm:$0xff]  }
 0x176   : > { %3562 = vmatprep.subr.bf16.mxu0 %v4535_v55  ;;  %v4631_v55 = vld [vmem:[%s5370_s9 + $0x834] ss:$8 sps:$4 sm:$0xff]  }
 0x178   : > { %3391 = vmatpush1.bf16.msra.mxu1 %v4530_v56  ;;  %v4629_v56 = vld [vmem:[%s5370_s9 + $0x830] ss:$8 sps:$4 sm:$0xff]  }
 0x179   : > { %3563 = vmatpush1.bf16.msra.mxu0 %v4533_v57  ;;  %3392 = vmatprep.subr.bf16.mxu1 %v4538_v58  ;;  %v4634_v57 = vld [vmem:[%s5370_s9 + $0x844] ss:$8 sps:$4 sm:$0xff]   ;;  %v4632_v58 = vld [vmem:[%s5370_s9 + $0x840] ss:$8 sps:$4 sm:$0xff]  }
 0x17a   : > { %3564 = vmatprep.subr.bf16.mxu0 %v4541_v59  ;;  %v4637_v59 = vld [vmem:[%s5370_s9 + $0x854] ss:$8 sps:$4 sm:$0xff]  }
 0x17c   : > { %3393 = vmatpush1.bf16.msra.mxu1 %v4536_v60  ;;  %v4635_v60 = vld [vmem:[%s5370_s9 + $0x850] ss:$8 sps:$4 sm:$0xff]  }
 0x17d   : > { %3565 = vmatpush1.bf16.msra.mxu0 %v4539_v61  ;;  %3394 = vmatprep.subr.bf16.mxu1 %v4544_v62  ;;  %v4640_v61 = vld [vmem:[%s5370_s9 + $0x864] ss:$8 sps:$4 sm:$0xff]   ;;  %v4638_v62 = vld [vmem:[%s5370_s9 + $0x860] ss:$8 sps:$4 sm:$0xff]  }
 0x17e   : > { %3566 = vmatprep.subr.bf16.mxu0 %v4547_v63  ;;  %v4643_v63 = vld [vmem:[%s5370_s9 + $0x874] ss:$8 sps:$4 sm:$0xff]  }
 0x180   : > { %3395 = vmatpush1.bf16.msra.mxu1 %v4542_v0  ;;  %v4641_v0 = vld [vmem:[%s5370_s9 + $0x870] ss:$8 sps:$4 sm:$0xff]  }
 0x181   : > { %3567 = vmatpush1.bf16.msra.mxu0 %v4545_v1  ;;  %3396 = vmatprep.subr.bf16.mxu1 %v4550_v2  ;;  %v4646_v1 = vld [vmem:[%s5370_s9 + $0x884] ss:$8 sps:$4 sm:$0xff]   ;;  %v4644_v2 = vld [vmem:[%s5370_s9 + $0x880] ss:$8 sps:$4 sm:$0xff]  }
 0x182   : > { %3568 = vmatprep.subr.bf16.mxu0 %v4553_v3  ;;  %v4649_v3 = vld [vmem:[%s5370_s9 + $0x894] ss:$8 sps:$4 sm:$0xff]  }
 0x184   : > { %3397 = vmatpush1.bf16.msra.mxu1 %v4548_v4  ;;  %v4647_v4 = vld [vmem:[%s5370_s9 + $0x890] ss:$8 sps:$4 sm:$0xff]  }
 0x185   : > { %3569 = vmatpush1.bf16.msra.mxu0 %v4551_v5  ;;  %3398 = vmatprep.subr.bf16.mxu1 %v4556_v6  ;;  %v4652_v5 = vld [vmem:[%s5370_s9 + $0x8a4] ss:$8 sps:$4 sm:$0xff]   ;;  %v4650_v6 = vld [vmem:[%s5370_s9 + $0x8a0] ss:$8 sps:$4 sm:$0xff]  }
 0x186   : > { %3570 = vmatprep.subr.bf16.mxu0 %v4559_v7  ;;  %v4655_v7 = vld [vmem:[%s5370_s9 + $0x8b4] ss:$8 sps:$4 sm:$0xff]  }
 0x188   : > { %3399 = vmatpush1.bf16.msra.mxu1 %v4554_v8  ;;  %v4653_v8 = vld [vmem:[%s5370_s9 + $0x8b0] ss:$8 sps:$4 sm:$0xff]  }
 0x189   : > { %3571 = vmatpush1.bf16.msra.mxu0 %v4557_v9  ;;  %3400 = vmatprep.subr.bf16.mxu1 %v4562_v10  ;;  %v4658_v9 = vld [vmem:[%s5370_s9 + $0x8c4] ss:$8 sps:$4 sm:$0xff]   ;;  %v4656_v10 = vld [vmem:[%s5370_s9 + $0x8c0] ss:$8 sps:$4 sm:$0xff]  }
 0x18a   : > { %3572 = vmatprep.subr.bf16.mxu0 %v4565_v11  ;;  %v4661_v11 = vld [vmem:[%s5370_s9 + $0x8d4] ss:$8 sps:$4 sm:$0xff]  }
 0x18c   : > { %3401 = vmatpush1.bf16.msra.mxu1 %v4560_v12  ;;  %v4659_v12 = vld [vmem:[%s5370_s9 + $0x8d0] ss:$8 sps:$4 sm:$0xff]  }
 0x18d   : > { %3573 = vmatpush1.bf16.msra.mxu0 %v4563_v13  ;;  %3402 = vmatprep.subr.bf16.mxu1 %v4568_v14  ;;  %v4664_v13 = vld [vmem:[%s5370_s9 + $0x8e4] ss:$8 sps:$4 sm:$0xff]   ;;  %v4662_v14 = vld [vmem:[%s5370_s9 + $0x8e0] ss:$8 sps:$4 sm:$0xff]  }
 0x18e   : > { %3574 = vmatprep.subr.bf16.mxu0 %v4571_v15  ;;  %v4667_v15 = vld [vmem:[%s5370_s9 + $0x8f4] ss:$8 sps:$4 sm:$0xff]  }
 0x190   : > { %3403 = vmatpush1.bf16.msra.mxu1 %v4566_v16  ;;  %v4665_v16 = vld [vmem:[%s5370_s9 + $0x8f0] ss:$8 sps:$4 sm:$0xff]   ;;  %s1405_s9 = scalar_lea.vmem %s5737_s2, %s5747_s7 }
 0x191   : > { %3575 = vmatpush1.bf16.msra.mxu0 %v4569_v17  ;;  %3404 = vmatprep.subr.bf16.mxu1 %v4574_v18  ;;  %v4668_v17 = vld [vmem:[%s5735_s0 + $0x40] ss:$72 sps:$4 sm:$0xff]  }
 0x192   : > { %3576 = vmatprep.subr.bf16.mxu0 %v4577_v19 }
 0x194   : > { %3405 = vmatpush1.bf16.msra.mxu1 %v4572_v20 }
 0x195   : > { %3577 = vmatpush1.bf16.msra.mxu0 %v4575_v21  ;;  %3406 = vmatprep.subr.bf16.mxu1 %v4580_v22  ;;  %v1717_v22 = vlaneseq }
 0x196   : > { %3578 = vmatprep.subr.bf16.mxu0 %v4583_v23 }
 0x197   : > { %v1718_v23 = vshrl.u32 %v1717_v22, 7 }
 0x198   : > { %3407 = vmatpush1.bf16.msra.mxu1 %v4578_v24 }
 0x199   : > { %3579 = vmatpush1.bf16.msra.mxu0 %v4581_v25  ;;  %3408 = vmatprep.subr.bf16.mxu1 %v4586_v26  ;;  %v1719_v24 = vsub.s32 0, %v1718_v23  ;;  %v1715_v25 = vld [vmem:[%s1405_s9] sm:$0x3]  ;;  %v1723_v26 = vsub.s32 1, %v1718_v23 }
 0x19a   : > { %3580 = vmatprep.subr.bf16.mxu0 %v4589_v27 }
 0x19b   : > { %v1720_v27 = vrot.slane %v1715_v25, %v1719_v24 }
 0x19c   : > { %3409 = vmatpush1.bf16.msra.mxu1 %v4584_v28  ;;  %v1724_v28 = vrot.slane %v1715_v25, %v1723_v26 }
 0x19d   : > { %3581 = vmatpush1.bf16.msra.mxu0 %v4587_v29  ;;  %3410 = vmatprep.subr.bf16.mxu1 %v4592_v30 }
 0x19e   : > { %3582 = vmatprep.subr.bf16.mxu0 %v4595_v31 }
 0x1a0   : > { %3411 = vmatpush1.bf16.msra.mxu1 %v4590_v32 }
 0x1a1   : > { %3583 = vmatpush1.bf16.msra.mxu0 %v4593_v33  ;;  %3412 = vmatprep.subr.bf16.mxu1 %v4598_v34 }
 0x1a2   : > { %3584 = vmatprep.subr.bf16.mxu0 %v4601_v35 }
 0x1a4   : > { %3413 = vmatpush1.bf16.msra.mxu1 %v4596_v36 }
 0x1a5   : > { %3585 = vmatpush1.bf16.msra.mxu0 %v4599_v37  ;;  %3414 = vmatprep.subr.bf16.mxu1 %v4604_v38 }
 0x1a6   : > { %3586 = vmatprep.subr.bf16.mxu0 %v4607_v39 }
 0x1a8   : > { %3415 = vmatpush1.bf16.msra.mxu1 %v4602_v40 }
 0x1a9   : > { %3587 = vmatpush1.bf16.msra.mxu0 %v4605_v41  ;;  %3416 = vmatprep.subr.bf16.mxu1 %v4610_v42 }
 0x1aa   : > { %3588 = vmatprep.subr.bf16.mxu0 %v4613_v43 }
 0x1ac   : > { %3417 = vmatpush1.bf16.msra.mxu1 %v4608_v44 }
 0x1ad   : > { %3589 = vmatpush1.bf16.msra.mxu0 %v4611_v45 }
 0x1ae   : > { %3601 = vmatprep.subr.bf16.mxu0 %v4622_v46 }
 0x1af   : > { %3419 = vmatmul.mubr.bf16.vlgmr.msra.gmra.mrb[0].mxu1 %v4614_v47 }
 0x1b0   : > { %3591 = vmatmul.mubr.bf16.vlgmr.msra.gmra.mrb[0].mxu0 %v4617_v48 }
 0x1b1   : > { %3602 = vmatpush1.bf16.msra.mxu0 %v4620_v49  ;;  %3633 = vmatprep.mubr.bf16.mxu0 %v4670_v50 }
 0x1b2   : > { %3603 = vmatprep.subr.bf16.mxu0 %v4625_v51 }
 0x1b5   : > { %3604 = vmatpush1.bf16.msra.mxu0 %v4623_v52 }
 0x1b6   : > { %3605 = vmatprep.subr.bf16.mxu0 %v4628_v53 }
 0x1b9   : > { %3606 = vmatpush1.bf16.msra.mxu0 %v4626_v54 }
 0x1ba   : > { %3607 = vmatprep.subr.bf16.mxu0 %v4631_v55 }
 0x1bd   : > { %3608 = vmatpush1.bf16.msra.mxu0 %v4629_v56 }
 0x1be   : > { %3609 = vmatprep.subr.bf16.mxu0 %v4634_v57 }
 0x1c1   : > { %3610 = vmatpush1.bf16.msra.mxu0 %v4632_v58 }
 0x1c2   : > { %3611 = vmatprep.subr.bf16.mxu0 %v4637_v59 }
 0x1c5   : > { %3612 = vmatpush1.bf16.msra.mxu0 %v4635_v60 }
 0x1c6   : > { %3613 = vmatprep.subr.bf16.mxu0 %v4640_v61 }
 0x1c9   : > { %3614 = vmatpush1.bf16.msra.mxu0 %v4638_v62 }
 0x1ca   : > { %3615 = vmatprep.subr.bf16.mxu0 %v4643_v63 }
 0x1cd   : > { %3616 = vmatpush1.bf16.msra.mxu0 %v4641_v0 }
 0x1ce   : > { %3617 = vmatprep.subr.bf16.mxu0 %v4646_v1 }
 0x1d1   : > { %3618 = vmatpush1.bf16.msra.mxu0 %v4644_v2 }
 0x1d2   : > { %3619 = vmatprep.subr.bf16.mxu0 %v4649_v3 }
 0x1d5   : > { %3620 = vmatpush1.bf16.msra.mxu0 %v4647_v4 }
 0x1d6   : > { %3621 = vmatprep.subr.bf16.mxu0 %v4652_v5 }
 0x1d9   : > { %3622 = vmatpush1.bf16.msra.mxu0 %v4650_v6 }
 0x1da   : > { %3623 = vmatprep.subr.bf16.mxu0 %v4655_v7 }
 0x1dd   : > { %3624 = vmatpush1.bf16.msra.mxu0 %v4653_v8 }
 0x1de   : > { %3625 = vmatprep.subr.bf16.mxu0 %v4658_v9 }
 0x1e1   : > { %3626 = vmatpush1.bf16.msra.mxu0 %v4656_v10 }
 0x1e2   : > { %3627 = vmatprep.subr.bf16.mxu0 %v4661_v11 }
 0x1e5   : > { %3628 = vmatpush1.bf16.msra.mxu0 %v4659_v12 }
 0x1e6   : > { %3629 = vmatprep.subr.bf16.mxu0 %v4664_v13 }
 0x1e9   : > { %3630 = vmatpush1.bf16.msra.mxu0 %v4662_v14 }
 0x1ea   : > { %3631 = vmatprep.subr.bf16.mxu0 %v4667_v15 }
 0x1ed   : > { %3632 = vmatpush1.bf16.msra.mxu0 %v4665_v16 }
 0x1f0   : > { %3634 = vmatmul.mubr.bf16.vlgmr.msra.gmra.mrb[0].mxu0 %v4668_v17 }
 0x282   : > { %v3420_v18 = vpop.f32.mrb[0].mxu1 }
 0x283   : > { %v3422_v19 = vpop.f32.mrb[1].mxu1  ;;  %v4134_v29 = vadd.f32 %v3420_v18, %v1720_v27 }
 0x284   : > { %v3424_v20 = vpop.f32.mrb[2].mxu1  ;;  %v4136_v30 = vadd.f32 %v3422_v19, %v1724_v28 }
 0x285   : > { %v3426_v21 = vpop.f32.mrb[3].mxu1  ;;  %v4138_v32 = vadd.f32 %v3424_v20, %v1720_v27 }
 0x286   : > { %v4140_v35 = vadd.f32 %v3426_v21, %v1724_v28 }
 0x2c3   : > { %v3635_v31 = vpop.f32.mrb[0].mxu0 }
 0x2c4   : > { %v4135_v33 = vadd.f32 %v4134_v29, %v3635_v31  ;;  %v3637_v34 = vpop.f32.mrb[1].mxu0 }
 0x2c5   : > { %v4137_v36 = vadd.f32 %v4136_v30, %v3637_v34  ;;  %v3639_v37 = vpop.f32.mrb[2].mxu0 }
 0x2c6   : > { %v3644_v38 = vmul.f32 0.2, %v4135_v33  ;;  %v4139_v39 = vadd.f32 %v4138_v32, %v3639_v37  ;;  %v3641_v40 = vpop.f32.mrb[3].mxu0 }
 0x2c7   : > { %v3645_v41 = vmul.f32 0.2, %v4137_v36  ;;  %v4141_v42 = vadd.f32 %v4140_v35, %v3641_v40 }
 0x2c8   : > { %v3648_v43 = vmax.f32 %v4135_v33, %v3644_v38  ;;  %v3646_v44 = vmul.f32 0.2, %v4139_v39 }
 0x2c9   : > { %v3649_v45 = vmax.f32 %v4137_v36, %v3645_v41  ;;  %v3647_v46 = vmul.f32 0.2, %v4141_v42  ;;  %3672 = sbr.rel (!%p4766_p6) target bundleno = 728 (0x2d8), region = 74 }
 0x2ca   : > { %v3650_v47 = vmax.f32 %v4139_v39, %v3646_v44 }
 0x2cb   : > { %v4131_v48 = vpack.c.bf16 %v3649_v45, %v3648_v43  ;;  %v3651_v49 = vmax.f32 %v4141_v42, %v3647_v46 }
 0x2cd   : > { %3664 = vst [vmem:[%s1393_s18] sm:$0xff] %v4131_v48  ;;  %v4132_v50 = vpack.c.bf16 %v3651_v49, %v3650_v47 }
 0x2cf   : > { %3665 = vst [vmem:[%s1393_s18 + $0x8] sm:$0xff] %v4132_v50 }
 0x2d4   : > { %v3708_v51 = vld [vmem:[%s1393_s18] sm:$0xff] }
 0x2d5   : > { %3709 = vst [vmem:[%s3678_s20] sm:$0xff] %v3708_v51 }
 0x2d6   : > { %v3710_v52 = vld [vmem:[%s1393_s18 + $0x8] sm:$0xff] }
 0x2d7   : > { %3711 = vst [vmem:[%s3678_s20 + $0x10] sm:$0xff] %v3710_v52 }
 0x2d8 PF: > { %s13_s16 = sadd.s32 1, %s4709_s16   ;;  %s5740_s12 = smov %s4697_s13 }
 0x2d9   : > { %p10_p12 = scmp.ge.s32.totalorder %s13_s16, 4   ;;  %s5741_s13 = smov %s4771_s22 }
 0x2da   : > { %s5742_s14 = smov %s4705_s15  ;;  %s5743_s15 = smov %s5745_s17 }
 0x2db   :  { %12 = sbr.rel (!%p10_p12) target bundleno = 3 (0x3), region = 149 }

// kernel: discriminator_forward.9
= control target key start
LH: loop header
LB: loop body
LE: loop exit
PB: predicated region body
PF: predicated region fallthrough
CT: control target
= control target key end

     0   :  { %v30_v35 = vlaneseq  ;;  %vm393_vm0 = vcmask 1041409   ;;  %vm2083_vm1 = vcmask 1041408   ;;  %vm2119_vm2 = vcmask 1024   ;;  %s3323_s1 = inlined_call_operand.vmem [shape: bf16[512,1024], index: 1, kind: input, shape index: {}]   ;;  %s3324_s0 = inlined_call_operand.vmem [shape: bf16[2,1,512], index: 0, kind: input, shape index: {}]   ;;  %s3325_s2 = inlined_call_operand.vmem [shape: f32[1,1024], index: 2, kind: input, shape index: {}]   ;;  %s3326_s3 = inlined_call_operand.vmem [shape: f32[1,1024], index: 3, kind: input, shape index: {}]   ;;  %s3327_s4 = inlined_call_operand.<no memory space> [shape: f32[1,1], index: 4, kind: input, shape index: {}]   ;;  %s3328_s5 = inlined_call_operand.vmem [shape: f32[2,1], index: 5, kind: output, shape index: {}]  }
   0x1   :  { %v78_v0 = vld [vmem:[%s3323_s1] sm:$0xff]  ;;  %v79_v2 = vld [vmem:[%s3323_s1 + $0x8] sm:$0xff] }
   0x2   :  { %v82_v1 = vld [vmem:[%s3323_s1 + $0x20] sm:$0xff]  ;;  %v83_v4 = vld [vmem:[%s3323_s1 + $0x28] sm:$0xff]  ;;  %v2516_v44 = vshrl.u32 %v30_v35, 7 }
   0x3   :  { %v2126_v3 = vcombine.high %v78_v0, %v82_v1  ;;  %v2125_v5 = vcombine.low %v78_v0, %v82_v1  ;;  %v86_v6 = vld [vmem:[%s3323_s1 + $0x40] sm:$0xff]  ;;  %v2128_v8 = vcombine.high %v79_v2, %v83_v4  ;;  %v2127_v9 = vcombine.low %v79_v2, %v83_v4  ;;  %v87_v11 = vld [vmem:[%s3323_s1 + $0x48] sm:$0xff] }
   0x4   :  { %v90_v7 = vld [vmem:[%s3323_s1 + $0x60] sm:$0xff]  ;;  %v91_v12 = vld [vmem:[%s3323_s1 + $0x68] sm:$0xff]  ;;  %v2531_v53 = vsub.s32 2, %v2516_v44 }
   0x5   :  { %v2134_v10 = vcombine.high %v86_v6, %v90_v7  ;;  %v94_v13 = vld [vmem:[%s3323_s1 + $0x80] sm:$0xff]  ;;  %1689 = vmatprep.subr.bf16.mxu0 %v2126_v3  ;;  %v2136_v14 = vcombine.high %v87_v11, %v91_v12  ;;  %v95_v16 = vld [vmem:[%s3323_s1 + $0x88] sm:$0xff]  ;;  %1771 = vmatprep.subr.bf16.mxu1 %v2128_v8  ;;  %v2133_v18 = vcombine.low %v86_v6, %v90_v7 }
   0x6   :  { %v98_v15 = vld [vmem:[%s3323_s1 + $0xa0] sm:$0xff]  ;;  %v99_v17 = vld [vmem:[%s3323_s1 + $0xa8] sm:$0xff]  ;;  %1690 = vmatpush1.bf16.msra.mxu0 %v2125_v5  ;;  %1772 = vmatpush1.bf16.msra.mxu1 %v2127_v9  ;;  %v2135_v19 = vcombine.low %v87_v11, %v91_v12 }
   0x7   :  { %1691 = vmatprep.subr.bf16.mxu0 %v2134_v10  ;;  %v2142_v20 = vcombine.high %v94_v13, %v98_v15  ;;  %1773 = vmatprep.subr.bf16.mxu1 %v2136_v14  ;;  %v2144_v21 = vcombine.high %v95_v16, %v99_v17  ;;  %v102_v22 = vld [vmem:[%s3323_s1 + $0xc0] sm:$0xff]  ;;  %v103_v24 = vld [vmem:[%s3323_s1 + $0xc8] sm:$0xff]  ;;  %v2141_v26 = vcombine.low %v94_v13, %v98_v15 }
   0x8   :  { %v106_v23 = vld [vmem:[%s3323_s1 + $0xe0] sm:$0xff]  ;;  %v107_v25 = vld [vmem:[%s3323_s1 + $0xe8] sm:$0xff]  ;;  %v2143_v27 = vcombine.low %v95_v16, %v99_v17 }
   0x9   :  { %v2150_v28 = vcombine.high %v102_v22, %v106_v23  ;;  %v2152_v29 = vcombine.high %v103_v24, %v107_v25  ;;  %v110_v30 = vld [vmem:[%s3323_s1 + $0x100] sm:$0xff]  ;;  %v111_v32 = vld [vmem:[%s3323_s1 + $0x108] sm:$0xff]  ;;  %v2149_v34 = vcombine.low %v102_v22, %v106_v23  ;;  %v2151_v36 = vcombine.low %v103_v24, %v107_v25 }
   0xa   :  { %1692 = vmatpush1.bf16.msra.mxu0 %v2133_v18  ;;  %1774 = vmatpush1.bf16.msra.mxu1 %v2135_v19  ;;  %v114_v31 = vld [vmem:[%s3323_s1 + $0x120] sm:$0xff]  ;;  %v115_v33 = vld [vmem:[%s3323_s1 + $0x128] sm:$0xff] }
   0xb   :  { %1693 = vmatprep.subr.bf16.mxu0 %v2142_v20  ;;  %1775 = vmatprep.subr.bf16.mxu1 %v2144_v21  ;;  %v2158_v37 = vcombine.high %v110_v30, %v114_v31  ;;  %v2160_v38 = vcombine.high %v111_v32, %v115_v33  ;;  %v118_v39 = vld [vmem:[%s3323_s1 + $0x140] sm:$0xff]  ;;  %v119_v41 = vld [vmem:[%s3323_s1 + $0x148] sm:$0xff]  ;;  %v2157_v43 = vcombine.low %v110_v30, %v114_v31 }
   0xc   :  { %v122_v40 = vld [vmem:[%s3323_s1 + $0x160] sm:$0xff]  ;;  %v123_v42 = vld [vmem:[%s3323_s1 + $0x168] sm:$0xff]  ;;  %v2159_v45 = vcombine.low %v111_v32, %v115_v33 }
   0xd   :  { %v2166_v46 = vcombine.high %v118_v39, %v122_v40  ;;  %v2168_v47 = vcombine.high %v119_v41, %v123_v42  ;;  %v126_v48 = vld [vmem:[%s3323_s1 + $0x180] sm:$0xff]  ;;  %v127_v50 = vld [vmem:[%s3323_s1 + $0x188] sm:$0xff]  ;;  %v2165_v52 = vcombine.low %v118_v39, %v122_v40  ;;  %v2167_v54 = vcombine.low %v119_v41, %v123_v42 }
   0xe   :  { %1694 = vmatpush1.bf16.msra.mxu0 %v2141_v26  ;;  %1776 = vmatpush1.bf16.msra.mxu1 %v2143_v27  ;;  %v130_v49 = vld [vmem:[%s3323_s1 + $0x1a0] sm:$0xff]  ;;  %v131_v51 = vld [vmem:[%s3323_s1 + $0x1a8] sm:$0xff]  ;;  %v2610_v42 = vsub.s32 0, %v2516_v44 }
   0xf   :  { %1695 = vmatprep.subr.bf16.mxu0 %v2150_v28  ;;  %1777 = vmatprep.subr.bf16.mxu1 %v2152_v29  ;;  %v2174_v55 = vcombine.high %v126_v48, %v130_v49  ;;  %v2383_v56 = vld [vmem:[%s3324_s0] sm:$0xff]   ;;  %v2176_v57 = vcombine.high %v127_v50, %v131_v51  ;;  %v135_v62 = vld [vmem:[%s3323_s1 + $0x1c8] sm:$0xff]  ;;  %v2173_v0 = vcombine.low %v126_v48, %v130_v49  ;;  %v2619_v49 = vsub.s32 4, %v2516_v44 }
  0x10   :  { %v134_v58 = vld [vmem:[%s3323_s1 + $0x1c0] sm:$0xff]  ;;  %v2542_v60 = vunpack.c.l.bf16 %v2383_v56  ;;  %v2544_v61 = vunpack.c.h.bf16 %v2383_v56  ;;  %v139_v63 = vld [vmem:[%s3323_s1 + $0x1e8] sm:$0xff]  ;;  %v2175_v3 = vcombine.low %v127_v50, %v131_v51 }
  0x11   :  { %v138_v59 = vld [vmem:[%s3323_s1 + $0x1e0] sm:$0xff]  ;;  %v2184_v5 = vcombine.high %v135_v62, %v139_v63  ;;  %v143_v10 = vld [vmem:[%s3323_s1 + $0x208] sm:$0xff]  ;;  %v2183_v15 = vcombine.low %v135_v62, %v139_v63 }
  0x12   :  { %1696 = vmatpush1.bf16.msra.mxu0 %v2149_v34  ;;  %1778 = vmatpush1.bf16.msra.mxu1 %v2151_v36  ;;  %v37_v1 = vrot.slane %v2542_v60, %v2531_v53  ;;  %v53_v2 = vrot.slane %v2544_v61, %v2531_v53  ;;  %v2182_v4 = vcombine.high %v134_v58, %v138_v59  ;;  %v142_v6 = vld [vmem:[%s3323_s1 + $0x200] sm:$0xff]  ;;  %v147_v11 = vld [vmem:[%s3323_s1 + $0x228] sm:$0xff] }
  0x13   :  { %1697 = vmatprep.subr.bf16.mxu0 %v2158_v37  ;;  %1779 = vmatprep.subr.bf16.mxu1 %v2160_v38  ;;  %v146_v7 = vld [vmem:[%s3323_s1 + $0x220] sm:$0xff]  ;;  %v2181_v12 = vcombine.low %v134_v58, %v138_v59  ;;  %v2192_v17 = vcombine.high %v143_v10, %v147_v11  ;;  %v151_v21 = vld [vmem:[%s3323_s1 + $0x248] sm:$0xff]  ;;  %v2191_v25 = vcombine.low %v143_v10, %v147_v11 }
  0x14   :  { %v71_v8 = vpack.c.bf16 %v37_v1, %v37_v1  ;;  %v75_v9 = vpack.c.bf16 %v53_v2, %v53_v2  ;;  %v2190_v16 = vcombine.high %v142_v6, %v146_v7  ;;  %v150_v18 = vld [vmem:[%s3323_s1 + $0x240] sm:$0xff]  ;;  %v155_v22 = vld [vmem:[%s3323_s1 + $0x268] sm:$0xff]  ;;  %v2189_v23 = vcombine.low %v142_v6, %v146_v7 }
  0x15   :  { %v154_v19 = vld [vmem:[%s3323_s1 + $0x260] sm:$0xff]  ;;  %v2200_v28 = vcombine.high %v151_v21, %v155_v22  ;;  %v159_v31 = vld [vmem:[%s3323_s1 + $0x288] sm:$0xff]  ;;  %v2199_v34 = vcombine.low %v151_v21, %v155_v22  ;;  %v41_v58 = vrot.slane %v2542_v60, %v2619_v49  ;;  %v33_v6 = vrot.slane %v2542_v60, %v2610_v42 }
  0x16   :  { %1698 = vmatpush1.bf16.msra.mxu0 %v2157_v43  ;;  %1780 = vmatpush1.bf16.msra.mxu1 %v2159_v45  ;;  %v385_v13 = vunpack.c.l.b16 %v71_v8  ;;  %v389_v14 = vunpack.c.l.b16 %v75_v9  ;;  %v2198_v26 = vcombine.high %v150_v18, %v154_v19  ;;  %v158_v29 = vld [vmem:[%s3323_s1 + $0x280] sm:$0xff]  ;;  %v163_v32 = vld [vmem:[%s3323_s1 + $0x2a8] sm:$0xff]  ;;  %v2197_v33 = vcombine.low %v150_v18, %v154_v19 }
  0x17   :  { %1699 = vmatprep.subr.bf16.mxu0 %v2166_v46  ;;  %1781 = vmatprep.subr.bf16.mxu1 %v2168_v47  ;;  %v162_v30 = vld [vmem:[%s3323_s1 + $0x2a0] sm:$0xff]  ;;  %v2208_v36 = vcombine.high %v159_v31, %v163_v32  ;;  %v167_v39 = vld [vmem:[%s3323_s1 + $0x2c8] sm:$0xff]  ;;  %v2207_v43 = vcombine.low %v159_v31, %v163_v32 }
  0x18   :  { %v395_v20 = vrot.slane %v389_v14, 7  ;;  %v2206_v35 = vcombine.high %v158_v29, %v162_v30  ;;  %v166_v37 = vld [vmem:[%s3323_s1 + $0x2c0] sm:$0xff]  ;;  %v171_v40 = vld [vmem:[%s3323_s1 + $0x2e8] sm:$0xff]  ;;  %v2205_v41 = vcombine.low %v158_v29, %v162_v30 }
  0x19   :  { %v170_v38 = vld [vmem:[%s3323_s1 + $0x2e0] sm:$0xff]  ;;  %v2216_v46 = vcombine.high %v167_v39, %v171_v40  ;;  %v175_v50 = vld [vmem:[%s3323_s1 + $0x308] sm:$0xff]  ;;  %v2215_v56 = vcombine.low %v167_v39, %v171_v40 }
  0x1a   :  { %1700 = vmatpush1.bf16.msra.mxu0 %v2165_v52  ;;  %1782 = vmatpush1.bf16.msra.mxu1 %v2167_v54  ;;  %v396_v24 = vsel %vm393_vm0, %v395_v20, %v385_v13  ;;  %v2214_v45 = vcombine.high %v166_v37, %v170_v38  ;;  %v174_v47 = vld [vmem:[%s3323_s1 + $0x300] sm:$0xff]  ;;  %v179_v51 = vld [vmem:[%s3323_s1 + $0x328] sm:$0xff]  ;;  %v2628_v52 = vsub.s32 6, %v2516_v44  ;;  %v2213_v54 = vcombine.low %v166_v37, %v170_v38 }
  0x1b   :  { %1701 = vmatprep.subr.bf16.mxu0 %v2174_v55  ;;  %1783 = vmatprep.subr.bf16.mxu1 %v2176_v57  ;;  %v2581_v27 = vpack.c.b16 %v396_v24, %v396_v24  ;;  %v178_v48 = vld [vmem:[%s3323_s1 + $0x320] sm:$0xff]  ;;  %v49_v55 = vrot.slane %v2544_v61, %v2610_v42  ;;  %v2224_v59 = vcombine.high %v175_v50, %v179_v51  ;;  %v183_v1 = vld [vmem:[%s3323_s1 + $0x348] sm:$0xff] }
  0x1c   :  { %v2222_v57 = vcombine.high %v174_v47, %v178_v48  ;;  %v182_v62 = vld [vmem:[%s3323_s1 + $0x340] sm:$0xff]  ;;  %v187_v2 = vld [vmem:[%s3323_s1 + $0x368] sm:$0xff]  ;;  %v2223_v9 = vcombine.low %v175_v50, %v179_v51  ;;  %v70_v20 = vpack.c.bf16 %v33_v6, %v33_v6 }
  0x1d   :  { %1721 = vmatprep.mubr.bf16.mxu0 %v2581_v27  ;;  %1803 = vmatprep.mubr.bf16.mxu1 %v2581_v27  ;;  %v186_v63 = vld [vmem:[%s3323_s1 + $0x360] sm:$0xff]  ;;  %v74_v7 = vpack.c.bf16 %v49_v55, %v49_v55  ;;  %v2232_v11 = vcombine.high %v183_v1, %v187_v2  ;;  %v199_v29 = vld [vmem:[%s3323_s1 + $0x3c8] sm:$0xff] }
  0x1e   :  { %1702 = vmatpush1.bf16.msra.mxu0 %v2173_v0  ;;  %1784 = vmatpush1.bf16.msra.mxu1 %v2175_v3  ;;  %v57_v0 = vrot.slane %v2544_v61, %v2619_v49  ;;  %v61_v3 = vrot.slane %v2544_v61, %v2628_v52  ;;  %v2230_v10 = vcombine.high %v182_v62, %v186_v63  ;;  %v194_v61 = vld [vmem:[%s3323_s1 + $0x3a0] sm:$0xff]  ;;  %v203_v30 = vld [vmem:[%s3323_s1 + $0x3e8] sm:$0xff] }
  0x1f   :  { %1703 = vmatprep.subr.bf16.mxu0 %v2182_v4  ;;  %1785 = vmatprep.subr.bf16.mxu1 %v2184_v5  ;;  %v72_v4 = vpack.c.bf16 %v41_v58, %v41_v58  ;;  %v2221_v5 = vcombine.low %v174_v47, %v178_v48  ;;  %v2229_v19 = vcombine.low %v182_v62, %v186_v63  ;;  %v388_v21 = vunpack.c.l.b16 %v74_v7  ;;  %v206_v39 = vld [vmem:[%s3323_s1 + $0x400] sm:$0xff]  ;;  %v215_v58 = vld [vmem:[%s3323_s1 + $0x448] sm:$0xff] }
  0x20   :  { %v76_v8 = vpack.c.bf16 %v57_v0, %v57_v0  ;;  %v77_v18 = vpack.c.bf16 %v61_v3, %v61_v3  ;;  %v2248_v38 = vcombine.high %v199_v29, %v203_v30  ;;  %v210_v40 = vld [vmem:[%s3323_s1 + $0x420] sm:$0xff]  ;;  %v2247_v50 = vcombine.low %v199_v29, %v203_v30  ;;  %v223_v6 = vld [vmem:[%s3323_s1 + $0x488] sm:$0xff] }
  0x21   :  { %v386_v13 = vunpack.c.l.b16 %v72_v4  ;;  %v2254_v51 = vcombine.high %v206_v39, %v210_v40  ;;  %v214_v55 = vld [vmem:[%s3323_s1 + $0x440] sm:$0xff]  ;;  %v2253_v63 = vcombine.low %v206_v39, %v210_v40  ;;  %v227_v7 = vld [vmem:[%s3323_s1 + $0x4a8] sm:$0xff] }
  0x22   :  { %1704 = vmatpush1.bf16.msra.mxu0 %v2181_v12  ;;  %1786 = vmatpush1.bf16.msra.mxu1 %v2183_v15  ;;  %v190_v12 = vld [vmem:[%s3323_s1 + $0x380] sm:$0xff]  ;;  %v390_v14 = vunpack.c.l.b16 %v76_v8  ;;  %v191_v15 = vld [vmem:[%s3323_s1 + $0x388] sm:$0xff]  ;;  %v391_v32 = vunpack.c.l.b16 %v77_v18 }
  0x23   :  { %1705 = vmatprep.subr.bf16.mxu0 %v2190_v16  ;;  %1787 = vmatprep.subr.bf16.mxu1 %v2192_v17  ;;  %v195_v16 = vld [vmem:[%s3323_s1 + $0x3a8] sm:$0xff]  ;;  %v45_v17 = vrot.slane %v2542_v60, %v2628_v52  ;;  %v2238_v24 = vcombine.high %v190_v12, %v194_v61  ;;  %v202_v60 = vld [vmem:[%s3323_s1 + $0x3e0] sm:$0xff] }
  0x24   :  { %v397_v22 = vrot.slane %v390_v14, 7  ;;  %v222_v3 = vld [vmem:[%s3323_s1 + $0x480] sm:$0xff]  ;;  %v235_v14 = vld [vmem:[%s3323_s1 + $0x4e8] sm:$0xff] }
  0x25   :  { %v73_v31 = vpack.c.bf16 %v45_v17, %v45_v17  ;;  %v226_v4 = vld [vmem:[%s3323_s1 + $0x4a0] sm:$0xff]  ;;  %v247_v30 = vld [vmem:[%s3323_s1 + $0x548] sm:$0xff] }
  0x26   :  { %1706 = vmatpush1.bf16.msra.mxu0 %v2189_v23  ;;  %1788 = vmatpush1.bf16.msra.mxu1 %v2191_v25  ;;  %v2231_v23 = vcombine.low %v183_v1, %v187_v2  ;;  %v2240_v25 = vcombine.high %v191_v15, %v195_v16  ;;  %v250_v29 = vld [vmem:[%s3323_s1 + $0x560] sm:$0xff]  ;;  %v259_v39 = vld [vmem:[%s3323_s1 + $0x5a8] sm:$0xff] }
  0x27   :  { %1707 = vmatprep.subr.bf16.mxu0 %v2198_v26  ;;  %1789 = vmatprep.subr.bf16.mxu1 %v2200_v28  ;;  %v198_v26 = vld [vmem:[%s3323_s1 + $0x3c0] sm:$0xff]  ;;  %v2673_v28 = vsel %vm393_vm0, %v397_v22, %v386_v13  ;;  %v231_v13 = vld [vmem:[%s3323_s1 + $0x4c8] sm:$0xff] }
  0x28   :  { %v2246_v37 = vcombine.high %v198_v26, %v202_v60  ;;  %v2245_v47 = vcombine.low %v198_v26, %v202_v60  ;;  %v2280_v18 = vcombine.high %v231_v13, %v235_v14  ;;  %v243_v22 = vld [vmem:[%s3323_s1 + $0x528] sm:$0xff]  ;;  %v246_v60 = vld [vmem:[%s3323_s1 + $0x540] sm:$0xff] }
  0x29   :  { %v2293_v40 = vcombine.low %v246_v60, %v250_v29 }
  0x2a   :  { %1708 = vmatpush1.bf16.msra.mxu0 %v2197_v33  ;;  %1790 = vmatpush1.bf16.msra.mxu1 %v2199_v34  ;;  %v2237_v33 = vcombine.low %v190_v12, %v194_v61  ;;  %v384_v34 = vunpack.c.l.b16 %v70_v20  ;;  %v230_v12 = vld [vmem:[%s3323_s1 + $0x4c0] sm:$0xff] }
  0x2b   :  { %1709 = vmatprep.subr.bf16.mxu0 %v2206_v35  ;;  %1791 = vmatprep.subr.bf16.mxu1 %v2208_v36  ;;  %v392_v35 = vrot.slane %v388_v21, 7  ;;  %v2239_v36 = vcombine.low %v191_v15, %v195_v16  ;;  %v234_v61 = vld [vmem:[%s3323_s1 + $0x4e0] sm:$0xff]  ;;  %v2269_v15 = vcombine.low %v222_v3, %v226_v4  ;;  %v2271_v16 = vcombine.low %v223_v6, %v227_v7  ;;  %v239_v21 = vld [vmem:[%s3323_s1 + $0x508] sm:$0xff] }
  0x2c   :  { %v2278_v17 = vcombine.high %v230_v12, %v234_v61  ;;  %v242_v20 = vld [vmem:[%s3323_s1 + $0x520] sm:$0xff]  ;;  %v2288_v26 = vcombine.high %v239_v21, %v243_v22 }
  0x2d   :  { %v394_v48 = vsel %vm393_vm0, %v392_v35, %v384_v34  ;;  %v2294_v34 = vcombine.high %v246_v60, %v250_v29  ;;  %v302_v29 = vld [vmem:[%s3323_s1 + $0x700] sm:$0xff] }
  0x2e   :  { %1710 = vmatpush1.bf16.msra.mxu0 %v2205_v41  ;;  %1792 = vmatpush1.bf16.msra.mxu1 %v2207_v43  ;;  %v207_v41 = vld [vmem:[%s3323_s1 + $0x408] sm:$0xff] }
  0x2f   :  { %1711 = vmatprep.subr.bf16.mxu0 %v2214_v45  ;;  %1793 = vmatprep.subr.bf16.mxu1 %v2216_v46  ;;  %v211_v43 = vld [vmem:[%s3323_s1 + $0x428] sm:$0xff]  ;;  %v387_v45 = vunpack.c.l.b16 %v73_v31  ;;  %v399_v46 = vrot.slane %v391_v32, 7 }
  0x30   :  { %v2255_v0 = vcombine.low %v207_v41, %v211_v43  ;;  %v251_v31 = vld [vmem:[%s3323_s1 + $0x568] sm:$0xff] }
  0x31   :  { %v400_v62 = vsel %vm393_vm0, %v399_v46, %v387_v45  ;;  %v2296_v35 = vcombine.high %v247_v30, %v251_v31  ;;  %v262_v46 = vld [vmem:[%s3323_s1 + $0x5c0] sm:$0xff] }
  0x32   :  { %1712 = vmatpush1.bf16.msra.mxu0 %v2213_v54  ;;  %1794 = vmatpush1.bf16.msra.mxu1 %v2215_v56  ;;  %v2256_v54 = vcombine.high %v207_v41, %v211_v43  ;;  %v218_v56 = vld [vmem:[%s3323_s1 + $0x460] sm:$0xff]  ;;  %v2295_v41 = vcombine.low %v247_v30, %v251_v31  ;;  %v303_v31 = vld [vmem:[%s3323_s1 + $0x708] sm:$0xff] }
  0x33   :  { %1713 = vmatprep.subr.bf16.mxu0 %v2222_v57  ;;  %1795 = vmatprep.subr.bf16.mxu1 %v2224_v59  ;;  %v2700_v57 = vpack.c.b16 %v394_v48, %v394_v48  ;;  %v219_v59 = vld [vmem:[%s3323_s1 + $0x468] sm:$0xff]  ;;  %v2262_v1 = vcombine.high %v214_v55, %v218_v56  ;;  %v2261_v8 = vcombine.low %v214_v55, %v218_v56  ;;  %v306_v30 = vld [vmem:[%s3323_s1 + $0x720] sm:$0xff] }
  0x34   :  { %v2264_v2 = vcombine.high %v215_v58, %v219_v59  ;;  %v263_v48 = vld [vmem:[%s3323_s1 + $0x5c8] sm:$0xff] }
  0x36   :  { %1714 = vmatpush1.bf16.msra.mxu0 %v2221_v5  ;;  %1796 = vmatpush1.bf16.msra.mxu1 %v2223_v9  ;;  %v2715_v5 = vpack.c.b16 %v400_v62, %v400_v62  ;;  %v2263_v9 = vcombine.low %v215_v58, %v219_v59  ;;  %v270_v58 = vld [vmem:[%s3323_s1 + $0x600] sm:$0xff]  ;;  %v271_v62 = vld [vmem:[%s3323_s1 + $0x608] sm:$0xff] }
  0x37   :  { %1715 = vmatprep.subr.bf16.mxu0 %v2230_v10  ;;  %1797 = vmatprep.subr.bf16.mxu1 %v2232_v11  ;;  %v2270_v10 = vcombine.high %v222_v3, %v226_v4  ;;  %v2272_v11 = vcombine.high %v223_v6, %v227_v7  ;;  %v274_v59 = vld [vmem:[%s3323_s1 + $0x620] sm:$0xff]  ;;  %v279_v7 = vld [vmem:[%s3323_s1 + $0x648] sm:$0xff] }
  0x38   :  { %v278_v4 = vld [vmem:[%s3323_s1 + $0x640] sm:$0xff] }
  0x39   :  { %v282_v6 = vld [vmem:[%s3323_s1 + $0x660] sm:$0xff] }
  0x3a   :  { %1716 = vmatpush1.bf16.msra.mxu0 %v2229_v19  ;;  %1798 = vmatpush1.bf16.msra.mxu1 %v2231_v23  ;;  %v238_v19 = vld [vmem:[%s3323_s1 + $0x500] sm:$0xff]  ;;  %v2277_v23 = vcombine.low %v230_v12, %v234_v61 }
  0x3b   :  { %1717 = vmatprep.subr.bf16.mxu0 %v2238_v24  ;;  %1799 = vmatprep.subr.bf16.mxu1 %v2240_v25  ;;  %v2279_v24 = vcombine.low %v231_v13, %v235_v14  ;;  %v2286_v25 = vcombine.high %v238_v19, %v242_v20  ;;  %v2285_v32 = vcombine.low %v238_v19, %v242_v20  ;;  %v286_v61 = vld [vmem:[%s3323_s1 + $0x680] sm:$0xff]  ;;  %v287_v14 = vld [vmem:[%s3323_s1 + $0x688] sm:$0xff] }
  0x3c   :  { %v290_v13 = vld [vmem:[%s3323_s1 + $0x6a0] sm:$0xff] }
  0x3d   :  { %v294_v20 = vld [vmem:[%s3323_s1 + $0x6c0] sm:$0xff] }
  0x3e   :  { %1718 = vmatpush1.bf16.msra.mxu0 %v2237_v33  ;;  %1800 = vmatpush1.bf16.msra.mxu1 %v2239_v36  ;;  %v2287_v33 = vcombine.low %v239_v21, %v243_v22  ;;  %v254_v36 = vld [vmem:[%s3323_s1 + $0x580] sm:$0xff]  ;;  %v295_v22 = vld [vmem:[%s3323_s1 + $0x6c8] sm:$0xff] }
  0x3f   :  { %1719 = vmatprep.subr.bf16.mxu0 %v2246_v37  ;;  %1801 = vmatprep.subr.bf16.mxu1 %v2248_v38  ;;  %v258_v37 = vld [vmem:[%s3323_s1 + $0x5a0] sm:$0xff]  ;;  %v255_v38 = vld [vmem:[%s3323_s1 + $0x588] sm:$0xff] }
  0x40   :  { %v2302_v43 = vcombine.high %v254_v36, %v258_v37  ;;  %v2304_v45 = vcombine.high %v255_v38, %v259_v39  ;;  %v298_v21 = vld [vmem:[%s3323_s1 + $0x6e0] sm:$0xff] }
  0x42   :  { %1720 = vmatpush1.bf16.msra.mxu0 %v2245_v47  ;;  %1802 = vmatpush1.bf16.msra.mxu1 %v2247_v50  ;;  %v266_v47 = vld [vmem:[%s3323_s1 + $0x5e0] sm:$0xff]  ;;  %v267_v50 = vld [vmem:[%s3323_s1 + $0x5e8] sm:$0xff] }
  0x43   :  { %1730 = vmatprep.subr.bf16.mxu0 %v2254_v51  ;;  %1812 = vmatprep.subr.bf16.mxu1 %v2256_v54  ;;  %v2301_v51 = vcombine.low %v254_v36, %v258_v37  ;;  %v2303_v54 = vcombine.low %v255_v38, %v259_v39  ;;  %v2310_v55 = vcombine.high %v262_v46, %v266_v47  ;;  %v310_v37 = vld [vmem:[%s3323_s1 + $0x740] sm:$0xff]  ;;  %v311_v39 = vld [vmem:[%s3323_s1 + $0x748] sm:$0xff] }
  0x44   :  { %v2312_v56 = vcombine.high %v263_v48, %v267_v50  ;;  %v314_v38 = vld [vmem:[%s3323_s1 + $0x760] sm:$0xff] }
  0x45   :  { %1722 = vmatmul.mubr.bf16.vlgmr.msra.gmra.mrb[0].mxu0 %v2700_v57  ;;  %1804 = vmatmul.mubr.bf16.vlgmr.msra.gmra.mrb[0].mxu1 %v2700_v57 }
  0x46   :  { %1731 = vmatpush1.bf16.msra.mxu0 %v2253_v63  ;;  %1813 = vmatpush1.bf16.msra.mxu1 %v2255_v0  ;;  %v275_v63 = vld [vmem:[%s3323_s1 + $0x628] sm:$0xff]  ;;  %v2309_v0 = vcombine.low %v262_v46, %v266_v47  ;;  %v318_v47 = vld [vmem:[%s3323_s1 + $0x780] sm:$0xff] }
  0x47   :  { %1732 = vmatprep.subr.bf16.mxu0 %v2262_v1  ;;  %1814 = vmatprep.subr.bf16.mxu1 %v2264_v2  ;;  %v2311_v1 = vcombine.low %v263_v48, %v267_v50  ;;  %v2318_v2 = vcombine.high %v270_v58, %v274_v59  ;;  %v2320_v3 = vcombine.high %v271_v62, %v275_v63  ;;  %v322_v48 = vld [vmem:[%s3323_s1 + $0x7a0] sm:$0xff]  ;;  %v319_v50 = vld [vmem:[%s3323_s1 + $0x788] sm:$0xff] }
  0x48   :  { %1762 = vmatprep.mubr.bf16.mxu0 %v2715_v5  ;;  %1844 = vmatprep.mubr.bf16.mxu1 %v2715_v5 }
  0x4a   :  { %1733 = vmatpush1.bf16.msra.mxu0 %v2261_v8  ;;  %1815 = vmatpush1.bf16.msra.mxu1 %v2263_v9  ;;  %v283_v8 = vld [vmem:[%s3323_s1 + $0x668] sm:$0xff]  ;;  %v2317_v9 = vcombine.low %v270_v58, %v274_v59  ;;  %v326_v59 = vld [vmem:[%s3323_s1 + $0x7c0] sm:$0xff] }
  0x4b   :  { %1734 = vmatprep.subr.bf16.mxu0 %v2270_v10  ;;  %1816 = vmatprep.subr.bf16.mxu1 %v2272_v11  ;;  %v2319_v10 = vcombine.low %v271_v62, %v275_v63  ;;  %v2326_v11 = vcombine.high %v278_v4, %v282_v6  ;;  %v2328_v12 = vcombine.high %v279_v7, %v283_v8  ;;  %v330_v62 = vld [vmem:[%s3323_s1 + $0x7e0] sm:$0xff]  ;;  %v327_v63 = vld [vmem:[%s3323_s1 + $0x7c8] sm:$0xff] }
  0x4e   :  { %1735 = vmatpush1.bf16.msra.mxu0 %v2269_v15  ;;  %1817 = vmatpush1.bf16.msra.mxu1 %v2271_v16  ;;  %v291_v15 = vld [vmem:[%s3323_s1 + $0x6a8] sm:$0xff]  ;;  %v2325_v16 = vcombine.low %v278_v4, %v282_v6  ;;  %v80_v6 = vld [vmem:[%s3323_s1 + $0x10] sm:$0xff] }
  0x4f   :  { %1736 = vmatprep.subr.bf16.mxu0 %v2278_v17  ;;  %1818 = vmatprep.subr.bf16.mxu1 %v2280_v18  ;;  %v2327_v17 = vcombine.low %v279_v7, %v283_v8  ;;  %v2334_v18 = vcombine.high %v286_v61, %v290_v13  ;;  %v2336_v19 = vcombine.high %v287_v14, %v291_v15  ;;  %v84_v7 = vld [vmem:[%s3323_s1 + $0x30] sm:$0xff]  ;;  %v81_v8 = vld [vmem:[%s3323_s1 + $0x18] sm:$0xff] }
  0x52   :  { %1737 = vmatpush1.bf16.msra.mxu0 %v2277_v23  ;;  %1819 = vmatpush1.bf16.msra.mxu1 %v2279_v24  ;;  %v299_v23 = vld [vmem:[%s3323_s1 + $0x6e8] sm:$0xff]  ;;  %v2333_v24 = vcombine.low %v286_v61, %v290_v13  ;;  %v88_v13 = vld [vmem:[%s3323_s1 + $0x50] sm:$0xff] }
  0x53   :  { %1738 = vmatprep.subr.bf16.mxu0 %v2286_v25  ;;  %1820 = vmatprep.subr.bf16.mxu1 %v2288_v26  ;;  %v2335_v25 = vcombine.low %v287_v14, %v291_v15  ;;  %v2342_v26 = vcombine.high %v294_v20, %v298_v21  ;;  %v2344_v60 = vcombine.high %v295_v22, %v299_v23  ;;  %v92_v14 = vld [vmem:[%s3323_s1 + $0x70] sm:$0xff] }
  0x54   :  { %v2903_v15 = vpack.c.b16 %v2673_v28, %v2673_v28  ;;  %v96_v28 = vld [vmem:[%s3323_s1 + $0x90] sm:$0xff] }
  0x56   :  { %1739 = vmatpush1.bf16.msra.mxu0 %v2285_v32  ;;  %1821 = vmatpush1.bf16.msra.mxu1 %v2287_v33  ;;  %v307_v32 = vld [vmem:[%s3323_s1 + $0x728] sm:$0xff]  ;;  %v2341_v33 = vcombine.low %v294_v20, %v298_v21  ;;  %v2138_v20 = vcombine.high %v88_v13, %v92_v14 }
  0x57   :  { %1740 = vmatprep.subr.bf16.mxu0 %v2294_v34  ;;  %1822 = vmatprep.subr.bf16.mxu1 %v2296_v35  ;;  %v2343_v34 = vcombine.low %v295_v22, %v299_v23  ;;  %v2350_v35 = vcombine.high %v302_v29, %v306_v30  ;;  %v2352_v36 = vcombine.high %v303_v31, %v307_v32  ;;  %v100_v22 = vld [vmem:[%s3323_s1 + $0xb0] sm:$0xff]  ;;  %v97_v23 = vld [vmem:[%s3323_s1 + $0x98] sm:$0xff] }
  0x5a   :  { %1741 = vmatpush1.bf16.msra.mxu0 %v2293_v40  ;;  %1823 = vmatpush1.bf16.msra.mxu1 %v2295_v41  ;;  %v315_v40 = vld [vmem:[%s3323_s1 + $0x768] sm:$0xff]  ;;  %v2349_v41 = vcombine.low %v302_v29, %v306_v30  ;;  %v104_v30 = vld [vmem:[%s3323_s1 + $0xd0] sm:$0xff] }
  0x5b   :  { %1742 = vmatprep.subr.bf16.mxu0 %v2302_v43  ;;  %1824 = vmatprep.subr.bf16.mxu1 %v2304_v45  ;;  %v2351_v43 = vcombine.low %v303_v31, %v307_v32  ;;  %v2358_v45 = vcombine.high %v310_v37, %v314_v38  ;;  %v2360_v46 = vcombine.high %v311_v39, %v315_v40  ;;  %v108_v31 = vld [vmem:[%s3323_s1 + $0xf0] sm:$0xff]  ;;  %v105_v32 = vld [vmem:[%s3323_s1 + $0xd8] sm:$0xff] }
  0x5e   :  { %1743 = vmatpush1.bf16.msra.mxu0 %v2301_v51  ;;  %1825 = vmatpush1.bf16.msra.mxu1 %v2303_v54  ;;  %v323_v51 = vld [vmem:[%s3323_s1 + $0x7a8] sm:$0xff]  ;;  %v2357_v54 = vcombine.low %v310_v37, %v314_v38  ;;  %v112_v38 = vld [vmem:[%s3323_s1 + $0x110] sm:$0xff] }
  0x5f   :  { %1744 = vmatprep.subr.bf16.mxu0 %v2310_v55  ;;  %1826 = vmatprep.subr.bf16.mxu1 %v2312_v56  ;;  %v2359_v55 = vcombine.low %v311_v39, %v315_v40  ;;  %v2366_v56 = vcombine.high %v318_v47, %v322_v48  ;;  %v2368_v58 = vcombine.high %v319_v50, %v323_v51  ;;  %v116_v39 = vld [vmem:[%s3323_s1 + $0x130] sm:$0xff]  ;;  %v117_v40 = vld [vmem:[%s3323_s1 + $0x138] sm:$0xff] }
  0x62   :  { %1745 = vmatpush1.bf16.msra.mxu0 %v2309_v0  ;;  %1827 = vmatpush1.bf16.msra.mxu1 %v2311_v1  ;;  %v331_v0 = vld [vmem:[%s3323_s1 + $0x7e8] sm:$0xff]  ;;  %v2365_v1 = vcombine.low %v318_v47, %v322_v48  ;;  %v120_v47 = vld [vmem:[%s3323_s1 + $0x150] sm:$0xff] }
  0x63   :  { %1746 = vmatprep.subr.bf16.mxu0 %v2318_v2  ;;  %1828 = vmatprep.subr.bf16.mxu1 %v2320_v3  ;;  %v2367_v2 = vcombine.low %v319_v50, %v323_v51  ;;  %v2374_v3 = vcombine.high %v326_v59, %v330_v62  ;;  %v2376_v4 = vcombine.high %v327_v63, %v331_v0  ;;  %v124_v48 = vld [vmem:[%s3323_s1 + $0x170] sm:$0xff]  ;;  %v121_v50 = vld [vmem:[%s3323_s1 + $0x158] sm:$0xff] }
  0x64   :  { %v125_v51 = vld [vmem:[%s3323_s1 + $0x178] sm:$0xff] }
  0x66   :  { %1747 = vmatpush1.bf16.msra.mxu0 %v2317_v9  ;;  %1829 = vmatpush1.bf16.msra.mxu1 %v2319_v10  ;;  %v85_v9 = vld [vmem:[%s3323_s1 + $0x38] sm:$0xff]  ;;  %v2373_v10 = vcombine.low %v326_v59, %v330_v62  ;;  %v128_v59 = vld [vmem:[%s3323_s1 + $0x190] sm:$0xff] }
  0x67   :  { %1748 = vmatprep.subr.bf16.mxu0 %v2326_v11  ;;  %1830 = vmatprep.subr.bf16.mxu1 %v2328_v12  ;;  %v2375_v11 = vcombine.low %v327_v63, %v331_v0  ;;  %v2130_v12 = vcombine.high %v80_v6, %v84_v7  ;;  %v2132_v61 = vcombine.high %v81_v8, %v85_v9  ;;  %v132_v62 = vld [vmem:[%s3323_s1 + $0x1b0] sm:$0xff]  ;;  %v129_v63 = vld [vmem:[%s3323_s1 + $0x198] sm:$0xff] }
  0x68   :  { %v133_v0 = vld [vmem:[%s3323_s1 + $0x1b8] sm:$0xff] }
  0x6a   :  { %1749 = vmatpush1.bf16.msra.mxu0 %v2325_v16  ;;  %1831 = vmatpush1.bf16.msra.mxu1 %v2327_v17  ;;  %v89_v16 = vld [vmem:[%s3323_s1 + $0x58] sm:$0xff] }
  0x6b   :  { %1750 = vmatprep.subr.bf16.mxu0 %v2334_v18  ;;  %1832 = vmatprep.subr.bf16.mxu1 %v2336_v19  ;;  %v93_v17 = vld [vmem:[%s3323_s1 + $0x78] sm:$0xff]  ;;  %v2129_v18 = vcombine.low %v80_v6, %v84_v7  ;;  %v2131_v19 = vcombine.low %v81_v8, %v85_v9  ;;  %v136_v6 = vld [vmem:[%s3323_s1 + $0x1d0] sm:$0xff] }
  0x6c   :  { %v2140_v21 = vcombine.high %v89_v16, %v93_v17  ;;  %v140_v7 = vld [vmem:[%s3323_s1 + $0x1f0] sm:$0xff]  ;;  %v137_v8 = vld [vmem:[%s3323_s1 + $0x1d8] sm:$0xff] }
  0x6d   :  { %v141_v9 = vld [vmem:[%s3323_s1 + $0x1f8] sm:$0xff] }
  0x6e   :  { %1751 = vmatpush1.bf16.msra.mxu0 %v2333_v24  ;;  %1833 = vmatpush1.bf16.msra.mxu1 %v2335_v25  ;;  %v101_v24 = vld [vmem:[%s3323_s1 + $0xb8] sm:$0xff]  ;;  %v2137_v25 = vcombine.low %v88_v13, %v92_v14  ;;  %v144_v13 = vld [vmem:[%s3323_s1 + $0x210] sm:$0xff] }
  0x6f   :  { %1752 = vmatprep.subr.bf16.mxu0 %v2342_v26  ;;  %1834 = vmatprep.subr.bf16.mxu1 %v2344_v60  ;;  %v2139_v26 = vcombine.low %v89_v16, %v93_v17  ;;  %v2146_v60 = vcombine.high %v96_v28, %v100_v22  ;;  %v2148_v29 = vcombine.high %v97_v23, %v101_v24  ;;  %v148_v14 = vld [vmem:[%s3323_s1 + $0x230] sm:$0xff]  ;;  %v145_v16 = vld [vmem:[%s3323_s1 + $0x218] sm:$0xff] }
  0x70   :  { %v149_v17 = vld [vmem:[%s3323_s1 + $0x238] sm:$0xff] }
  0x72   :  { %1753 = vmatpush1.bf16.msra.mxu0 %v2341_v33  ;;  %1835 = vmatpush1.bf16.msra.mxu1 %v2343_v34  ;;  %v109_v33 = vld [vmem:[%s3323_s1 + $0xf8] sm:$0xff]  ;;  %v2145_v34 = vcombine.low %v96_v28, %v100_v22  ;;  %v152_v28 = vld [vmem:[%s3323_s1 + $0x250] sm:$0xff] }
  0x73   :  { %1754 = vmatprep.subr.bf16.mxu0 %v2350_v35  ;;  %1836 = vmatprep.subr.bf16.mxu1 %v2352_v36  ;;  %v2147_v35 = vcombine.low %v97_v23, %v101_v24  ;;  %v2154_v36 = vcombine.high %v104_v30, %v108_v31  ;;  %v2156_v37 = vcombine.high %v105_v32, %v109_v33  ;;  %v156_v22 = vld [vmem:[%s3323_s1 + $0x270] sm:$0xff]  ;;  %v153_v23 = vld [vmem:[%s3323_s1 + $0x258] sm:$0xff] }
  0x74   :  { %v157_v24 = vld [vmem:[%s3323_s1 + $0x278] sm:$0xff] }
  0x76   :  { %1755 = vmatpush1.bf16.msra.mxu0 %v2349_v41  ;;  %1837 = vmatpush1.bf16.msra.mxu1 %v2351_v43  ;;  %v2153_v41 = vcombine.low %v104_v30, %v108_v31  ;;  %v2155_v43 = vcombine.low %v105_v32, %v109_v33  ;;  %v160_v30 = vld [vmem:[%s3323_s1 + $0x290] sm:$0xff]  ;;  %v161_v32 = vld [vmem:[%s3323_s1 + $0x298] sm:$0xff] }
  0x77   :  { %1756 = vmatprep.subr.bf16.mxu0 %v2358_v45  ;;  %1838 = vmatprep.subr.bf16.mxu1 %v2360_v46  ;;  %v2162_v45 = vcombine.high %v112_v38, %v116_v39  ;;  %v164_v31 = vld [vmem:[%s3323_s1 + $0x2b0] sm:$0xff]  ;;  %v165_v33 = vld [vmem:[%s3323_s1 + $0x2b8] sm:$0xff] }
  0x7a   :  { %1757 = vmatpush1.bf16.msra.mxu0 %v2357_v54  ;;  %1839 = vmatpush1.bf16.msra.mxu1 %v2359_v55  ;;  %v2161_v54 = vcombine.low %v112_v38, %v116_v39  ;;  %v168_v38 = vld [vmem:[%s3323_s1 + $0x2d0] sm:$0xff] }
  0x7b   :  { %1758 = vmatprep.subr.bf16.mxu0 %v2366_v56  ;;  %1840 = vmatprep.subr.bf16.mxu1 %v2368_v58  ;;  %v2170_v56 = vcombine.high %v120_v47, %v124_v48  ;;  %v2172_v58 = vcombine.high %v121_v50, %v125_v51  ;;  %v172_v39 = vld [vmem:[%s3323_s1 + $0x2f0] sm:$0xff] }
  0x7e   :  { %1759 = vmatpush1.bf16.msra.mxu0 %v2365_v1  ;;  %1841 = vmatpush1.bf16.msra.mxu1 %v2367_v2  ;;  %v2169_v1 = vcombine.low %v120_v47, %v124_v48  ;;  %v2171_v2 = vcombine.low %v121_v50, %v125_v51  ;;  %v176_v47 = vld [vmem:[%s3323_s1 + $0x310] sm:$0xff]  ;;  %v177_v50 = vld [vmem:[%s3323_s1 + $0x318] sm:$0xff] }
  0x7f   :  { %1760 = vmatprep.subr.bf16.mxu0 %v2374_v3  ;;  %1842 = vmatprep.subr.bf16.mxu1 %v2376_v4  ;;  %v2178_v3 = vcombine.high %v128_v59, %v132_v62  ;;  %v2180_v4 = vcombine.high %v129_v63, %v133_v0  ;;  %v180_v48 = vld [vmem:[%s3323_s1 + $0x330] sm:$0xff]  ;;  %v181_v51 = vld [vmem:[%s3323_s1 + $0x338] sm:$0xff] }
  0x82   :  { %1761 = vmatpush1.bf16.msra.mxu0 %v2373_v10  ;;  %1843 = vmatpush1.bf16.msra.mxu1 %v2375_v11  ;;  %v2177_v10 = vcombine.low %v128_v59, %v132_v62  ;;  %v2179_v11 = vcombine.low %v129_v63, %v133_v0  ;;  %v184_v59 = vld [vmem:[%s3323_s1 + $0x350] sm:$0xff]  ;;  %v185_v63 = vld [vmem:[%s3323_s1 + $0x358] sm:$0xff] }
  0x83   :  { %1853 = vmatprep.subr.bf16.mxu0 %v2130_v12  ;;  %1935 = vmatprep.subr.bf16.mxu1 %v2132_v61  ;;  %v2186_v12 = vcombine.high %v136_v6, %v140_v7  ;;  %v2188_v61 = vcombine.high %v137_v8, %v141_v9  ;;  %v188_v62 = vld [vmem:[%s3323_s1 + $0x370] sm:$0xff]  ;;  %v189_v0 = vld [vmem:[%s3323_s1 + $0x378] sm:$0xff] }
  0x85   :  { %1763 = vmatmul.mubr.bf16.vlgmr.msra.gmra.mrb[0].mxu0 %v2903_v15  ;;  %1845 = vmatmul.mubr.bf16.vlgmr.msra.gmra.mrb[0].mxu1 %v2903_v15 }
  0x86   :  { %1854 = vmatpush1.bf16.msra.mxu0 %v2129_v18  ;;  %1936 = vmatpush1.bf16.msra.mxu1 %v2131_v19  ;;  %v2185_v18 = vcombine.low %v136_v6, %v140_v7  ;;  %v2187_v19 = vcombine.low %v137_v8, %v141_v9  ;;  %v192_v6 = vld [vmem:[%s3323_s1 + $0x390] sm:$0xff]  ;;  %v193_v8 = vld [vmem:[%s3323_s1 + $0x398] sm:$0xff] }
  0x87   :  { %1855 = vmatprep.subr.bf16.mxu0 %v2138_v20  ;;  %1937 = vmatprep.subr.bf16.mxu1 %v2140_v21  ;;  %v2194_v20 = vcombine.high %v144_v13, %v148_v14  ;;  %v2196_v21 = vcombine.high %v145_v16, %v149_v17  ;;  %v196_v7 = vld [vmem:[%s3323_s1 + $0x3b0] sm:$0xff]  ;;  %v197_v9 = vld [vmem:[%s3323_s1 + $0x3b8] sm:$0xff] }
  0x88   :  { %1885 = vmatprep.mubr.bf16.mxu0 %v2581_v27  ;;  %1967 = vmatprep.mubr.bf16.mxu1 %v2581_v27  ;;  %v113_v27 = vld [vmem:[%s3323_s1 + $0x118] sm:$0xff] }
  0x89   :  { %v2164_v46 = vcombine.high %v113_v27, %v117_v40  ;;  %v2163_v55 = vcombine.low %v113_v27, %v117_v40  ;;  %v169_v27 = vld [vmem:[%s3323_s1 + $0x2d8] sm:$0xff] }
  0x8a   :  { %1856 = vmatpush1.bf16.msra.mxu0 %v2137_v25  ;;  %1938 = vmatpush1.bf16.msra.mxu1 %v2139_v26  ;;  %v2193_v25 = vcombine.low %v144_v13, %v148_v14  ;;  %v2195_v26 = vcombine.low %v145_v16, %v149_v17  ;;  %v173_v40 = vld [vmem:[%s3323_s1 + $0x2f8] sm:$0xff]  ;;  %v200_v13 = vld [vmem:[%s3323_s1 + $0x3d0] sm:$0xff] }
  0x8b   :  { %1857 = vmatprep.subr.bf16.mxu0 %v2146_v60  ;;  %1939 = vmatprep.subr.bf16.mxu1 %v2148_v29  ;;  %v2202_v60 = vcombine.high %v152_v28, %v156_v22  ;;  %v2204_v29 = vcombine.high %v153_v23, %v157_v24  ;;  %v204_v14 = vld [vmem:[%s3323_s1 + $0x3f0] sm:$0xff]  ;;  %v201_v16 = vld [vmem:[%s3323_s1 + $0x3d8] sm:$0xff] }
  0x8c   :  { %v205_v17 = vld [vmem:[%s3323_s1 + $0x3f8] sm:$0xff] }
  0x8e   :  { %1858 = vmatpush1.bf16.msra.mxu0 %v2145_v34  ;;  %1940 = vmatpush1.bf16.msra.mxu1 %v2147_v35  ;;  %v2201_v34 = vcombine.low %v152_v28, %v156_v22  ;;  %v2203_v35 = vcombine.low %v153_v23, %v157_v24  ;;  %v208_v28 = vld [vmem:[%s3323_s1 + $0x410] sm:$0xff]  ;;  %v209_v23 = vld [vmem:[%s3323_s1 + $0x418] sm:$0xff] }
  0x8f   :  { %1859 = vmatprep.subr.bf16.mxu0 %v2154_v36  ;;  %1941 = vmatprep.subr.bf16.mxu1 %v2156_v37  ;;  %v2210_v36 = vcombine.high %v160_v30, %v164_v31  ;;  %v2212_v37 = vcombine.high %v161_v32, %v165_v33  ;;  %v212_v22 = vld [vmem:[%s3323_s1 + $0x430] sm:$0xff]  ;;  %v213_v24 = vld [vmem:[%s3323_s1 + $0x438] sm:$0xff] }
  0x92   :  { %1860 = vmatpush1.bf16.msra.mxu0 %v2153_v41  ;;  %1942 = vmatpush1.bf16.msra.mxu1 %v2155_v43  ;;  %v2209_v41 = vcombine.low %v160_v30, %v164_v31  ;;  %v2211_v43 = vcombine.low %v161_v32, %v165_v33  ;;  %v216_v30 = vld [vmem:[%s3323_s1 + $0x450] sm:$0xff]  ;;  %v217_v32 = vld [vmem:[%s3323_s1 + $0x458] sm:$0xff] }
  0x93   :  { %1861 = vmatprep.subr.bf16.mxu0 %v2162_v45  ;;  %1943 = vmatprep.subr.bf16.mxu1 %v2164_v46  ;;  %v2218_v45 = vcombine.high %v168_v38, %v172_v39  ;;  %v2220_v46 = vcombine.high %v169_v27, %v173_v40  ;;  %v220_v31 = vld [vmem:[%s3323_s1 + $0x470] sm:$0xff]  ;;  %v221_v33 = vld [vmem:[%s3323_s1 + $0x478] sm:$0xff] }
  0x96   :  { %1862 = vmatpush1.bf16.msra.mxu0 %v2161_v54  ;;  %1944 = vmatpush1.bf16.msra.mxu1 %v2163_v55  ;;  %v2217_v54 = vcombine.low %v168_v38, %v172_v39  ;;  %v2219_v55 = vcombine.low %v169_v27, %v173_v40  ;;  %v224_v38 = vld [vmem:[%s3323_s1 + $0x490] sm:$0xff]  ;;  %v225_v27 = vld [vmem:[%s3323_s1 + $0x498] sm:$0xff] }
  0x97   :  { %1863 = vmatprep.subr.bf16.mxu0 %v2170_v56  ;;  %1945 = vmatprep.subr.bf16.mxu1 %v2172_v58  ;;  %v2226_v56 = vcombine.high %v176_v47, %v180_v48  ;;  %v2228_v58 = vcombine.high %v177_v50, %v181_v51  ;;  %v228_v39 = vld [vmem:[%s3323_s1 + $0x4b0] sm:$0xff]  ;;  %v229_v40 = vld [vmem:[%s3323_s1 + $0x4b8] sm:$0xff] }
  0x9a   :  { %1864 = vmatpush1.bf16.msra.mxu0 %v2169_v1  ;;  %1946 = vmatpush1.bf16.msra.mxu1 %v2171_v2  ;;  %v2225_v1 = vcombine.low %v176_v47, %v180_v48  ;;  %v2227_v2 = vcombine.low %v177_v50, %v181_v51  ;;  %v232_v47 = vld [vmem:[%s3323_s1 + $0x4d0] sm:$0xff]  ;;  %v237_v50 = vld [vmem:[%s3323_s1 + $0x4f8] sm:$0xff]  ;;  %v2273_v51 = vcombine.low %v224_v38, %v228_v39 }
  0x9b   :  { %1865 = vmatprep.subr.bf16.mxu0 %v2178_v3  ;;  %1947 = vmatprep.subr.bf16.mxu1 %v2180_v4  ;;  %v2234_v3 = vcombine.high %v184_v59, %v188_v62  ;;  %v2236_v4 = vcombine.high %v185_v63, %v189_v0  ;;  %v236_v48 = vld [vmem:[%s3323_s1 + $0x4f0] sm:$0xff] }
  0x9e   :  { %1866 = vmatpush1.bf16.msra.mxu0 %v2177_v10  ;;  %1948 = vmatpush1.bf16.msra.mxu1 %v2179_v11  ;;  %v2233_v10 = vcombine.low %v184_v59, %v188_v62  ;;  %v2235_v11 = vcombine.low %v185_v63, %v189_v0  ;;  %v244_v59 = vld [vmem:[%s3323_s1 + $0x530] sm:$0xff]  ;;  %v245_v62 = vld [vmem:[%s3323_s1 + $0x538] sm:$0xff]  ;;  %v2281_v63 = vcombine.low %v232_v47, %v236_v48 }
  0x9f   :  { %1867 = vmatprep.subr.bf16.mxu0 %v2186_v12  ;;  %1949 = vmatprep.subr.bf16.mxu1 %v2188_v61  ;;  %v2242_v12 = vcombine.high %v192_v6, %v196_v7  ;;  %v2244_v61 = vcombine.high %v193_v8, %v197_v9 }
  0xa2   :  { %1868 = vmatpush1.bf16.msra.mxu0 %v2185_v18  ;;  %1950 = vmatpush1.bf16.msra.mxu1 %v2187_v19  ;;  %v2241_v18 = vcombine.low %v192_v6, %v196_v7  ;;  %v2243_v19 = vcombine.low %v193_v8, %v197_v9  ;;  %v249_v6 = vld [vmem:[%s3323_s1 + $0x558] sm:$0xff] }
  0xa3   :  { %1869 = vmatprep.subr.bf16.mxu0 %v2194_v20  ;;  %1951 = vmatprep.subr.bf16.mxu1 %v2196_v21  ;;  %v2250_v20 = vcombine.high %v200_v13, %v204_v14  ;;  %v2252_v21 = vcombine.high %v201_v16, %v205_v17  ;;  %v253_v7 = vld [vmem:[%s3323_s1 + $0x578] sm:$0xff] }
  0xa6   :  { %1870 = vmatpush1.bf16.msra.mxu0 %v2193_v25  ;;  %1952 = vmatpush1.bf16.msra.mxu1 %v2195_v26  ;;  %v2249_v25 = vcombine.low %v200_v13, %v204_v14  ;;  %v2251_v26 = vcombine.low %v201_v16, %v205_v17  ;;  %v257_v13 = vld [vmem:[%s3323_s1 + $0x598] sm:$0xff]  ;;  %v2299_v17 = vcombine.low %v249_v6, %v253_v7 }
  0xa7   :  { %1871 = vmatprep.subr.bf16.mxu0 %v2202_v60  ;;  %1953 = vmatprep.subr.bf16.mxu1 %v2204_v29  ;;  %v2258_v60 = vcombine.high %v208_v28, %v212_v22  ;;  %v2260_v29 = vcombine.high %v209_v23, %v213_v24  ;;  %v261_v14 = vld [vmem:[%s3323_s1 + $0x5b8] sm:$0xff] }
  0xaa   :  { %1872 = vmatpush1.bf16.msra.mxu0 %v2201_v34  ;;  %1954 = vmatpush1.bf16.msra.mxu1 %v2203_v35  ;;  %v2257_v34 = vcombine.low %v208_v28, %v212_v22  ;;  %v2259_v35 = vcombine.low %v209_v23, %v213_v24  ;;  %v265_v28 = vld [vmem:[%s3323_s1 + $0x5d8] sm:$0xff]  ;;  %v2307_v24 = vcombine.low %v257_v13, %v261_v14 }
  0xab   :  { %1873 = vmatprep.subr.bf16.mxu0 %v2210_v36  ;;  %1955 = vmatprep.subr.bf16.mxu1 %v2212_v37  ;;  %v2266_v36 = vcombine.high %v216_v30, %v220_v31  ;;  %v2268_v37 = vcombine.high %v217_v32, %v221_v33  ;;  %v269_v22 = vld [vmem:[%s3323_s1 + $0x5f8] sm:$0xff] }
  0xae   :  { %1874 = vmatpush1.bf16.msra.mxu0 %v2209_v41  ;;  %1956 = vmatpush1.bf16.msra.mxu1 %v2211_v43  ;;  %v2265_v41 = vcombine.low %v216_v30, %v220_v31  ;;  %v2267_v43 = vcombine.low %v217_v32, %v221_v33  ;;  %v273_v30 = vld [vmem:[%s3323_s1 + $0x618] sm:$0xff]  ;;  %v2315_v33 = vcombine.low %v265_v28, %v269_v22 }
  0xaf   :  { %1875 = vmatprep.subr.bf16.mxu0 %v2218_v45  ;;  %1957 = vmatprep.subr.bf16.mxu1 %v2220_v46  ;;  %v2274_v45 = vcombine.high %v224_v38, %v228_v39  ;;  %v2276_v46 = vcombine.high %v225_v27, %v229_v40  ;;  %v277_v31 = vld [vmem:[%s3323_s1 + $0x638] sm:$0xff] }
  0xb0   :  { %v281_v38 = vld [vmem:[%s3323_s1 + $0x658] sm:$0xff] }
  0xb1   :  { %v285_v39 = vld [vmem:[%s3323_s1 + $0x678] sm:$0xff] }
  0xb2   :  { %1876 = vmatpush1.bf16.msra.mxu0 %v2217_v54  ;;  %1958 = vmatpush1.bf16.msra.mxu1 %v2219_v55  ;;  %v2275_v54 = vcombine.low %v225_v27, %v229_v40  ;;  %v2282_v55 = vcombine.high %v232_v47, %v236_v48  ;;  %v2323_v40 = vcombine.low %v273_v30, %v277_v31  ;;  %v289_v47 = vld [vmem:[%s3323_s1 + $0x698] sm:$0xff] }
  0xb3   :  { %1877 = vmatprep.subr.bf16.mxu0 %v2226_v56  ;;  %1959 = vmatprep.subr.bf16.mxu1 %v2228_v58  ;;  %v240_v58 = vld [vmem:[%s3323_s1 + $0x510] sm:$0xff]  ;;  %v293_v48 = vld [vmem:[%s3323_s1 + $0x6b8] sm:$0xff] }
  0xb4   :  { %v2289_v8 = vcombine.low %v240_v58, %v244_v59 }
  0xb6   :  { %1878 = vmatpush1.bf16.msra.mxu0 %v2225_v1  ;;  %1960 = vmatpush1.bf16.msra.mxu1 %v2227_v2  ;;  %v2290_v1 = vcombine.high %v240_v58, %v244_v59  ;;  %v297_v58 = vld [vmem:[%s3323_s1 + $0x6d8] sm:$0xff] }
  0xb7   :  { %1879 = vmatprep.subr.bf16.mxu0 %v2234_v3  ;;  %1961 = vmatprep.subr.bf16.mxu1 %v2236_v4  ;;  %v248_v3 = vld [vmem:[%s3323_s1 + $0x550] sm:$0xff]  ;;  %v301_v59 = vld [vmem:[%s3323_s1 + $0x6f8] sm:$0xff] }
  0xb8   :  { %v252_v4 = vld [vmem:[%s3323_s1 + $0x570] sm:$0xff] }
  0xb9   :  { %v2297_v16 = vcombine.low %v248_v3, %v252_v4 }
  0xba   :  { %1880 = vmatpush1.bf16.msra.mxu0 %v2233_v10  ;;  %1962 = vmatpush1.bf16.msra.mxu1 %v2235_v11  ;;  %v2298_v10 = vcombine.high %v248_v3, %v252_v4  ;;  %v2300_v11 = vcombine.high %v249_v6, %v253_v7  ;;  %v305_v3 = vld [vmem:[%s3323_s1 + $0x718] sm:$0xff]  ;;  %v2347_v7 = vcombine.low %v297_v58, %v301_v59 }
  0xbb   :  { %1881 = vmatprep.subr.bf16.mxu0 %v2242_v12  ;;  %1963 = vmatprep.subr.bf16.mxu1 %v2244_v61  ;;  %v256_v12 = vld [vmem:[%s3323_s1 + $0x590] sm:$0xff]  ;;  %v309_v4 = vld [vmem:[%s3323_s1 + $0x738] sm:$0xff] }
  0xbc   :  { %v260_v61 = vld [vmem:[%s3323_s1 + $0x5b0] sm:$0xff] }
  0xbd   :  { %v2305_v23 = vcombine.low %v256_v12, %v260_v61 }
  0xbe   :  { %1882 = vmatpush1.bf16.msra.mxu0 %v2241_v18  ;;  %1964 = vmatpush1.bf16.msra.mxu1 %v2243_v19  ;;  %v2306_v18 = vcombine.high %v256_v12, %v260_v61  ;;  %v2308_v19 = vcombine.high %v257_v13, %v261_v14  ;;  %v313_v12 = vld [vmem:[%s3323_s1 + $0x758] sm:$0xff]  ;;  %v2355_v14 = vcombine.low %v305_v3, %v309_v4 }
  0xbf   :  { %1883 = vmatprep.subr.bf16.mxu0 %v2250_v20  ;;  %1965 = vmatprep.subr.bf16.mxu1 %v2252_v21  ;;  %v264_v20 = vld [vmem:[%s3323_s1 + $0x5d0] sm:$0xff]  ;;  %v317_v61 = vld [vmem:[%s3323_s1 + $0x778] sm:$0xff] }
  0xc0   :  { %v268_v21 = vld [vmem:[%s3323_s1 + $0x5f0] sm:$0xff] }
  0xc1   :  { %v2313_v32 = vcombine.low %v264_v20, %v268_v21 }
  0xc2   :  { %1884 = vmatpush1.bf16.msra.mxu0 %v2249_v25  ;;  %1966 = vmatpush1.bf16.msra.mxu1 %v2251_v26  ;;  %v2314_v25 = vcombine.high %v264_v20, %v268_v21  ;;  %v2316_v26 = vcombine.high %v265_v28, %v269_v22  ;;  %v321_v20 = vld [vmem:[%s3323_s1 + $0x798] sm:$0xff]  ;;  %v2363_v22 = vcombine.low %v313_v12, %v317_v61 }
  0xc3   :  { %1894 = vmatprep.subr.bf16.mxu0 %v2258_v60  ;;  %1976 = vmatprep.subr.bf16.mxu1 %v2260_v29  ;;  %v272_v60 = vld [vmem:[%s3323_s1 + $0x610] sm:$0xff]  ;;  %v325_v21 = vld [vmem:[%s3323_s1 + $0x7b8] sm:$0xff] }
  0xc4   :  { %v276_v29 = vld [vmem:[%s3323_s1 + $0x630] sm:$0xff] }
  0xc5   :  { %1886 = vmatmul.mubr.bf16.vlgmr.msra.gmra.mrb[4].mxu0 %v2700_v57  ;;  %1968 = vmatmul.mubr.bf16.vlgmr.msra.gmra.mrb[4].mxu1 %v2700_v57  ;;  %v233_v57 = vld [vmem:[%s3323_s1 + $0x4d8] sm:$0xff]  ;;  %v2321_v27 = vcombine.low %v272_v60, %v276_v29 }
  0xc6   :  { %1895 = vmatpush1.bf16.msra.mxu0 %v2257_v34  ;;  %1977 = vmatpush1.bf16.msra.mxu1 %v2259_v35  ;;  %v2284_v56 = vcombine.high %v233_v57, %v237_v50  ;;  %v2283_v0 = vcombine.low %v233_v57, %v237_v50  ;;  %v2322_v34 = vcombine.high %v272_v60, %v276_v29  ;;  %v329_v60 = vld [vmem:[%s3323_s1 + $0x7d8] sm:$0xff] }
  0xc7   :  { %1896 = vmatprep.subr.bf16.mxu0 %v2266_v36  ;;  %1978 = vmatprep.subr.bf16.mxu1 %v2268_v37  ;;  %v2324_v35 = vcombine.high %v273_v30, %v277_v31  ;;  %v280_v36 = vld [vmem:[%s3323_s1 + $0x650] sm:$0xff]  ;;  %v2331_v50 = vcombine.low %v281_v38, %v285_v39  ;;  %v333_v29 = vld [vmem:[%s3323_s1 + $0x7f8] sm:$0xff]  ;;  %v2371_v31 = vcombine.low %v321_v20, %v325_v21 }
  0xc8   :  { %1926 = vmatprep.mubr.bf16.mxu0 %v2715_v5  ;;  %2008 = vmatprep.mubr.bf16.mxu1 %v2715_v5  ;;  %v241_v5 = vld [vmem:[%s3323_s1 + $0x518] sm:$0xff]  ;;  %v284_v37 = vld [vmem:[%s3323_s1 + $0x670] sm:$0xff] }
  0xc9   :  { %v2292_v2 = vcombine.high %v241_v5, %v245_v62  ;;  %v2291_v9 = vcombine.low %v241_v5, %v245_v62  ;;  %v2329_v57 = vcombine.low %v280_v36, %v284_v37  ;;  %v2339_v62 = vcombine.low %v289_v47, %v293_v48 }
  0xca   :  { %1897 = vmatpush1.bf16.msra.mxu0 %v2265_v41  ;;  %1979 = vmatpush1.bf16.msra.mxu1 %v2267_v43  ;;  %v2330_v41 = vcombine.high %v280_v36, %v284_v37  ;;  %v2332_v43 = vcombine.high %v281_v38, %v285_v39  ;;  %v334_v36 = vld [vmem:[%s3325_s2] sm:$0xff]  ;;  %v342_v37 = vsub.s32 1, %v2516_v44  ;;  %v350_v38 = vsub.s32 3, %v2516_v44 }
  0xcb   :  { %1898 = vmatprep.subr.bf16.mxu0 %v2274_v45  ;;  %1980 = vmatprep.subr.bf16.mxu1 %v2276_v46  ;;  %v288_v45 = vld [vmem:[%s3323_s1 + $0x690] sm:$0xff]  ;;  %v339_v39 = vrot.slane %v334_v36, %v2610_v42 }
  0xcc   :  { %v292_v46 = vld [vmem:[%s3323_s1 + $0x6b0] sm:$0xff] }
  0xcd   :  { %v2337_v5 = vcombine.low %v288_v45, %v292_v46 }
  0xce   :  { %1899 = vmatpush1.bf16.msra.mxu0 %v2273_v51  ;;  %1981 = vmatpush1.bf16.msra.mxu1 %v2275_v54  ;;  %v2338_v51 = vcombine.high %v288_v45, %v292_v46  ;;  %v2340_v54 = vcombine.high %v289_v47, %v293_v48  ;;  %v3291_v45 = vld [vmem:[%s3326_s3] sm:$0xff] }
  0xcf   :  { %1900 = vmatprep.subr.bf16.mxu0 %v2282_v55  ;;  %1982 = vmatprep.subr.bf16.mxu1 %v2284_v56  ;;  %v296_v55 = vld [vmem:[%s3323_s1 + $0x6d0] sm:$0xff] }
  0xd0   :  { %v300_v56 = vld [vmem:[%s3323_s1 + $0x6f0] sm:$0xff] }
  0xd1   :  { %v2345_v6 = vcombine.low %v296_v55, %v300_v56 }
  0xd2   :  { %1901 = vmatpush1.bf16.msra.mxu0 %v2281_v63  ;;  %1983 = vmatpush1.bf16.msra.mxu1 %v2283_v0  ;;  %v2346_v63 = vcombine.high %v296_v55, %v300_v56  ;;  %v2348_v0 = vcombine.high %v297_v58, %v301_v59  ;;  %v2038_v55 = vrot.slane %v3291_v45, %v2610_v42 }
  0xd3   :  { %1902 = vmatprep.subr.bf16.mxu0 %v2290_v1  ;;  %1984 = vmatprep.subr.bf16.mxu1 %v2292_v2  ;;  %v304_v1 = vld [vmem:[%s3323_s1 + $0x710] sm:$0xff] }
  0xd4   :  { %v308_v2 = vld [vmem:[%s3323_s1 + $0x730] sm:$0xff] }
  0xd5   :  { %v2353_v13 = vcombine.low %v304_v1, %v308_v2 }
  0xd6   :  { %1903 = vmatpush1.bf16.msra.mxu0 %v2289_v8  ;;  %1985 = vmatpush1.bf16.msra.mxu1 %v2291_v9  ;;  %v2354_v8 = vcombine.high %v304_v1, %v308_v2  ;;  %v2356_v9 = vcombine.high %v305_v3, %v309_v4 }
  0xd7   :  { %1904 = vmatprep.subr.bf16.mxu0 %v2298_v10  ;;  %1986 = vmatprep.subr.bf16.mxu1 %v2300_v11  ;;  %v312_v10 = vld [vmem:[%s3323_s1 + $0x750] sm:$0xff] }
  0xd8   :  { %v316_v11 = vld [vmem:[%s3323_s1 + $0x770] sm:$0xff] }
  0xd9   :  { %v2361_v28 = vcombine.low %v312_v10, %v316_v11 }
  0xda   :  { %1905 = vmatpush1.bf16.msra.mxu0 %v2297_v16  ;;  %1987 = vmatpush1.bf16.msra.mxu1 %v2299_v17  ;;  %v2362_v16 = vcombine.high %v312_v10, %v316_v11  ;;  %v2364_v17 = vcombine.high %v313_v12, %v317_v61 }
  0xdb   :  { %1906 = vmatprep.subr.bf16.mxu0 %v2306_v18  ;;  %1988 = vmatprep.subr.bf16.mxu1 %v2308_v19  ;;  %v320_v18 = vld [vmem:[%s3323_s1 + $0x790] sm:$0xff] }
  0xdc   :  { %v324_v19 = vld [vmem:[%s3323_s1 + $0x7b0] sm:$0xff] }
  0xdd   :  { %v2369_v30 = vcombine.low %v320_v18, %v324_v19 }
  0xde   :  { %1907 = vmatpush1.bf16.msra.mxu0 %v2305_v23  ;;  %1989 = vmatpush1.bf16.msra.mxu1 %v2307_v24  ;;  %v2370_v23 = vcombine.high %v320_v18, %v324_v19  ;;  %v2372_v24 = vcombine.high %v321_v20, %v325_v21  ;;  %v10_v18 = vstv %s3327_s4  ;;  %v358_v19 = vsub.s32 5, %v2516_v44 }
  0xdf   :  { %1908 = vmatprep.subr.bf16.mxu0 %v2314_v25  ;;  %1990 = vmatprep.subr.bf16.mxu1 %v2316_v26  ;;  %v328_v25 = vld [vmem:[%s3323_s1 + $0x7d0] sm:$0xff]  ;;  %11 = vst [vmem:[#allocation2] sm:$0x1] %v10_v18  ;;  %v366_v20 = vsub.s32 7, %v2516_v44  ;;  %v355_v21 = vrot.slane %v334_v36, %v2619_v49 }
  0xe0   :  { %v332_v26 = vld [vmem:[%s3323_s1 + $0x7f0] sm:$0xff] }
  0xe2   :  { %1909 = vmatpush1.bf16.msra.mxu0 %v2313_v32  ;;  %1991 = vmatpush1.bf16.msra.mxu1 %v2315_v33  ;;  %v2378_v32 = vcombine.high %v328_v25, %v332_v26  ;;  %v2380_v33 = vcombine.high %v329_v60, %v333_v29 }
  0xe3   :  { %1910 = vmatprep.subr.bf16.mxu0 %v2322_v34  ;;  %1992 = vmatprep.subr.bf16.mxu1 %v2324_v35  ;;  %v2377_v34 = vcombine.low %v328_v25, %v332_v26  ;;  %v2379_v35 = vcombine.low %v329_v60, %v333_v29 }
  0xe6   :  { %1911 = vmatpush1.bf16.msra.mxu0 %v2321_v27  ;;  %1993 = vmatpush1.bf16.msra.mxu1 %v2323_v40  ;;  %v347_v27 = vrot.slane %v334_v36, %v2531_v53  ;;  %v343_v40 = vrot.slane %v334_v36, %v342_v37 }
  0xe7   :  { %1912 = vmatprep.subr.bf16.mxu0 %v2330_v41  ;;  %1994 = vmatprep.subr.bf16.mxu1 %v2332_v43  ;;  %v351_v41 = vrot.slane %v334_v36, %v350_v38 }
  0xea   :  { %1913 = vmatpush1.bf16.msra.mxu0 %v2329_v57  ;;  %1995 = vmatpush1.bf16.msra.mxu1 %v2331_v50 }
  0xeb   :  { %1914 = vmatprep.subr.bf16.mxu0 %v2338_v51  ;;  %1996 = vmatprep.subr.bf16.mxu1 %v2340_v54 }
  0xee   :  { %1915 = vmatpush1.bf16.msra.mxu0 %v2337_v5  ;;  %1997 = vmatpush1.bf16.msra.mxu1 %v2339_v62  ;;  %v2046_v62 = vrot.slane %v3291_v45, %v2531_v53 }
  0xef   :  { %1916 = vmatprep.subr.bf16.mxu0 %v2346_v63  ;;  %1998 = vmatprep.subr.bf16.mxu1 %v2348_v0  ;;  %v2042_v0 = vrot.slane %v3291_v45, %v342_v37 }
  0xf2   :  { %1917 = vmatpush1.bf16.msra.mxu0 %v2345_v6  ;;  %1999 = vmatpush1.bf16.msra.mxu1 %v2347_v7  ;;  %v2050_v7 = vrot.slane %v3291_v45, %v350_v38 }
  0xf3   :  { %1918 = vmatprep.subr.bf16.mxu0 %v2354_v8  ;;  %2000 = vmatprep.subr.bf16.mxu1 %v2356_v9 }
  0xf6   :  { %1919 = vmatpush1.bf16.msra.mxu0 %v2353_v13  ;;  %2001 = vmatpush1.bf16.msra.mxu1 %v2355_v14 }
  0xf7   :  { %1920 = vmatprep.subr.bf16.mxu0 %v2362_v16  ;;  %2002 = vmatprep.subr.bf16.mxu1 %v2364_v17 }
  0xfa   :  { %1921 = vmatpush1.bf16.msra.mxu0 %v2361_v28  ;;  %2003 = vmatpush1.bf16.msra.mxu1 %v2363_v22  ;;  %v363_v28 = vrot.slane %v334_v36, %v2628_v52  ;;  %v359_v22 = vrot.slane %v334_v36, %v358_v19 }
  0xfb   :  { %1922 = vmatprep.subr.bf16.mxu0 %v2370_v23  ;;  %2004 = vmatprep.subr.bf16.mxu1 %v2372_v24  ;;  %v367_v23 = vrot.slane %v334_v36, %v366_v20 }
  0xfe   :  { %1923 = vmatpush1.bf16.msra.mxu0 %v2369_v30  ;;  %2005 = vmatpush1.bf16.msra.mxu1 %v2371_v31 }
  0xff   :  { %1924 = vmatprep.subr.bf16.mxu0 %v2378_v32  ;;  %2006 = vmatprep.subr.bf16.mxu1 %v2380_v33 }
 0x102   :  { %1925 = vmatpush1.bf16.msra.mxu0 %v2377_v34  ;;  %2007 = vmatpush1.bf16.msra.mxu1 %v2379_v35  ;;  %v2054_v34 = vrot.slane %v3291_v45, %v2619_v49 }
 0x105   :  { %1927 = vmatmul.mubr.bf16.vlgmr.msra.gmra.mrb[4].mxu0 %v2903_v15  ;;  %2009 = vmatmul.mubr.bf16.vlgmr.msra.gmra.mrb[4].mxu1 %v2903_v15 }
 0x158   :  { %v1764_v43 = vpop.f32.mrb[0].mxu0  ;;  %v1846_v46 = vpop.f32.mrb[0].mxu1 }
 0x159   :  { %v2386_v15 = vadd.f32 %v1764_v43, %v339_v39  ;;  %v1766_v47 = vpop.f32.mrb[1].mxu0  ;;  %v2388_v48 = vadd.f32 %v1846_v46, %v347_v27  ;;  %v1848_v50 = vpop.f32.mrb[1].mxu1  ;;  %v2058_v27 = vrot.slane %v3291_v45, %v358_v19 }
 0x15a   :  { %v2387_v57 = vadd.f32 %v1766_v47, %v343_v40  ;;  %v1768_v51 = vpop.f32.mrb[2].mxu0  ;;  %v2389_v56 = vadd.f32 %v1848_v50, %v351_v41  ;;  %v1850_v58 = vpop.f32.mrb[2].mxu1  ;;  %v2062_v41 = vrot.slane %v3291_v45, %v2628_v52 }
 0x15b   :  { %v2017_v54 = vmul.f32 0.2, %v2386_v15  ;;  %v1769_v59 = vpop.f32.mrb[3].mxu0  ;;  %v2019_v5 = vmul.f32 0.2, %v2388_v48  ;;  %v1851_v1 = vpop.f32.mrb[3].mxu1 }
 0x15c   :  { %v2018_v63 = vmul.f32 0.2, %v2387_v57  ;;  %v2020_v3 = vmul.f32 0.2, %v2389_v56 }
 0x15d   :  { %v2025_v2 = vmax.f32 %v2386_v15, %v2017_v54  ;;  %v2027_v4 = vmax.f32 %v2388_v48, %v2019_v5 }
 0x15e   :  { %v2026_v6 = vmax.f32 %v2387_v57, %v2018_v63  ;;  %v2028_v42 = vmax.f32 %v2389_v56, %v2020_v3  ;;  %v2066_v57 = vrot.slane %v3291_v45, %v366_v20  ;;  %v2381_v63 = vld [vmem:[#allocation2] ss:$0 sm:$0xff] }
 0x15f   :  { %v2075_v8 = vmul.f32 %v2038_v55, %v2025_v2  ;;  %v2077_v9 = vmul.f32 %v2046_v62, %v2027_v4 }
 0x160   :  { %v2076_v10 = vmul.f32 %v2042_v0, %v2026_v6  ;;  %v2078_v53 = vmul.f32 %v2050_v7, %v2028_v42 }
 0x161   :  { %v2084_v11 = vsel %vm2083_vm1, %v2075_v8, 0.0  ;;  %v2087_v13 = vsel %vm2083_vm1, %v2077_v9, 0.0 }
 0x162   :  { %v2085_v12 = vsel %vm2083_vm1, %v2076_v10, 0.0  ;;  %v2089_v16 = vsel %vm2083_vm1, %v2078_v53, 0.0 }
 0x163   :  { %v2086_v61 = vadd.f32 %v2085_v12, %v2084_v11 }
 0x165   :  { %v2088_v14 = vadd.f32 %v2087_v13, %v2086_v61 }
 0x167   :  { %v2090_v17 = vadd.f32 %v2089_v16, %v2088_v14 }
 0x1d8   :  { %v1928_v24 = vpop.f32.mrb[4].mxu0  ;;  %v2010_v26 = vpop.f32.mrb[4].mxu1 }
 0x1d9   :  { %v2390_v25 = vadd.f32 %v1928_v24, %v355_v21  ;;  %v1930_v60 = vpop.f32.mrb[5].mxu0  ;;  %v2392_v29 = vadd.f32 %v2010_v26, %v363_v28  ;;  %v2012_v31 = vpop.f32.mrb[5].mxu1 }
 0x1da   :  { %v2391_v30 = vadd.f32 %v1930_v60, %v359_v22  ;;  %v1932_v32 = vpop.f32.mrb[6].mxu0  ;;  %v2393_v35 = vadd.f32 %v2012_v31, %v367_v23  ;;  %v2014_v44 = vpop.f32.mrb[6].mxu1 }
 0x1db   :  { %v2021_v33 = vmul.f32 0.2, %v2390_v25  ;;  %v1933_v37 = vpop.f32.mrb[7].mxu0  ;;  %v2023_v38 = vmul.f32 0.2, %v2392_v29  ;;  %v2015_v36 = vpop.f32.mrb[7].mxu1 }
 0x1dc   :  { %v2022_v39 = vmul.f32 0.2, %v2391_v30  ;;  %v2024_v43 = vmul.f32 0.2, %v2393_v35 }
 0x1dd   :  { %v2029_v40 = vmax.f32 %v2390_v25, %v2021_v33  ;;  %v2031_v15 = vmax.f32 %v2392_v29, %v2023_v38 }
 0x1de   :  { %v2030_v46 = vmax.f32 %v2391_v30, %v2022_v39  ;;  %v2032_v48 = vmax.f32 %v2393_v35, %v2024_v43 }
 0x1df   :  { %v2079_v47 = vmul.f32 %v2054_v34, %v2029_v40  ;;  %v2081_v51 = vmul.f32 %v2062_v41, %v2031_v15 }
 0x1e0   :  { %v2080_v49 = vmul.f32 %v2058_v27, %v2030_v46  ;;  %v2082_v56 = vmul.f32 %v2066_v57, %v2032_v48 }
 0x1e1   :  { %v2091_v50 = vsel %vm2083_vm1, %v2079_v47, 0.0  ;;  %v2095_v59 = vsel %vm2083_vm1, %v2081_v51, 0.0 }
 0x1e2   :  { %v2092_v54 = vadd.f32 %v2091_v50, %v2090_v17  ;;  %v2093_v55 = vsel %vm2083_vm1, %v2080_v49, 0.0  ;;  %v2097_v52 = vsel %vm2083_vm1, %v2082_v56, 0.0 }
 0x1e4   :  { %v2094_v58 = vadd.f32 %v2093_v55, %v2092_v54 }
 0x1e6   :  { %v2096_v5 = vadd.f32 %v2095_v59, %v2094_v58 }
 0x1e8   :  { %v2098_v62 = vadd.f32 %v2097_v52, %v2096_v5 }
 0x1ea   :  { %2099 = vadd.xlane.f32.xlu0 %v2098_v62 }
 0x277   :  { %v2100_v0 = vpop.xlane.xlu0 %2099 }
 0x278   :  { %v2108_v1 = vadd.f32 %v2381_v63, %v2100_v0 }
 0x27a   :  { %v2109_v45 = vand.u32 2147483647, %v2108_v1  ;;  %vm2113_vm3 = vcmp.ge.f32.partialorder %v2108_v1, 0.0 }
 0x27c   :  { %v2110_v2 = vsub.f32 0.0, %v2109_v45 }
 0x27e   :  { %v2111_v3 = vmul.f32 1.442695, %v2110_v2 }
 0x280   :  { %2410 = vpow2.f32 %v2111_v3 }
 0x28a   :  { %v2411_v4 = vpop.eup %2410 }
 0x28b   :  { %v2114_v6 = vadd.f32 1.0, %v2411_v4 }
 0x28d   :  { %2412 = vrcp.f32 %v2114_v6 }
 0x297   :  { %v2413_v7 = vpop.eup %2412 }
 0x298   :  { %v2117_v8 = vmul.f32 %v2413_v7, %v2411_v4 }
 0x29a   :  { %v2118_v42 = vsel %vm2113_vm3, %v2413_v7, %v2117_v8 }
 0x29b   :  { %2120 = vst.msk [vmem:[%s3328_s5] sm:$0x3] %vm2119_vm2, %v2118_v42 }

</bundles_post_ra>
